<compile_context>
chip_gen: v7x
topology: tpu7x:2x2x1
jax: 0.10.0
libtpu: 0.0.40
codegen_flags: <defaults>
</compile_context>

<pallas_src>
import functools

import jax
import jax.numpy as jnp
from jax.experimental import pallas as pl
from jax.experimental.pallas import tpu as pltpu


def _build_pe(d_half: int, resolution: int) -> jnp.ndarray:
    """Deterministic pe buffer, identical formula to the PyTorch __init__."""
    x = jnp.linspace(0.0, resolution - 1, resolution, dtype=jnp.float32).reshape(
        resolution, 1
    )
    fraction = jnp.linspace(0.0, d_half - 1, d_half, dtype=jnp.float32).reshape(
        1, d_half
    )
    fraction = jnp.tile(fraction, (resolution, 1))
    pe = jnp.zeros((resolution, d_half), dtype=jnp.float32)
    even = jnp.sin(x / jnp.power(50.0, 2.0 * fraction[:, 0::2] / d_half))
    odd = jnp.cos(x / jnp.power(50.0, 2.0 * fraction[:, 1::2] / d_half))
    pe = pe.at[:, 0::2].set(even)
    pe = pe.at[:, 1::2].set(odd)
    return pe


def _frac_kernel(
    x_ref,
    table_ref,
    o_ref,
    *,
    resolution: int,
    res_pad: int,
    log10: bool,
    g: int,
    chunk_rows: int,
    n_chunks: int,
):
    # x_ref:     (rows, g)              f32  -- g consecutive elements per row
    # table_ref: (g*res_pad, lane_out)  f32  -- band r holds pe in lanes [r*d_half, (r+1)*d_half)
    # o_ref:     (rows, lane_out)       f32  -- final row-major layout (lane-dense stores)
    lane_out = o_ref.shape[1]
    inv_res = 1.0 / resolution
    # Hoisted out of the chunk loop (JAX does not CSE broadcast/iota).
    iota = jax.lax.broadcasted_iota(jnp.int32, (chunk_rows, res_pad), 1)

    @pl.loop(0, n_chunks)
    def _(c):
        row0 = pl.multiple_of(c * chunk_rows, chunk_rows)
        xv = x_ref[pl.ds(row0, chunk_rows), :]  # (CR, g)
        if log10:
            xv = 0.0025 * jnp.square(jnp.log2(xv))
            xv = jnp.minimum(xv, 1.0)
        xv = jnp.maximum(xv, inv_res)
        # torch.round and jnp.round both round half-to-even.
        idx = jnp.round(xv * resolution).astype(jnp.int32) - 1  # (CR, g)
        # JAX-style clamp for out-of-range inputs (PyTorch would raise instead).
        idx = jnp.clip(idx, 0, resolution - 1)

        acc = jnp.zeros((chunk_rows, lane_out), jnp.float32)
        for r in range(g):  # static band loop
            onehot = (iota == idx[:, r : r + 1]).astype(jnp.float32)  # (CR, res_pad)
            # Exact gather == one-hot matmul on the MXU; pin full f32 precision.
            acc = acc + jnp.dot(
                onehot,
                table_ref[r * res_pad : (r + 1) * res_pad, :],
                preferred_element_type=jnp.float32,
                precision=jax.lax.Precision.HIGHEST,
            )
        o_ref[pl.ds(row0, chunk_rows), :] = acc


def fractional_encoder(
    x: jnp.ndarray,
    pe: jnp.ndarray,
    *,
    resolution: int = 100,
    log10: bool = False,
    max_tile_n: int = 16384,
) -> jnp.ndarray:
    """JAX/Pallas equivalent of FractionalEncoder.forward."""
    orig_shape = x.shape
    assert pe.shape[0] == resolution, "pe table rows must equal resolution"
    d_half = pe.shape[1]

    # Output-layout group factor: g elements packed per 128-lane output row.
    if d_half <= 128 and 128 % d_half == 0:
        g = 128 // d_half
        lane_out = 128
    else:
        g = 1
        lane_out = pl.cdiv(d_half, 128) * 128
        # TODO(synk): when d_half neither divides nor is a multiple of 128 the padded
        # lanes are sliced off in the wrapper (one extra copy).

    x_flat = x.reshape(-1).astype(jnp.float32)
    n = x_flat.shape[0]

    # Tile sizing: ~1-2 MiB of output per grid step, power-of-two, >= 8*g elements.
    bytes_per_elem = 4 * lane_out // g
    cap = max(8 * g, pl.next_power_of_2(max(1, (2 * 1024 * 1024) // bytes_per_elem)))
    cap = min(cap, max(8 * g, max_tile_n))
    tile_n = min(cap, max(8 * g, pl.next_power_of_2(max(n, 1))))

    n_pad = pl.cdiv(n, tile_n) * tile_n
    if n_pad != n:
        # Pad with 1.0 (a valid fraction); padded rows are discarded below.
        x_flat = jnp.concatenate([x_flat, jnp.ones((n_pad - n,), dtype=jnp.float32)])
    x_grp = x_flat.reshape(n_pad // g, g)

    # Zero-padded, block-diagonal band table: band r holds pe in lanes
    # [r*d_half, (r+1)*d_half); indices >= resolution never fire (zero rows).
    res_pad = max(128, pl.cdiv(resolution, 128) * 128)
    pe_f32 = pe.astype(jnp.float32)
    table = jnp.zeros((g * res_pad, lane_out), dtype=jnp.float32)
    for r in range(g):
        table = table.at[
            r * res_pad : r * res_pad + resolution, r * d_half : (r + 1) * d_half
        ].set(pe_f32)

    rows_per_tile = tile_n // g
    chunk_rows = min(rows_per_tile, 256)
    n_chunks = rows_per_tile // chunk_rows

    kernel = functools.partial(
        _frac_kernel,
        resolution=resolution,
        res_pad=res_pad,
        log10=log10,
        g=g,
        chunk_rows=chunk_rows,
        n_chunks=n_chunks,
    )

    out_grp = pl.pallas_call(
        kernel,
        out_shape=jax.ShapeDtypeStruct((n_pad // g, lane_out), jnp.float32),
        grid_spec=pltpu.PrefetchScalarGridSpec(
            num_scalar_prefetch=0,
            grid=(n_pad // tile_n,),
            in_specs=[
                pl.BlockSpec((rows_per_tile, g), lambda i: (i, 0)),
                pl.BlockSpec((g * res_pad, lane_out), lambda i: (0, 0)),
            ],
            out_specs=pl.BlockSpec((rows_per_tile, lane_out), lambda i: (i, 0)),
        ),
        compiler_params=pltpu.CompilerParams(dimension_semantics=("parallel",)),
    )(x_grp, table)

    # Pure layout plumbing: contiguous reshape (no transpose, no extra HBM pass).
    if g > 1:
        out2d = out_grp.reshape(n_pad, d_half)
    else:
        out2d = out_grp[:, :d_half] if lane_out != d_half else out_grp
    return out2d[:n].reshape(*orig_shape, d_half)


def _reference(x, pe, resolution=100, log10=False):
    """Pure-JAX reference of the PyTorch forward."""
    x = x.astype(jnp.float32)
    if log10:
        x = 0.0025 * jnp.square(jnp.log2(x))
        x = jnp.minimum(x, 1.0)
    x = jnp.maximum(x, 1.0 / resolution)
    frac_idx = jnp.round(x * resolution).astype(jnp.int32) - 1
    return pe[frac_idx]


if __name__ == "__main__":
    d_model = 32  # -> d_half = 16
    resolution = 100
    d_half = d_model // 2

    pe = _build_pe(d_half, resolution)

    key = jax.random.PRNGKey(0)
    # fractional amounts in (0, 1], shape (batch=2, seq=8)
    x = jax.random.uniform(key, (2, 8), dtype=jnp.float32, minval=1e-3, maxval=1.0)

    # log10=False path
    out = fractional_encoder(x, pe, resolution=resolution, log10=False)
    out = jax.block_until_ready(out)
    ref = _reference(x, pe, resolution=resolution, log10=False)
    assert out.shape == (2, 8, d_half), out.shape
    assert jnp.allclose(out, ref, atol=1e-5), float(jnp.max(jnp.abs(out - ref)))

    # log10=True path (same kernel, different static params)
    out_l = fractional_encoder(x, pe, resolution=resolution, log10=True)
    out_l = jax.block_until_ready(out_l)
    ref_l = _reference(x, pe, resolution=resolution, log10=True)
    assert jnp.allclose(out_l, ref_l, atol=1e-5), float(jnp.max(jnp.abs(out_l - ref_l)))

    # Larger shape: exercises padding, the in-kernel chunk loop, and grid > 1.
    key2 = jax.random.PRNGKey(1)
    x_big = jax.random.uniform(key2, (4, 700), dtype=jnp.float32, minval=1e-3, maxval=1.0)
    out_b = fractional_encoder(x_big, pe, resolution=resolution, log10=False, max_tile_n=2048)
    out_b = jax.block_until_ready(out_b)
    ref_b = _reference(x_big, pe, resolution=resolution, log10=False)
    assert out_b.shape == (4, 700, d_half), out_b.shape
    assert jnp.allclose(out_b, ref_b, atol=1e-5), float(jnp.max(jnp.abs(out_b - ref_b)))

    print("KERNEL_OK")
</pallas_src>

<mosaic_0001>
module attributes {stable_mosaic.version = 11 : i64} {
  func.func @_frac_kernel(%arg0: i32, %arg1: memref<8x8xf32, #tpu.memory_space<vmem>>, %arg2: memref<1024x128xf32, #tpu.memory_space<vmem>>, %arg3: memref<8x128xf32, #tpu.memory_space<vmem>>) attributes {dimension_semantics = [#tpu.dimension_semantics<parallel>], iteration_bounds = array<i64: 1>, scalar_prefetch = 0 : i64, scratch_operands = 0 : i64, tpu.core_type = #tpu.core_type<tc>, window_params = [{transform_indices = @transform_0, window_bounds = array<i64: 8, 8>}, {pipeline_mode = #tpu.pipeline_mode<synchronous>, transform_indices = @transform_1, window_bounds = array<i64: 1024, 128>}, {transform_indices = @transform_2, window_bounds = array<i64: 8, 128>}]} {
    %0 = tpu.iota {dimensions = array<i32: 1>} : vector<8x128xi32>
    %c0_i32 = arith.constant 0 : i32
    %c1_i32 = arith.constant 1 : i32
    %1 = arith.muli %c0_i32, %c1_i32 : i32
    %c0_i32_0 = arith.constant 0 : i32
    %2 = arith.addi %c0_i32_0, %1 : i32
    %c8_i32 = arith.constant 8 : i32
    %3 = arith.muli %2, %c8_i32 : i32
    %4 = tpu.assume_multiple %3, 8 : i32
    %5 = arith.index_cast %4 : i32 to index
    %c0 = arith.constant 0 : index
    %6 = vector.load %arg1[%5, %c0] : memref<8x8xf32, #tpu.memory_space<vmem>>, vector<8x8xf32>
    %cst = arith.constant 0.00999999977 : f32
    %7 = vector.broadcast %cst : f32 to vector<8x8xf32>
    %8 = arith.maximumf %6, %7 : vector<8x8xf32>
    %cst_1 = arith.constant 1.000000e+02 : f32
    %9 = vector.broadcast %cst_1 : f32 to vector<8x8xf32>
    %10 = arith.mulf %8, %9 : vector<8x8xf32>
    %11 = math.roundeven %10 : vector<8x8xf32>
    %12 = arith.fptosi %11 : vector<8x8xf32> to vector<8x8xi32>
    %c1_i32_2 = arith.constant 1 : i32
    %13 = vector.broadcast %c1_i32_2 : i32 to vector<8x8xi32>
    %14 = arith.subi %12, %13 : vector<8x8xi32>
    %c0_i32_3 = arith.constant 0 : i32
    %c99_i32 = arith.constant 99 : i32
    %15 = vector.broadcast %c0_i32_3 : i32 to vector<8x8xi32>
    %16 = arith.maxsi %15, %14 : vector<8x8xi32>
    %17 = vector.broadcast %c99_i32 : i32 to vector<8x8xi32>
    %18 = arith.minsi %17, %16 : vector<8x8xi32>
    %cst_4 = arith.constant 0.000000e+00 : f32
    %19 = vector.broadcast %cst_4 : f32 to vector<8x128xf32>
    %20 = vector.extract_strided_slice %18 {offsets = [0, 0], sizes = [8, 1], strides = [1, 1]} : vector<8x8xi32> to vector<8x1xi32>
    %21 = vector.broadcast %20 : vector<8x1xi32> to vector<8x128xi32>
    %22 = arith.cmpi eq, %0, %21 : vector<8x128xi32>
    %23 = arith.extui %22 : vector<8x128xi1> to vector<8x128xi32>
    %24 = arith.sitofp %23 : vector<8x128xi32> to vector<8x128xf32>
    %c0_5 = arith.constant 0 : index
    %c0_6 = arith.constant 0 : index
    %25 = vector.load %arg2[%c0_5, %c0_6] : memref<1024x128xf32, #tpu.memory_space<vmem>>, vector<128x128xf32>
    %cst_7 = arith.constant dense<0.000000e+00> : vector<8x128xf32>
    %26 = tpu.matmul %24, %25, %cst_7 {dimension_numbers = #tpu.dot_dimension_numbers<[1], [0], [0], [1], [0, 0, 1, 1], [], []>, precision = #tpu.contract_precision<fp32>} : vector<8x128xf32>, vector<128x128xf32>, vector<8x128xf32> -> vector<8x128xf32>
    %27 = arith.addf %19, %26 : vector<8x128xf32>
    %28 = vector.extract_strided_slice %18 {offsets = [0, 1], sizes = [8, 1], strides = [1, 1]} : vector<8x8xi32> to vector<8x1xi32>
    %29 = vector.broadcast %28 : vector<8x1xi32> to vector<8x128xi32>
    %30 = arith.cmpi eq, %0, %29 : vector<8x128xi32>
    %31 = arith.extui %30 : vector<8x128xi1> to vector<8x128xi32>
    %32 = arith.sitofp %31 : vector<8x128xi32> to vector<8x128xf32>
    %c128 = arith.constant 128 : index
    %c0_8 = arith.constant 0 : index
    %33 = vector.load %arg2[%c128, %c0_8] : memref<1024x128xf32, #tpu.memory_space<vmem>>, vector<128x128xf32>
    %cst_9 = arith.constant dense<0.000000e+00> : vector<8x128xf32>
    %34 = tpu.matmul %32, %33, %cst_9 {dimension_numbers = #tpu.dot_dimension_numbers<[1], [0], [0], [1], [0, 0, 1, 1], [], []>, precision = #tpu.contract_precision<fp32>} : vector<8x128xf32>, vector<128x128xf32>, vector<8x128xf32> -> vector<8x128xf32>
    %35 = arith.addf %27, %34 : vector<8x128xf32>
    %36 = vector.extract_strided_slice %18 {offsets = [0, 2], sizes = [8, 1], strides = [1, 1]} : vector<8x8xi32> to vector<8x1xi32>
    %37 = vector.broadcast %36 : vector<8x1xi32> to vector<8x128xi32>
    %38 = arith.cmpi eq, %0, %37 : vector<8x128xi32>
    %39 = arith.extui %38 : vector<8x128xi1> to vector<8x128xi32>
    %40 = arith.sitofp %39 : vector<8x128xi32> to vector<8x128xf32>
    %c256 = arith.constant 256 : index
    %c0_10 = arith.constant 0 : index
    %41 = vector.load %arg2[%c256, %c0_10] : memref<1024x128xf32, #tpu.memory_space<vmem>>, vector<128x128xf32>
    %cst_11 = arith.constant dense<0.000000e+00> : vector<8x128xf32>
    %42 = tpu.matmul %40, %41, %cst_11 {dimension_numbers = #tpu.dot_dimension_numbers<[1], [0], [0], [1], [0, 0, 1, 1], [], []>, precision = #tpu.contract_precision<fp32>} : vector<8x128xf32>, vector<128x128xf32>, vector<8x128xf32> -> vector<8x128xf32>
    %43 = arith.addf %35, %42 : vector<8x128xf32>
    %44 = vector.extract_strided_slice %18 {offsets = [0, 3], sizes = [8, 1], strides = [1, 1]} : vector<8x8xi32> to vector<8x1xi32>
    %45 = vector.broadcast %44 : vector<8x1xi32> to vector<8x128xi32>
    %46 = arith.cmpi eq, %0, %45 : vector<8x128xi32>
    %47 = arith.extui %46 : vector<8x128xi1> to vector<8x128xi32>
    %48 = arith.sitofp %47 : vector<8x128xi32> to vector<8x128xf32>
    %c384 = arith.constant 384 : index
    %c0_12 = arith.constant 0 : index
    %49 = vector.load %arg2[%c384, %c0_12] : memref<1024x128xf32, #tpu.memory_space<vmem>>, vector<128x128xf32>
    %cst_13 = arith.constant dense<0.000000e+00> : vector<8x128xf32>
    %50 = tpu.matmul %48, %49, %cst_13 {dimension_numbers = #tpu.dot_dimension_numbers<[1], [0], [0], [1], [0, 0, 1, 1], [], []>, precision = #tpu.contract_precision<fp32>} : vector<8x128xf32>, vector<128x128xf32>, vector<8x128xf32> -> vector<8x128xf32>
    %51 = arith.addf %43, %50 : vector<8x128xf32>
    %52 = vector.extract_strided_slice %18 {offsets = [0, 4], sizes = [8, 1], strides = [1, 1]} : vector<8x8xi32> to vector<8x1xi32>
    %53 = vector.broadcast %52 : vector<8x1xi32> to vector<8x128xi32>
    %54 = arith.cmpi eq, %0, %53 : vector<8x128xi32>
    %55 = arith.extui %54 : vector<8x128xi1> to vector<8x128xi32>
    %56 = arith.sitofp %55 : vector<8x128xi32> to vector<8x128xf32>
    %c512 = arith.constant 512 : index
    %c0_14 = arith.constant 0 : index
    %57 = vector.load %arg2[%c512, %c0_14] : memref<1024x128xf32, #tpu.memory_space<vmem>>, vector<128x128xf32>
    %cst_15 = arith.constant dense<0.000000e+00> : vector<8x128xf32>
    %58 = tpu.matmul %56, %57, %cst_15 {dimension_numbers = #tpu.dot_dimension_numbers<[1], [0], [0], [1], [0, 0, 1, 1], [], []>, precision = #tpu.contract_precision<fp32>} : vector<8x128xf32>, vector<128x128xf32>, vector<8x128xf32> -> vector<8x128xf32>
    %59 = arith.addf %51, %58 : vector<8x128xf32>
    %60 = vector.extract_strided_slice %18 {offsets = [0, 5], sizes = [8, 1], strides = [1, 1]} : vector<8x8xi32> to vector<8x1xi32>
    %61 = vector.broadcast %60 : vector<8x1xi32> to vector<8x128xi32>
    %62 = arith.cmpi eq, %0, %61 : vector<8x128xi32>
    %63 = arith.extui %62 : vector<8x128xi1> to vector<8x128xi32>
    %64 = arith.sitofp %63 : vector<8x128xi32> to vector<8x128xf32>
    %c640 = arith.constant 640 : index
    %c0_16 = arith.constant 0 : index
    %65 = vector.load %arg2[%c640, %c0_16] : memref<1024x128xf32, #tpu.memory_space<vmem>>, vector<128x128xf32>
    %cst_17 = arith.constant dense<0.000000e+00> : vector<8x128xf32>
    %66 = tpu.matmul %64, %65, %cst_17 {dimension_numbers = #tpu.dot_dimension_numbers<[1], [0], [0], [1], [0, 0, 1, 1], [], []>, precision = #tpu.contract_precision<fp32>} : vector<8x128xf32>, vector<128x128xf32>, vector<8x128xf32> -> vector<8x128xf32>
    %67 = arith.addf %59, %66 : vector<8x128xf32>
    %68 = vector.extract_strided_slice %18 {offsets = [0, 6], sizes = [8, 1], strides = [1, 1]} : vector<8x8xi32> to vector<8x1xi32>
    %69 = vector.broadcast %68 : vector<8x1xi32> to vector<8x128xi32>
    %70 = arith.cmpi eq, %0, %69 : vector<8x128xi32>
    %71 = arith.extui %70 : vector<8x128xi1> to vector<8x128xi32>
    %72 = arith.sitofp %71 : vector<8x128xi32> to vector<8x128xf32>
    %c768 = arith.constant 768 : index
    %c0_18 = arith.constant 0 : index
    %73 = vector.load %arg2[%c768, %c0_18] : memref<1024x128xf32, #tpu.memory_space<vmem>>, vector<128x128xf32>
    %cst_19 = arith.constant dense<0.000000e+00> : vector<8x128xf32>
    %74 = tpu.matmul %72, %73, %cst_19 {dimension_numbers = #tpu.dot_dimension_numbers<[1], [0], [0], [1], [0, 0, 1, 1], [], []>, precision = #tpu.contract_precision<fp32>} : vector<8x128xf32>, vector<128x128xf32>, vector<8x128xf32> -> vector<8x128xf32>
    %75 = arith.addf %67, %74 : vector<8x128xf32>
    %76 = vector.extract_strided_slice %18 {offsets = [0, 7], sizes = [8, 1], strides = [1, 1]} : vector<8x8xi32> to vector<8x1xi32>
    %77 = vector.broadcast %76 : vector<8x1xi32> to vector<8x128xi32>
    %78 = arith.cmpi eq, %0, %77 : vector<8x128xi32>
    %79 = arith.extui %78 : vector<8x128xi1> to vector<8x128xi32>
    %80 = arith.sitofp %79 : vector<8x128xi32> to vector<8x128xf32>
    %c896 = arith.constant 896 : index
    %c0_20 = arith.constant 0 : index
    %81 = vector.load %arg2[%c896, %c0_20] : memref<1024x128xf32, #tpu.memory_space<vmem>>, vector<128x128xf32>
    %cst_21 = arith.constant dense<0.000000e+00> : vector<8x128xf32>
    %82 = tpu.matmul %80, %81, %cst_21 {dimension_numbers = #tpu.dot_dimension_numbers<[1], [0], [0], [1], [0, 0, 1, 1], [], []>, precision = #tpu.contract_precision<fp32>} : vector<8x128xf32>, vector<128x128xf32>, vector<8x128xf32> -> vector<8x128xf32>
    %83 = arith.addf %75, %82 : vector<8x128xf32>
    %84 = arith.index_cast %4 : i32 to index
    %c0_22 = arith.constant 0 : index
    %85 = vector.load %arg3[%84, %c0_22] : memref<8x128xf32, #tpu.memory_space<vmem>>, vector<8x128xf32>
    tpu.vector_store %arg3[%84, %c0_22], %83 {strides = array<i32>} : memref<8x128xf32, #tpu.memory_space<vmem>>, vector<8x128xf32>,
    %c1_i32_23 = arith.constant 1 : i32
    return
  }
  func.func @transform_0(%arg0: i32) -> (i32, i32) {
    %c0_i32 = arith.constant 0 : i32
    %c0_i32_0 = arith.constant 0 : i32
    return %arg0, %c0_i32 : i32, i32
  }
  func.func @transform_1(%arg0: i32) -> (i32, i32) {
    %c0_i32 = arith.constant 0 : i32
    %c0_i32_0 = arith.constant 0 : i32
    %c0_i32_1 = arith.constant 0 : i32
    return %c0_i32, %c0_i32_0 : i32, i32
  }
  func.func @transform_2(%arg0: i32) -> (i32, i32) {
    %c0_i32 = arith.constant 0 : i32
    %c0_i32_0 = arith.constant 0 : i32
    return %arg0, %c0_i32 : i32, i32
  }
}

</mosaic_0001>

<bundles_post_ra>
// kernel: tpu_custom_call.1
= control target key start
LH: loop header
LB: loop body
LE: loop exit
PB: predicated region body
PF: predicated region fallthrough
CT: control target
= control target key end

     0   :  { %7 = vsyncpa [#allocation3], 0  ;;  %s11822_s0 = inlined_call_operand.hbm [shape: f32[8,8], index: 0, kind: input, shape index: {}]   ;;  %s11823_s1 = inlined_call_operand.hbm [shape: f32[1024,128], index: 1, kind: input, shape index: {}]   ;;  %s11824_s2 = inlined_call_operand.hbm [shape: f32[8,128], index: 2, kind: output, shape index: {}]  }
   0x1   :  { %8 = vsyncpa [#allocation6], 0 }
   0x2   :  { %9 = vsyncpa [#allocation4], 0  ;;  %s9251_s9 = smov [#allocation2]   ;;  %s9252_s11 = smov [#allocation5]  }
   0x3   :  { %s16_s10 = sshll.u32 %s9251_s9, 4  ;;  %s25_s12 = sshll.u32 %s9252_s11, 4  ;;  %s17_s10 = int_to_ptr.vmem [resolvable:$true] %s16_s10  ;;  %s9283_s12 = int_to_ptr.vmem [resolvable:$true] %s25_s12 }
   0x4   :  { %s9179_s15 = scalar_lea.hbm %s11822_s0, 128 }
   0x5   :  { %p9180_p0 = scmp.ne.s32.totalorder %s11822_s0, %s9179_s15  ;;  %p9183_p1 = scmp.lt.u32.totalorder %s9179_s15, %s11822_s0 }
   0x7   :  { %p9185_p2 = pnand %p9183_p1, %p9180_p0 }
   0x9   :  { %9188 = shalt.err (!%p9185_p2)
}
   0xa   :  { %s9189_s20 = scalar_lea.vmem %s17_s10, 128  ;;  %p9194_p4 = scmp.lt.s32.totalorder %s17_s10, %s17_s10 }
   0xb   :  { %p9190_p3 = scmp.ne.s32.totalorder %s17_s10, %s9189_s20  ;;  %p9195_p5 = scmp.lt.s32.totalorder %s9189_s20, %s9189_s20 }
   0xd   :  { %p9196_p6 = por %p9195_p5, %p9194_p4 }
   0xf   :  { %p9197_p7 = pnand %p9196_p6, %p9190_p3 }
  0x11   :  { %9200 = shalt.err (!%p9197_p7)
}
  0x12   :  { %19 = dma.hbm_to_vmem [thread:$0]  %s11822_s0, 128, %s17_s10, [#allocation3]  }
  0x13   :  { %s9201_s25 = scalar_lea.hbm %s11823_s1, 16384 }
  0x14   :  { %p9202_p8 = scmp.ne.s32.totalorder %s11823_s1, %s9201_s25  ;;  %p9205_p9 = scmp.lt.u32.totalorder %s9201_s25, %s11823_s1 }
  0x16   :  { %p9207_p10 = pnand %p9205_p9, %p9202_p8 }
  0x18   :  { %9210 = shalt.err (!%p9207_p10)
}
  0x19   :  { %s9211_s30 = scalar_lea.vmem %s9283_s12, 16384  ;;  %p9216_p12 = scmp.lt.s32.totalorder %s9283_s12, %s9283_s12 }
  0x1a   :  { %p9212_p11 = scmp.ne.s32.totalorder %s9283_s12, %s9211_s30  ;;  %p9217_p13 = scmp.lt.s32.totalorder %s9211_s30, %s9211_s30 }
  0x1c   :  { %p9218_p0 = por %p9217_p13, %p9216_p12 }
  0x1e   :  { %p9219_p1 = pnand %p9218_p0, %p9212_p11 }
  0x20   :  { %9222 = shalt.err (!%p9219_p1)
}
  0x21   :  { %s9253_s0 = smov 128   ;;  %s9254_s3 = smov 8  }
  0x22   :  { %31 = dma.hbm_to_vmem [thread:$0]  %s11823_s1, 16384, %s9283_s12, [#allocation6], %s9253_s0, %s9253_s0, %s9254_s3  }
  0x23   :  { %9245 = dma.done.wait [#allocation3], 128  }
  0x24   :  { %9246 = vsyncadd [#allocation3], 4294967168 }
  0x25   :  { %9247 = dma.done.wait [#allocation6], 16384  }
  0x26   :  { %9248 = vsyncadd [#allocation6], 4294950912  ;;  %v9255_v0 = vmov 1   ;;  %v11842_v1 = vmov 0.0|0.0   ;;  %v40_v2 = vld [vmem:[#allocation2] sm:$0xff]  ;;  %v77_v3 = vld [vmem:[#allocation5 + $0x80] sm:$0xff] }
  0x27   :  { %9170 = vset.pattern.permute.xlu0 %v9255_v0  ;;  %7905 = vmatprep.subr.bf16.mxu1 %v11842_v1  ;;  %v78_v4 = vld [vmem:[#allocation5 + $0x88] sm:$0xff]  ;;  %v41_v5 = vmax.f32 %v40_v2, 0.01  ;;  %v94_v6 = vand.u32 4294901760, %v77_v3  ;;  %v79_v8 = vld [vmem:[#allocation5 + $0x90] sm:$0xff]  ;;  %v80_v9 = vld [vmem:[#allocation5 + $0x98] sm:$0xff] }
  0x28   :  { %8481 = vmatprep.subr.bf16.mxu0 %v11842_v1  ;;  %v97_v7 = vand.u32 4294901760, %v78_v4  ;;  %v100_v10 = vand.u32 4294901760, %v79_v8  ;;  %v103_v11 = vand.u32 4294901760, %v80_v9  ;;  %v2709_v12 = vld [vmem:[#allocation5 + $0x200] sm:$0xff]  ;;  %v2710_v13 = vld [vmem:[#allocation5 + $0x208] sm:$0xff]  ;;  %v2711_v20 = vld [vmem:[#allocation5 + $0x210] sm:$0xff] }
  0x29   :  { %v81_v14 = vld [vmem:[#allocation5 + $0xa0] sm:$0xff]  ;;  %v42_v15 = vmul.f32 100.0, %v41_v5  ;;  %v9318_v17 = vsub.f32 %v77_v3, %v94_v6  ;;  %v82_v19 = vld [vmem:[#allocation5 + $0xa8] sm:$0xff]  ;;  %v2712_v21 = vld [vmem:[#allocation5 + $0x218] sm:$0xff]  ;;  %v2726_v25 = vand.u32 4294901760, %v2709_v12  ;;  %v2729_v28 = vand.u32 4294901760, %v2710_v13 }
  0x2a   :  { %v9316_v16 = vpack.c.bf16 %v97_v7, %v94_v6  ;;  %v9320_v18 = vsub.f32 %v78_v4, %v97_v7  ;;  %v9322_v22 = vpack.c.bf16 %v103_v11, %v100_v10  ;;  %v9324_v23 = vsub.f32 %v79_v8, %v100_v10  ;;  %v83_v26 = vld [vmem:[#allocation5 + $0xb0] sm:$0xff]  ;;  %v84_v34 = vld [vmem:[#allocation5 + $0xb8] sm:$0xff]  ;;  %v2713_v40 = vld [vmem:[#allocation5 + $0x220] sm:$0xff]  ;;  %s9267_s1 = smov [#allocation7]  }
  0x2b   :  { %v9326_v24 = vsub.f32 %v80_v9, %v103_v11  ;;  %v9152_v27 = vcvt.f32.s32 %v42_v15  ;;  %v106_v29 = vand.u32 4294901760, %v81_v14  ;;  %v109_v30 = vand.u32 4294901760, %v82_v19  ;;  %v2714_v41 = vld [vmem:[#allocation5 + $0x228] sm:$0xff]  ;;  %v85_v42 = vld [vmem:[#allocation5 + $0xc0] sm:$0xff]  ;;  %v2715_v55 = vld [vmem:[#allocation5 + $0x230] sm:$0xff]  ;;  %s5366_s6 = sshll.u32 %s9267_s1, 4  ;;  %s5367_s6 = int_to_ptr.vmem [resolvable:$true] %s5366_s6 }
  0x2c   :  { %12024 = vst [vmem:[#allocation11_spill] sm:$0xff] %v9322_v22  ;;  %7907 = vmatpush3.bf16.msra.mxu1 %v9316_v16  ;;  %v9330_v31 = vsub.f32 %v2709_v12, %v2726_v25  ;;  %v2732_v32 = vand.u32 4294901760, %v2711_v20  ;;  %v2735_v33 = vand.u32 4294901760, %v2712_v21  ;;  %v112_v35 = vand.u32 4294901760, %v83_v26  ;;  %v86_v47 = vld [vmem:[#allocation5 + $0xc8] sm:$0xff]  ;;  %v2716_v56 = vld [vmem:[#allocation5 + $0x238] sm:$0xff]  ;;  %p9228_p3 = scmp.lt.s32.totalorder %s5367_s6, %s5367_s6 }
  0x2d   :  { %7908 = vmatprep.subr.bf16.mxu1 %v11842_v1  ;;  %v5376_v36 = vadd.s32 4294967295, %v9152_v27  ;;  %v9332_v37 = vpack.c.bf16 %v2729_v28, %v2726_v25  ;;  %v9334_v38 = vsub.f32 %v2710_v13, %v2729_v28  ;;  %v9336_v39 = vpack.c.bf16 %v109_v30, %v106_v29  ;;  %v87_v60 = vld [vmem:[#allocation5 + $0xd0] sm:$0xff]  ;;  %v88_v61 = vld [vmem:[#allocation5 + $0xd8] sm:$0xff]  ;;  %v2717_v62 = vld [vmem:[#allocation5 + $0x240] sm:$0xff]  ;;  %s9223_s7 = scalar_lea.vmem %s5367_s6, 128 }
  0x2e   :  { %v9338_v43 = vsub.f32 %v81_v14, %v106_v29  ;;  %v9340_v44 = vsub.f32 %v82_v19, %v109_v30  ;;  %v9342_v45 = vpack.c.bf16 %v2735_v33, %v2732_v32  ;;  %v9344_v46 = vsub.f32 %v2711_v20, %v2732_v32  ;;  %v2718_v4 = vld [vmem:[#allocation5 + $0x248] sm:$0xff]  ;;  %v89_v5 = vld [vmem:[#allocation5 + $0xe0] sm:$0xff]  ;;  %v2719_v15 = vld [vmem:[#allocation5 + $0x250] sm:$0xff]  ;;  %p9224_p2 = scmp.ne.s32.totalorder %s5367_s6, %s9223_s7  ;;  %p9229_p4 = scmp.lt.s32.totalorder %s9223_s7, %s9223_s7 }
  0x2f   :  { %12025 = vst [vmem:[#allocation12_spill] sm:$0xff] %v9332_v37  ;;  %12026 = vst [vmem:[#allocation13_spill] sm:$0xff] %v9336_v39  ;;  %vm45_vm0 = vcmp.gt.s32.totalorder %v5376_v36, 0  ;;  %8483 = vmatpush3.bf16.msra.mxu0 %v9332_v37  ;;  %v9348_v48 = vsub.f32 %v2712_v21, %v2735_v33  ;;  %v115_v49 = vand.u32 4294901760, %v84_v34  ;;  %v9350_v50 = vsub.f32 %v83_v26, %v112_v35  ;;  %v90_v6 = vld [vmem:[#allocation5 + $0xe8] sm:$0xff]  ;;  %v2720_v26 = vld [vmem:[#allocation5 + $0x258] sm:$0xff] }
  0x30   :  { %12027 = vst [vmem:[#allocation14_spill] sm:$0xff] %v9342_v45  ;;  %7910 = vmatpush3.bf16.msra.mxu1 %v9322_v22  ;;  %v46_v51 = vsel %vm45_vm0, %v5376_v36, 0  ;;  %8484 = vmatprep.subr.bf16.mxu0 %v11842_v1  ;;  %v2738_v52 = vand.u32 4294901760, %v2713_v40  ;;  %v2741_v53 = vand.u32 4294901760, %v2714_v41  ;;  %v118_v54 = vand.u32 4294901760, %v85_v42  ;;  %v91_v32 = vld [vmem:[#allocation5 + $0xf0] sm:$0xff]  ;;  %p9230_p5 = por %p9229_p4, %p9228_p3 }
  0x31   :  { %7911 = vmatprep.subr.bf16.mxu1 %v11842_v1  ;;  %vm47_vm1 = vcmp.lt.s32.totalorder %v46_v51, 99  ;;  %v9354_v57 = vpack.c.bf16 %v115_v49, %v112_v35  ;;  %v9356_v58 = vsub.f32 %v84_v34, %v115_v49  ;;  %v121_v59 = vand.u32 4294901760, %v86_v47  ;;  %v92_v33 = vld [vmem:[#allocation5 + $0xf8] sm:$0xff] }
  0x32   :  { %v9358_v63 = vsel %vm47_vm1, %v46_v51, 99  ;;  %v9360_v0 = vpack.c.bf16 %v2741_v53, %v2738_v52  ;;  %v9362_v2 = vsub.f32 %v2713_v40, %v2738_v52  ;;  %v9364_v3 = vsub.f32 %v2714_v41, %v2741_v53  ;;  %p9231_p6 = pnand %p9230_p5, %p9224_p2 }
  0x33   :  { %12028 = vst [vmem:[#allocation15_spill] sm:$0xff] %v9354_v57  ;;  %12029 = vst [vmem:[#allocation16_spill] sm:$0xff] %v9358_v63  ;;  %72 = vperm.xlu0 %9170, %v9358_v63   ;;  %v9368_v7 = vpack.c.bf16 %v121_v59, %v118_v54  ;;  %v9370_v8 = vsub.f32 %v85_v42, %v118_v54  ;;  %v9372_v9 = vsub.f32 %v86_v47, %v121_v59  ;;  %v9257_v34 = vmov 4   ;;  %v2721_v42 = vld [vmem:[#allocation5 + $0x260] sm:$0xff]  ;;  %v2722_v47 = vld [vmem:[#allocation5 + $0x268] sm:$0xff] }
  0x34   :  { %12030 = vst [vmem:[#allocation17_spill] sm:$0xff] %v9360_v0  ;;  %7913 = vmatpush3.bf16.msra.mxu1 %v9336_v39  ;;  %v2744_v10 = vand.u32 4294901760, %v2715_v55  ;;  %8486 = vmatpush3.bf16.msra.mxu0 %v9342_v45  ;;  %v2747_v11 = vand.u32 4294901760, %v2716_v56  ;;  %v124_v12 = vand.u32 4294901760, %v87_v60  ;;  %v127_v13 = vand.u32 4294901760, %v88_v61 }
  0x35   :  { %12031 = vst [vmem:[#allocation18_spill] sm:$0xff] %v9368_v7  ;;  %7914 = vmatprep.subr.bf16.mxu1 %v11842_v1  ;;  %v2750_v14 = vand.u32 4294901760, %v2717_v62  ;;  %8487 = vmatprep.subr.bf16.mxu0 %v11842_v1  ;;  %v2753_v20 = vand.u32 4294901760, %v2718_v4  ;;  %v130_v21 = vand.u32 4294901760, %v89_v5  ;;  %v133_v25 = vand.u32 4294901760, %v90_v6 }
  0x36   :  { %v9377_v19 = vsub.f32 %v2715_v55, %v2744_v10  ;;  %v9379_v27 = vpack.c.bf16 %v2747_v11, %v2744_v10  ;;  %v9381_v28 = vsub.f32 %v2716_v56, %v2747_v11  ;;  %v9383_v29 = vpack.c.bf16 %v127_v13, %v124_v12  ;;  %v2723_v10 = vld [vmem:[#allocation5 + $0x270] sm:$0xff] }
  0x37   :  { %v9385_v30 = vsub.f32 %v87_v60, %v124_v12  ;;  %9171 = vset.pattern.permute.xlu0 %v9257_v34  ;;  %v9388_v35 = vsub.f32 %v88_v61, %v127_v13  ;;  %v9390_v36 = vpack.c.bf16 %v2753_v20, %v2750_v14  ;;  %v9392_v40 = vsub.f32 %v2717_v62, %v2750_v14 }
  0x38   :  { %12032 = vst [vmem:[#allocation19_spill] sm:$0xff] %v9379_v27  ;;  %12033 = vst [vmem:[#allocation20_spill] sm:$0xff] %v9383_v29  ;;  %7916 = vmatpush3.bf16.msra.mxu1 %v9354_v57  ;;  %v2756_v41 = vand.u32 4294901760, %v2719_v15  ;;  %2704 = vperm.xlu0 %9171, %v9358_v63   ;;  %v9396_v49 = vsub.f32 %v2718_v4, %v2753_v20  ;;  %v9398_v51 = vpack.c.bf16 %v133_v25, %v130_v21  ;;  %vm9258_vm2 = vmmov 0  }
  0x39   :  { %12034 = vst [vmem:[#allocation21_spill] sm:$0xff] %v9390_v36  ;;  %8489 = vmatpush3.bf16.msra.mxu0 %v9360_v0  ;;  %v9400_v52 = vsub.f32 %v89_v5, %v130_v21  ;;  %v2759_v53 = vand.u32 4294901760, %v2720_v26  ;;  %7917 = vmatprep.subr.bf16.mxu1 %v11842_v1  ;;  %v9404_v54 = vsub.f32 %v90_v6, %v133_v25  ;;  %v136_v56 = vand.u32 4294901760, %v91_v32  ;;  %v2724_v5 = vld [vmem:[#allocation5 + $0x278] sm:$0xff] }
  0x3a   :  { %12035 = vst [vmem:[#allocation22_spill] sm:$0xff] %v9398_v51  ;;  %8490 = vmatprep.subr.bf16.mxu0 %v11842_v1  ;;  %v9406_v55 = vsub.f32 %v2719_v15, %v2756_v41  ;;  %v139_v59 = vand.u32 4294901760, %v92_v33  ;;  %v2762_v62 = vand.u32 4294901760, %v2721_v42  ;;  %v2765_v4 = vand.u32 4294901760, %v2722_v47 }
  0x3b   :  { %v9408_v60 = vpack.c.bf16 %v2759_v53, %v2756_v41  ;;  %v9410_v61 = vsub.f32 %v2720_v26, %v2759_v53  ;;  %v9415_v12 = vsub.f32 %v91_v32, %v136_v56  ;;  %v11825_v20 = vand.u32 4294901760, %v9318_v17 }
  0x3c   :  { %7919 = vmatpush3.bf16.msra.mxu1 %v9368_v7  ;;  %v9413_v11 = vpack.c.bf16 %v139_v59, %v136_v56  ;;  %v9417_v6 = vsub.f32 %v92_v33, %v139_v59  ;;  %v9421_v13 = vpack.c.bf16 %v2765_v4, %v2762_v62  ;;  %v9423_v14 = vsub.f32 %v2721_v42, %v2762_v62 }
  0x3d   :  { %12036 = vst [vmem:[#allocation23_spill] sm:$0xff] %v9408_v60  ;;  %8492 = vmatpush3.bf16.msra.mxu0 %v9379_v27  ;;  %7920 = vmatprep.subr.bf16.mxu1 %v11842_v1  ;;  %v9425_v15 = vsub.f32 %v2722_v47, %v2765_v4  ;;  %v11826_v21 = vmov 0.0   ;;  %v11829_v25 = vand.u32 4294901760, %v9320_v18  ;;  %v2768_v26 = vand.u32 4294901760, %v2723_v10 }
  0x3e   :  { %12037 = vst [vmem:[#allocation24_spill] sm:$0xff] %v9413_v11  ;;  %12038 = vst [vmem:[#allocation25_spill] sm:$0xff] %v9421_v13  ;;  %8493 = vmatprep.subr.bf16.mxu0 %v11842_v1  ;;  %6257 = vmatprep.mubr.msk.f32.mxu1 %vm9258_vm2, %v11826_v21  ;;  %v2771_v32 = vand.u32 4294901760, %v2724_v5  ;;  %v11828_v33 = vand.u32 4294901760, %v9324_v23  ;;  %v188_v34 = vsub.f32 %v9318_v17, %v11825_v20  ;;  %v11832_v41 = vand.u32 4294901760, %v9326_v24 }
  0x3f   :  { %7097 = vmatprep.mubr.msk.f32.mxu0 %vm9258_vm2, %v11826_v21  ;;  %v11835_v42 = vand.u32 4294901760, %v9330_v31  ;;  %v11836_v47 = vand.u32 4294901760, %v9334_v38  ;;  %v195_v53 = vsub.f32 %v9320_v18, %v11829_v25  ;;  %v9447_v59 = vsub.f32 %v2723_v10, %v2768_v26 }
  0x40   :  { %7922 = vmatpush3.bf16.msra.mxu1 %v9383_v29  ;;  %v9445_v56 = vpack.c.bf16 %v2771_v32, %v2768_v26  ;;  %v9449_v62 = vsub.f32 %v2724_v5, %v2771_v32  ;;  %v189_v4 = vand.u32 4294901760, %v188_v34  ;;  %v202_v20 = vsub.f32 %v9324_v23, %v11828_v33 }
  0x41   :  { %8495 = vmatpush3.bf16.msra.mxu0 %v9390_v36  ;;  %7923 = vmatprep.subr.bf16.mxu1 %v11842_v1  ;;  %v209_v21 = vsub.f32 %v9326_v24, %v11832_v41  ;;  %v2820_v10 = vsub.f32 %v9330_v31, %v11835_v42  ;;  %v196_v5 = vand.u32 4294901760, %v195_v53  ;;  %v2827_v26 = vsub.f32 %v9334_v38, %v11836_v47 }
  0x42   :  { %12039 = vst [vmem:[#allocation26_spill] sm:$0xff] %v9445_v56  ;;  %8496 = vmatprep.subr.bf16.mxu0 %v11842_v1  ;;  %v11838_v32 = vand.u32 4294901760, %v9338_v43  ;;  %v11837_v34 = vand.u32 4294901760, %v9340_v44  ;;  %v203_v33 = vand.u32 4294901760, %v202_v20  ;;  %v11841_v41 = vand.u32 4294901760, %v9344_v46 }
  0x43   :  { %v210_v25 = vand.u32 4294901760, %v209_v21  ;;  %v2821_v36 = vand.u32 4294901760, %v2820_v10  ;;  %v9470_v29 = vpack.c.bf16 %v196_v5, %v189_v4  ;;  %v2828_v42 = vand.u32 4294901760, %v2827_v26 }
  0x44   :  { %7925 = vmatpush3.bf16.msra.mxu1 %v9398_v51  ;;  %v216_v53 = vsub.f32 %v9338_v43, %v11838_v32  ;;  %v223_v47 = vsub.f32 %v9340_v44, %v11837_v34  ;;  %v2834_v21 = vsub.f32 %v9344_v46, %v11841_v41  ;;  %v11845_v4 = vand.u32 4294901760, %v9348_v48 }
  0x45   :  { %8498 = vmatpush3.bf16.msra.mxu0 %v9408_v60  ;;  %7926 = vmatprep.subr.bf16.mxu1 %v11842_v1  ;;  %v9480_v20 = vpack.c.bf16 %v210_v25, %v203_v33  ;;  %v11844_v10 = vand.u32 4294901760, %v9350_v50  ;;  %v9488_v5 = vpack.c.bf16 %v2828_v42, %v2821_v36  ;;  %v11846_v32 = vand.u32 4294901760, %v9356_v58 }
  0x46   :  { %8499 = vmatprep.subr.bf16.mxu0 %v11842_v1  ;;  %v217_v26 = vand.u32 4294901760, %v216_v53  ;;  %v224_v34 = vand.u32 4294901760, %v223_v47  ;;  %v2835_v60 = vand.u32 4294901760, %v2834_v21  ;;  %v2841_v25 = vsub.f32 %v9348_v48, %v11845_v4 }
  0x47   :  { %v230_v33 = vsub.f32 %v9350_v50, %v11844_v10  ;;  %v11851_v41 = vand.u32 4294901760, %v9362_v2  ;;  %v237_v36 = vsub.f32 %v9356_v58, %v11846_v32  ;;  %v11858_v42 = vand.u32 4294901760, %v9364_v3 }
  0x48   :  { %7928 = vmatpush3.bf16.msra.mxu1 %v9413_v11  ;;  %v9499_v1 = vpack.c.bf16 %v224_v34, %v217_v26  ;;  %v11859_v47 = vand.u32 4294901760, %v9370_v8  ;;  %v12040_v53 = vmov 0.0|0.0   ;;  %v2842_v21 = vand.u32 4294901760, %v2841_v25 }
  0x49   :  { %8501 = vmatpush3.bf16.msra.mxu0 %v9421_v13  ;;  %7929 = vmatprep.subr.bf16.mxu1 %v12040_v53  ;;  %v231_v10 = vand.u32 4294901760, %v230_v33  ;;  %v2848_v4 = vsub.f32 %v9362_v2, %v11851_v41  ;;  %v11862_v34 = vand.u32 4294901760, %v9372_v9  ;;  %v238_v26 = vand.u32 4294901760, %v237_v36 }
  0x4a   :  { %8502 = vmatprep.subr.bf16.mxu0 %v12040_v53  ;;  %v2855_v32 = vsub.f32 %v9364_v3, %v11858_v42  ;;  %v244_v13 = vsub.f32 %v9370_v8, %v11859_v47  ;;  %v11860_v25 = vand.u32 4294901760, %v9377_v19  ;;  %v9520_v33 = vpack.c.bf16 %v2842_v21, %v2835_v60 }
  0x4b   :  { %v2849_v11 = vand.u32 4294901760, %v2848_v4  ;;  %v251_v41 = vsub.f32 %v9372_v9, %v11862_v34  ;;  %v11861_v51 = vand.u32 4294901760, %v9381_v28  ;;  %v9526_v36 = vpack.c.bf16 %v238_v26, %v231_v10 }
  0x4c   :  { %v2856_v27 = vand.u32 4294901760, %v2855_v32  ;;  %v245_v7 = vand.u32 4294901760, %v244_v13  ;;  %v2862_v42 = vsub.f32 %v9377_v19, %v11860_v25  ;;  %v11863_v4 = vand.u32 4294901760, %v9385_v30 }
  0x4d   :  { %8504 = vmatpush3.bf16.msra.mxu0 %v9445_v56  ;;  %v252_v47 = vand.u32 4294901760, %v251_v41  ;;  %v2869_v60 = vsub.f32 %v9381_v28, %v11861_v51  ;;  %v11868_v21 = vand.u32 4294901760, %v9388_v35  ;;  %v11869_v32 = vand.u32 4294901760, %v9392_v40 }
  0x4e   :  { %8505 = vmatprep.subr.bf16.mxu0 %v12040_v53  ;;  %v9538_v10 = vpack.c.bf16 %v2856_v27, %v2849_v11  ;;  %v2863_v13 = vand.u32 4294901760, %v2862_v42  ;;  %v11870_v26 = vand.u32 4294901760, %v9396_v49  ;;  %v258_v51 = vsub.f32 %v9385_v30, %v11863_v4 }
  0x4f   :  { %v9542_v25 = vpack.c.bf16 %v252_v47, %v245_v7  ;;  %v2870_v41 = vand.u32 4294901760, %v2869_v60  ;;  %v265_v34 = vsub.f32 %v9388_v35, %v11868_v21  ;;  %v2876_v27 = vsub.f32 %v9392_v40, %v11869_v32 }
  0x50   :  { %v2883_v11 = vsub.f32 %v9396_v49, %v11870_v26  ;;  %v11873_v7 = vand.u32 4294901760, %v9400_v52  ;;  %v11877_v42 = vand.u32 4294901760, %v9404_v54  ;;  %v259_v60 = vand.u32 4294901760, %v258_v51 }
  0x51   :  { %v9558_v47 = vpack.c.bf16 %v2870_v41, %v2863_v13  ;;  %v266_v4 = vand.u32 4294901760, %v265_v34  ;;  %v11876_v56 = vand.u32 4294901760, %v9406_v55  ;;  %v2877_v0 = vand.u32 4294901760, %v2876_v27 }
  0x52   :  { %v2884_v21 = vand.u32 4294901760, %v2883_v11  ;;  %v272_v32 = vsub.f32 %v9400_v52, %v11873_v7  ;;  %v279_v26 = vsub.f32 %v9404_v54, %v11877_v42  ;;  %v11878_v51 = vand.u32 4294901760, %v9410_v61 }
  0x53   :  { %v9567_v57 = vpack.c.bf16 %v266_v4, %v259_v60  ;;  %v2890_v13 = vsub.f32 %v9406_v55, %v11876_v56  ;;  %v11879_v34 = vand.u32 4294901760, %v9415_v12  ;;  %v11882_v7 = vand.u32 4294901760, %v9417_v6 }
  0x54   :  { %v9574_v41 = vpack.c.bf16 %v2884_v21, %v2877_v0  ;;  %v273_v27 = vand.u32 4294901760, %v272_v32  ;;  %v280_v11 = vand.u32 4294901760, %v279_v26  ;;  %v2897_v4 = vsub.f32 %v9410_v61, %v11878_v51 }
  0x55   :  { %v2891_v45 = vand.u32 4294901760, %v2890_v13  ;;  %v286_v60 = vsub.f32 %v9415_v12, %v11879_v34  ;;  %v11885_v56 = vand.u32 4294901760, %v9423_v14  ;;  %v293_v0 = vsub.f32 %v9417_v6, %v11882_v7 }
  0x56   :  { %v9584_v42 = vpack.c.bf16 %v280_v11, %v273_v27  ;;  %v11886_v21 = vand.u32 4294901760, %v9425_v15  ;;  %v2898_v32 = vand.u32 4294901760, %v2897_v4  ;;  %v11890_v27 = vand.u32 4294901760, %v9447_v59 }
  0x57   :  { %v287_v26 = vand.u32 4294901760, %v286_v60  ;;  %v2904_v13 = vsub.f32 %v9423_v14, %v11885_v56  ;;  %v294_v51 = vand.u32 4294901760, %v293_v0  ;;  %v11889_v11 = vand.u32 4294901760, %v9449_v62 }
  0x58   :  { %v2911_v34 = vsub.f32 %v9425_v15, %v11886_v21  ;;  %v9598_v39 = vpack.c.bf16 %v2898_v32, %v2891_v45  ;;  %v2918_v60 = vsub.f32 %v9447_v59, %v11890_v27 }
  0x59   :  { %v2905_v7 = vand.u32 4294901760, %v2904_v13  ;;  %v9600_v37 = vpack.c.bf16 %v294_v51, %v287_v26  ;;  %v2925_v0 = vsub.f32 %v9449_v62, %v11889_v11  ;;  %v38_v11 = vlaneseq }
  0x5a   :  { %v2912_v4 = vand.u32 4294901760, %v2911_v34  ;;  %v2919_v21 = vand.u32 4294901760, %v2918_v60 }
  0x5b   :  { %v2926_v22 = vand.u32 4294901760, %v2925_v0  ;;  %v9260_v0 = vmov 0   ;;  %v9646_v13 = vand.u32 127, %v38_v11 }
  0x5c   :  { %v9608_v56 = vpack.c.bf16 %v2912_v4, %v2905_v7  ;;  %9172 = vset.pattern.permute.xlu1 %v9260_v0  ;;  %v9261_v4 = vmov 5  }
  0x5d   :  { %v9612_v32 = vpack.c.bf16 %v2926_v22, %v2919_v21  ;;  %50 = vperm.xlu1 %9172, %v9358_v63  }
  0x61   :  { %9173 = vset.pattern.permute.xlu1 %v9261_v4  ;;  %v12041_v4 = vmov 0.0  }
  0x62   :  { %3368 = vperm.xlu1 %9173, %v9358_v63  }
  0xb2   :  { %v9648_v27 = vpop.permute.xlu0 %72 }
  0xb3   :  { %vm74_vm3 = vcmp.eq.s32.totalorder %v9646_v13, %v9648_v27 }
  0xb4   :  { %v5378_v22 = vsel %vm74_vm3, 1.0, %v12041_v4 }
  0xb5   :  { %v9656_v60 = vsub.f32 %v5378_v22, %v5378_v22 }
  0xb7   :  { %v9658_v7 = vpop.permute.xlu0 %2704  ;;  %v176_v0 = vand.u32 4294901760, %v9656_v60 }
  0xb8   :  { %vm2706_vm4 = vcmp.eq.s32.totalorder %v9646_v13, %v9658_v7 }
  0xb9   :  { %v5393_v11 = vsel %vm2706_vm4, 1.0, %v12041_v4  ;;  %v177_v21 = vsub.f32 %v9656_v60, %v176_v0 }
  0xba   :  { %v9670_v26 = vsub.f32 %v5393_v11, %v5393_v11  ;;  %v12060_v11 = vld [vmem:[#allocation13_spill] sm:$0xff] }
  0xbb   :  { %v178_v22 = vand.u32 4294901760, %v177_v21  ;;  %v12059_v21 = vld [vmem:[#allocation12_spill] sm:$0xff] }
  0xbc   :  { %v2808_v34 = vand.u32 4294901760, %v9670_v26 }
  0xbd   :  { %6258 = vmatmul.mubr.f32.vlgmr.msra.gmra.mrb[0].mxu1 %v178_v22  ;;  %v12061_v22 = vld [vmem:[#allocation14_spill] sm:$0xff] }
  0xbe   :  { %7931 = vmatpush3.bf16.msra.mxu1 %v9470_v29  ;;  %v2809_v51 = vsub.f32 %v9670_v26, %v2808_v34  ;;  %6292 = vmatprep.mubr.msk.f32.mxu1 %vm9258_vm2, %v12041_v4  ;;  %v12045_v29 = vpack.c.bf16 %v9340_v44, %v9338_v43 }
  0xbf   :  { %7932 = vmatprep.subr.bf16.mxu1 %v12040_v53 }
  0xc0   :  { %v2810_v45 = vand.u32 4294901760, %v2809_v51  ;;  %v12058_v51 = vld [vmem:[#allocation11_spill] sm:$0xff] }
  0xc2   :  { %7934 = vmatpush3.bf16.msra.mxu1 %v9480_v20  ;;  %7098 = vmatmul.mubr.f32.vlgmr.msra.gmra.mrb[0].mxu0 %v2810_v45  ;;  %v12047_v20 = vpack.c.bf16 %v9356_v58, %v9350_v50  ;;  %v12056_v45 = vpack.c.bf16 %v9425_v15, %v9423_v14 }
  0xc3   :  { %8507 = vmatpush3.bf16.msra.mxu0 %v9488_v5  ;;  %7935 = vmatprep.subr.bf16.mxu1 %v12040_v53  ;;  %v12048_v5 = vpack.c.bf16 %v9364_v3, %v9362_v2 }
  0xc4   :  { %8508 = vmatprep.subr.bf16.mxu0 %v12040_v53  ;;  %7132 = vmatprep.mubr.msk.f32.mxu0 %vm9258_vm2, %v12041_v4 }
  0xc6   :  { %7937 = vmatpush3.bf16.msra.mxu1 %v9499_v1  ;;  %v11891_v1 = vmov 1.0  }
  0xc7   :  { %8510 = vmatpush3.bf16.msra.mxu0 %v9520_v33  ;;  %7938 = vmatprep.subr.bf16.mxu1 %v12040_v53  ;;  %v12050_v33 = vpack.c.bf16 %v9381_v28, %v9377_v19 }
  0xc8   :  { %8511 = vmatprep.subr.bf16.mxu0 %v12040_v53 }
  0xca   :  { %7940 = vmatpush3.bf16.msra.mxu1 %v9526_v36  ;;  %v12051_v36 = vpack.c.bf16 %v9388_v35, %v9385_v30 }
  0xcb   :  { %8513 = vmatpush3.bf16.msra.mxu0 %v9538_v10  ;;  %7941 = vmatprep.subr.bf16.mxu1 %v12040_v53  ;;  %v12052_v10 = vpack.c.bf16 %v9396_v49, %v9392_v40 }
  0xcc   :  { %8514 = vmatprep.subr.bf16.mxu0 %v12040_v53 }
  0xce   :  { %7943 = vmatpush3.bf16.msra.mxu1 %v9542_v25  ;;  %v12049_v25 = vpack.c.bf16 %v9372_v9, %v9370_v8 }
  0xcf   :  { %8516 = vmatpush3.bf16.msra.mxu0 %v9558_v47  ;;  %7944 = vmatprep.subr.bf16.mxu1 %v12040_v53  ;;  %v12054_v47 = vpack.c.bf16 %v9410_v61, %v9406_v55 }
  0xd0   :  { %8517 = vmatprep.subr.bf16.mxu0 %v12040_v53 }
  0xd2   :  { %7946 = vmatpush3.bf16.msra.mxu1 %v9567_v57  ;;  %v12044_v57 = vpack.c.bf16 %v9334_v38, %v9330_v31 }
  0xd3   :  { %8519 = vmatpush3.bf16.msra.mxu0 %v9574_v41  ;;  %7947 = vmatprep.subr.bf16.mxu1 %v12040_v53  ;;  %v12055_v41 = vpack.c.bf16 %v9417_v6, %v9415_v12 }
  0xd4   :  { %8520 = vmatprep.subr.bf16.mxu0 %v12040_v53 }
  0xd6   :  { %7949 = vmatpush3.bf16.msra.mxu1 %v9584_v42  ;;  %v12053_v42 = vpack.c.bf16 %v9404_v54, %v9400_v52 }
  0xd7   :  { %8522 = vmatpush3.bf16.msra.mxu0 %v9598_v39  ;;  %7950 = vmatprep.subr.bf16.mxu1 %v12040_v53  ;;  %v12042_v39 = vpack.c.bf16 %v9320_v18, %v9318_v17 }
  0xd8   :  { %8523 = vmatprep.subr.bf16.mxu0 %v12040_v53 }
  0xda   :  { %7952 = vmatpush3.bf16.msra.mxu1 %v9600_v37  ;;  %v12043_v37 = vpack.c.bf16 %v9326_v24, %v9324_v23 }
  0xdb   :  { %8525 = vmatpush3.bf16.msra.mxu0 %v9608_v56  ;;  %7953 = vmatprep.subr.bf16.mxu1 %v12040_v53  ;;  %v12046_v56 = vpack.c.bf16 %v9348_v48, %v9344_v46 }
  0xdc   :  { %8526 = vmatprep.subr.bf16.mxu0 %v12040_v53 }
  0xdd   :  { %6293 = vmatmul.mubr.msk.f32.vlgmr.msra.gmra.mrb[0].mxu1 %vm74_vm3, %v11891_v1 }
  0xde   :  { %7955 = vmatpush3.bf16.msra.mxu1 %v12042_v39  ;;  %6327 = vmatprep.mubr.msk.f32.mxu1 %vm9258_vm2, %v12041_v4  ;;  %v12062_v39 = vld [vmem:[#allocation15_spill] sm:$0xff] }
  0xdf   :  { %8528 = vmatpush3.bf16.msra.mxu0 %v9612_v32  ;;  %7956 = vmatprep.subr.bf16.mxu1 %v12040_v53  ;;  %v12057_v32 = vpack.c.bf16 %v9449_v62, %v9447_v59 }
  0xe0   :  { %8529 = vmatprep.subr.bf16.mxu0 %v12040_v53 }
  0xe2   :  { %7958 = vmatpush3.bf16.msra.mxu1 %v12043_v37  ;;  %7133 = vmatmul.mubr.msk.f32.vlgmr.msra.gmra.mrb[0].mxu0 %vm2706_vm4, %v11891_v1  ;;  %v12063_v37 = vld [vmem:[#allocation17_spill] sm:$0xff] }
  0xe3   :  { %8531 = vmatpush3.bf16.msra.mxu0 %v12044_v57  ;;  %7959 = vmatprep.subr.bf16.mxu1 %v12040_v53  ;;  %v12064_v57 = vld [vmem:[#allocation18_spill] sm:$0xff] }
  0xe4   :  { %8532 = vmatprep.subr.bf16.mxu0 %v12040_v53  ;;  %7167 = vmatprep.mubr.msk.f32.mxu0 %vm9258_vm2, %v12041_v4 }
  0xe6   :  { %7961 = vmatpush3.bf16.msra.mxu1 %v12045_v29  ;;  %v12065_v29 = vld [vmem:[#allocation19_spill] sm:$0xff] }
  0xe7   :  { %8534 = vmatpush3.bf16.msra.mxu0 %v12046_v56  ;;  %7962 = vmatprep.subr.bf16.mxu1 %v12040_v53  ;;  %v12066_v56 = vld [vmem:[#allocation20_spill] sm:$0xff] }
  0xe8   :  { %8535 = vmatprep.subr.bf16.mxu0 %v12040_v53 }
  0xea   :  { %7964 = vmatpush3.bf16.msra.mxu1 %v12047_v20  ;;  %v12067_v20 = vld [vmem:[#allocation21_spill] sm:$0xff] }
  0xeb   :  { %8537 = vmatpush3.bf16.msra.mxu0 %v12048_v5  ;;  %7965 = vmatprep.subr.bf16.mxu1 %v12040_v53  ;;  %v12068_v5 = vld [vmem:[#allocation22_spill] sm:$0xff] }
  0xec   :  { %8538 = vmatprep.subr.bf16.mxu0 %v12040_v53 }
  0xee   :  { %7967 = vmatpush3.bf16.msra.mxu1 %v12049_v25  ;;  %v12069_v25 = vld [vmem:[#allocation23_spill] sm:$0xff] }
  0xef   :  { %8540 = vmatpush3.bf16.msra.mxu0 %v12050_v33  ;;  %7968 = vmatprep.subr.bf16.mxu1 %v12040_v53  ;;  %v12070_v33 = vld [vmem:[#allocation24_spill] sm:$0xff] }
  0xf0   :  { %8541 = vmatprep.subr.bf16.mxu0 %v12040_v53 }
  0xf2   :  { %7970 = vmatpush3.bf16.msra.mxu1 %v12051_v36  ;;  %v12071_v36 = vand.u32 4294901760, %v9318_v17  ;;  %v12076_v17 = vld [vmem:[#allocation26_spill] sm:$0xff] }
  0xf3   :  { %8543 = vmatpush3.bf16.msra.mxu0 %v12052_v10  ;;  %7971 = vmatprep.subr.bf16.mxu1 %v12040_v53  ;;  %v12072_v10 = vand.u32 4294901760, %v9320_v18  ;;  %v12077_v18 = vand.u32 4294901760, %v9330_v31  ;;  %v12082_v31 = vand.u32 4294901760, %v9348_v48 }
  0xf4   :  { %8544 = vmatprep.subr.bf16.mxu0 %v12040_v53 }
  0xf6   :  { %7973 = vmatpush3.bf16.msra.mxu1 %v12053_v42  ;;  %v8002_v42 = vpack.c.bf16 %v12072_v10, %v12071_v36  ;;  %v12078_v36 = vand.u32 4294901760, %v9334_v38 }
  0xf7   :  { %8546 = vmatpush3.bf16.msra.mxu0 %v12054_v47  ;;  %7974 = vmatprep.subr.bf16.mxu1 %v12040_v53  ;;  %v12073_v47 = vld [vmem:[#allocation25_spill] sm:$0xff] }
  0xf8   :  { %8547 = vmatprep.subr.bf16.mxu0 %v12040_v53  ;;  %v8578_v10 = vpack.c.bf16 %v12078_v36, %v12077_v18 }
  0xfa   :  { %7976 = vmatpush3.bf16.msra.mxu1 %v12055_v41  ;;  %v12074_v41 = vand.u32 4294901760, %v9324_v23  ;;  %v12079_v23 = vand.u32 4294901760, %v9338_v43  ;;  %v12084_v43 = vand.u32 4294901760, %v9356_v58  ;;  %v12090_v58 = vand.u32 4294901760, %v9381_v28 }
  0xfb   :  { %8549 = vmatpush3.bf16.msra.mxu0 %v12056_v45  ;;  %7977 = vmatprep.subr.bf16.mxu1 %v12040_v53  ;;  %v12075_v45 = vand.u32 4294901760, %v9326_v24  ;;  %v12080_v24 = vand.u32 4294901760, %v9340_v44  ;;  %v12096_v28 = vand.u32 4294901760, %v9404_v54  ;;  %v12100_v54 = vand.u32 4294901760, %v9417_v6 }
  0xfc   :  { %8550 = vmatprep.subr.bf16.mxu0 %v12040_v53  ;;  %v12104_v6 = vand.u32 4294901760, %v9449_v62  ;;  %v57_v62 = vld [vmem:[#allocation5 + $0x10] sm:$0xff] }
  0xfd   :  { %6328 = vmatmul.mubr.f32.vlgmr.msra.gmra.mrb[0].mxu1 %v9656_v60  ;;  %v8008_v60 = vpack.c.bf16 %v12080_v24, %v12079_v23 }
  0xfe   :  { %7979 = vmatpush3.bf16.msra.mxu1 %v9316_v16  ;;  %6362 = vmatprep.mubr.msk.f32.mxu1 %vm9258_vm2, %v12041_v4 }
  0xff   :  { %8552 = vmatpush3.bf16.msra.mxu0 %v12057_v32  ;;  %7980 = vmatprep.subr.bf16.mxu1 %v12040_v53  ;;  %v8005_v32 = vpack.c.bf16 %v12075_v45, %v12074_v41  ;;  %v12088_v41 = vand.u32 4294901760, %v9372_v9  ;;  %v12094_v9 = vand.u32 4294901760, %v9396_v49  ;;  %v9264_v49 = vmov 6  }
 0x100   :  { %8553 = vmatprep.subr.bf16.mxu0 %v12040_v53  ;;  %9175 = vset.pattern.permute.xlu0 %v9264_v49 }
 0x101   :  { %4032 = vperm.xlu0 %9175, %v9358_v63  }
 0x102   :  { %7982 = vmatpush3.bf16.msra.mxu1 %v12058_v51  ;;  %7168 = vmatmul.mubr.f32.vlgmr.msra.gmra.mrb[0].mxu0 %v9670_v26  ;;  %v12085_v26 = vand.u32 4294901760, %v9362_v2  ;;  %v12091_v2 = vand.u32 4294901760, %v9385_v30  ;;  %v12097_v30 = vand.u32 4294901760, %v9406_v55  ;;  %v12101_v55 = vand.u32 4294901760, %v9423_v14  ;;  %v56_v14 = vld [vmem:[#allocation5 + $0x8] sm:$0xff] }
 0x103   :  { %8555 = vmatpush3.bf16.msra.mxu0 %v12059_v21  ;;  %7983 = vmatprep.subr.bf16.mxu1 %v12040_v53 }
 0x104   :  { %8556 = vmatprep.subr.bf16.mxu0 %v12040_v53  ;;  %7202 = vmatprep.mubr.msk.f32.mxu0 %vm9258_vm2, %v12041_v4 }
 0x106   :  { %7985 = vmatpush3.bf16.msra.mxu1 %v12060_v11 }
 0x107   :  { %8558 = vmatpush3.bf16.msra.mxu0 %v12061_v22  ;;  %7986 = vmatprep.subr.bf16.mxu1 %v12040_v53 }
 0x108   :  { %8559 = vmatprep.subr.bf16.mxu0 %v12040_v53 }
 0x10a   :  { %7988 = vmatpush3.bf16.msra.mxu1 %v12062_v39 }
 0x10b   :  { %8561 = vmatpush3.bf16.msra.mxu0 %v12063_v37  ;;  %7989 = vmatprep.subr.bf16.mxu1 %v12040_v53 }
 0x10c   :  { %8562 = vmatprep.subr.bf16.mxu0 %v12040_v53 }
 0x10e   :  { %7991 = vmatpush3.bf16.msra.mxu1 %v12064_v57 }
 0x10f   :  { %8564 = vmatpush3.bf16.msra.mxu0 %v12065_v29  ;;  %7992 = vmatprep.subr.bf16.mxu1 %v12040_v53 }
 0x110   :  { %8565 = vmatprep.subr.bf16.mxu0 %v12040_v53 }
 0x112   :  { %7994 = vmatpush3.bf16.msra.mxu1 %v12066_v56 }
 0x113   :  { %8567 = vmatpush3.bf16.msra.mxu0 %v12067_v20  ;;  %7995 = vmatprep.subr.bf16.mxu1 %v12040_v53 }
 0x114   :  { %8568 = vmatprep.subr.bf16.mxu0 %v12040_v53 }
 0x116   :  { %7997 = vmatpush3.bf16.msra.mxu1 %v12068_v5 }
 0x117   :  { %8570 = vmatpush3.bf16.msra.mxu0 %v12069_v25  ;;  %7998 = vmatprep.subr.bf16.mxu1 %v12040_v53 }
 0x118   :  { %8571 = vmatprep.subr.bf16.mxu0 %v12040_v53 }
 0x11a   :  { %8000 = vmatpush3.bf16.msra.mxu1 %v12070_v33 }
 0x11b   :  { %8573 = vmatpush3.bf16.msra.mxu0 %v12073_v47  ;;  %8001 = vmatprep.subr.bf16.mxu1 %v12040_v53 }
 0x11c   :  { %8574 = vmatprep.subr.bf16.mxu0 %v12040_v53 }
 0x11d   :  { %6363 = vmatmul.mubr.f32.vlgmr.msra.gmra.mrb[0].mxu1 %v176_v0  ;;  %v12081_v0 = vand.u32 4294901760, %v9344_v46  ;;  %v12086_v46 = vand.u32 4294901760, %v9364_v3  ;;  %v12092_v3 = vand.u32 4294901760, %v9388_v35  ;;  %v12098_v35 = vand.u32 4294901760, %v9410_v61 }
 0x11e   :  { %8003 = vmatpush3.bf16.msra.mxu1 %v8002_v42  ;;  %6397 = vmatprep.mubr.msk.f32.mxu1 %vm9258_vm2, %v12041_v4  ;;  %v12087_v42 = vand.u32 4294901760, %v9370_v8  ;;  %v12093_v8 = vand.u32 4294901760, %v9392_v40  ;;  %v9263_v40 = vmov 2   ;;  %v12102_v61 = vand.u32 4294901760, %v9425_v15 }
 0x11f   :  { %8576 = vmatpush3.bf16.msra.mxu0 %v12076_v17  ;;  %8004 = vmatprep.subr.bf16.mxu1 %v12040_v53  ;;  %v8581_v38 = vpack.c.bf16 %v12082_v31, %v12081_v0  ;;  %v8584_v48 = vpack.c.bf16 %v12086_v46, %v12085_v26  ;;  %v8017_v18 = vpack.c.bf16 %v12092_v3, %v12091_v2  ;;  %v3377_v26 = vld [vmem:[#allocation5 + $0x2a0] sm:$0xff]  ;;  %v3378_v46 = vld [vmem:[#allocation5 + $0x2a8] sm:$0xff] }
 0x120   :  { %8577 = vmatprep.subr.bf16.mxu0 %v12040_v53  ;;  %v8014_v45 = vpack.c.bf16 %v12088_v41, %v12087_v42  ;;  %v8590_v36 = vpack.c.bf16 %v12094_v9, %v12093_v8  ;;  %v8593_v23 = vpack.c.bf16 %v12098_v35, %v12097_v30  ;;  %9174 = vset.pattern.permute.xlu1 %v9263_v40  ;;  %v3402_v3 = vand.u32 4294901760, %v3377_v26  ;;  %v64_v8 = vld [vmem:[#allocation5 + $0x48] sm:$0xff]  ;;  %v3379_v9 = vld [vmem:[#allocation5 + $0x2b0] sm:$0xff] }
 0x121   :  { %1376 = vperm.xlu1 %9174, %v9358_v63   ;;  %v762_v40 = vand.u32 4294901760, %v64_v8  ;;  %v3408_v49 = vand.u32 4294901760, %v3379_v9 }
 0x122   :  { %8006 = vmatpush3.bf16.msra.mxu1 %v8005_v32  ;;  %7203 = vmatmul.mubr.f32.vlgmr.msra.gmra.mrb[0].mxu0 %v2808_v34  ;;  %v12083_v34 = vand.u32 4294901760, %v9350_v50  ;;  %v12089_v50 = vand.u32 4294901760, %v9377_v19  ;;  %v12095_v19 = vand.u32 4294901760, %v9400_v52  ;;  %v12099_v52 = vand.u32 4294901760, %v9415_v12 }
 0x123   :  { %8579 = vmatpush3.bf16.msra.mxu0 %v8578_v10  ;;  %8007 = vmatprep.subr.bf16.mxu1 %v12040_v53  ;;  %v12103_v12 = vand.u32 4294901760, %v9447_v59  ;;  %v738_v59 = vand.u32 4294901760, %v56_v14 }
 0x124   :  { %8580 = vmatprep.subr.bf16.mxu0 %v12040_v53  ;;  %7237 = vmatprep.mubr.msk.f32.mxu0 %vm9258_vm2, %v12041_v4  ;;  %v8011_v44 = vpack.c.bf16 %v12084_v43, %v12083_v34  ;;  %v8587_v32 = vpack.c.bf16 %v12090_v58, %v12089_v50  ;;  %v8020_v10 = vpack.c.bf16 %v12096_v28, %v12095_v19  ;;  %v62_v34 = vld [vmem:[#allocation5 + $0x38] sm:$0xff]  ;;  %v63_v58 = vld [vmem:[#allocation5 + $0x40] sm:$0xff] }
 0x125   :  { %v8023_v24 = vpack.c.bf16 %v12100_v54, %v12099_v52  ;;  %v8599_v0 = vpack.c.bf16 %v12104_v6, %v12103_v12  ;;  %v756_v41 = vand.u32 4294901760, %v62_v34  ;;  %v9978_v50 = vsub.f32 %v56_v14, %v738_v59  ;;  %v65_v54 = vld [vmem:[#allocation5 + $0x50] sm:$0xff]  ;;  %v3381_v6 = vld [vmem:[#allocation5 + $0x2c0] sm:$0xff] }
 0x126   :  { %8009 = vmatpush3.bf16.msra.mxu1 %v8008_v60  ;;  %v8596_v60 = vpack.c.bf16 %v12102_v61, %v12101_v55 }
 0x127   :  { %8582 = vmatpush3.bf16.msra.mxu0 %v8581_v38  ;;  %8010 = vmatprep.subr.bf16.mxu1 %v12040_v53  ;;  %v61_v38 = vld [vmem:[#allocation5 + $0x30] sm:$0xff]  ;;  %v10023_v14 = vsub.f32 %v62_v34, %v756_v41 }
 0x128   :  { %8583 = vmatprep.subr.bf16.mxu0 %v12040_v53  ;;  %v753_v42 = vand.u32 4294901760, %v61_v38 }
 0x12a   :  { %8012 = vmatpush3.bf16.msra.mxu1 %v8011_v44  ;;  %v10006_v35 = vpack.c.bf16 %v756_v41, %v753_v42 }
 0x12b   :  { %8585 = vmatpush3.bf16.msra.mxu0 %v8584_v48  ;;  %8013 = vmatprep.subr.bf16.mxu1 %v12040_v53  ;;  %v9974_v48 = vpop.permute.xlu1 %50 }
 0x12c   :  { %8586 = vmatprep.subr.bf16.mxu0 %v12040_v53  ;;  %12108 = vst [vmem:[#allocation14_spill] sm:$0xff] %v10006_v35  ;;  %vm52_vm5 = vcmp.eq.s32.totalorder %v9646_v13, %v9974_v48  ;;  %v1388_v48 = vld [vmem:[#allocation5 + $0x138] sm:$0xff] }
 0x12e   :  { %8015 = vmatpush3.bf16.msra.mxu1 %v8014_v45 }
 0x12f   :  { %8588 = vmatpush3.bf16.msra.mxu0 %v8587_v32  ;;  %8016 = vmatprep.subr.bf16.mxu1 %v12040_v53  ;;  %v10011_v55 = vpop.permute.xlu1 %3368 }
 0x130   :  { %8589 = vmatprep.subr.bf16.mxu0 %v12040_v53  ;;  %vm3370_vm6 = vcmp.eq.s32.totalorder %v9646_v13, %v10011_v55  ;;  %v4043_v55 = vld [vmem:[#allocation5 + $0x330] sm:$0xff] }
 0x131   :  { %v5397_v34 = vsel %vm3370_vm6, 1.0, %v12041_v4 }
 0x132   :  { %8018 = vmatpush3.bf16.msra.mxu1 %v8017_v18  ;;  %v3405_v18 = vand.u32 4294901760, %v3378_v46 }
 0x133   :  { %8591 = vmatpush3.bf16.msra.mxu0 %v8590_v36  ;;  %8019 = vmatprep.subr.bf16.mxu1 %v12040_v53  ;;  %v3380_v36 = vld [vmem:[#allocation5 + $0x2b8] sm:$0xff] }
 0x134   :  { %8592 = vmatprep.subr.bf16.mxu0 %v12040_v53  ;;  %v3411_v52 = vand.u32 4294901760, %v3380_v36  ;;  %v10019_v12 = vpack.c.bf16 %v3405_v18, %v3402_v3 }
 0x136   :  { %8021 = vmatpush3.bf16.msra.mxu1 %v8020_v10  ;;  %12109 = vst [vmem:[#allocation15_spill] sm:$0xff] %v10019_v12 }
 0x137   :  { %8594 = vmatpush3.bf16.msra.mxu0 %v8593_v23  ;;  %8022 = vmatprep.subr.bf16.mxu1 %v12040_v53  ;;  %v759_v23 = vand.u32 4294901760, %v63_v58 }
 0x138   :  { %8595 = vmatprep.subr.bf16.mxu0 %v12040_v53 }
 0x13a   :  { %8024 = vmatpush3.bf16.msra.mxu1 %v8023_v24  ;;  %v66_v24 = vld [vmem:[#allocation5 + $0x58] sm:$0xff] }
 0x13b   :  { %8597 = vmatpush3.bf16.msra.mxu0 %v8596_v60  ;;  %8025 = vmatprep.subr.bf16.mxu1 %v12040_v53 }
 0x13c   :  { %8598 = vmatprep.subr.bf16.mxu0 %v12040_v53 }
 0x13d   :  { %6398 = vmatmul.mubr.msk.f32.vlgmr.msra.gmra.mrb[0].mxu1 %vm74_vm3, %v11891_v1 }
 0x13e   :  { %8027 = vmatpush3.bf16.msra.mxu1 %v9316_v16  ;;  %6432 = vmatprep.mubr.msk.f32.mxu1 %vm9258_vm2, %v12041_v4  ;;  %v55_v16 = vld [vmem:[#allocation5] sm:$0xff] }
 0x13f   :  { %8600 = vmatpush3.bf16.msra.mxu0 %v8599_v0  ;;  %8028 = vmatprep.subr.bf16.mxu1 %v12040_v53  ;;  %v735_v15 = vand.u32 4294901760, %v55_v16  ;;  %v3382_v0 = vld [vmem:[#allocation5 + $0x2c8] sm:$0xff] }
 0x140   :  { %8601 = vmatprep.subr.bf16.mxu0 %v12040_v53 }
 0x141   :  { %v9976_v45 = vsub.f32 %v55_v16, %v735_v15  ;;  %v10021_v16 = vsub.f32 %v61_v38, %v753_v42  ;;  %v10056_v38 = vsub.f32 %v3379_v9, %v3408_v49 }
 0x142   :  { %8030 = vmatpush3.bf16.msra.mxu1 %v12058_v51  ;;  %7238 = vmatmul.mubr.msk.f32.vlgmr.msra.gmra.mrb[0].mxu0 %vm2706_vm4, %v11891_v1  ;;  %v58_v51 = vld [vmem:[#allocation5 + $0x18] sm:$0xff] }
 0x143   :  { %8603 = vmatpush3.bf16.msra.mxu0 %v12059_v21  ;;  %8031 = vmatprep.subr.bf16.mxu1 %v12040_v53  ;;  %v3373_v21 = vld [vmem:[#allocation5 + $0x280] sm:$0xff] }
 0x144   :  { %8604 = vmatprep.subr.bf16.mxu0 %v12040_v53  ;;  %7272 = vmatprep.mubr.msk.f32.mxu0 %vm9258_vm2, %v12041_v4 }
 0x146   :  { %8033 = vmatpush3.bf16.msra.mxu1 %v12060_v11  ;;  %v3374_v11 = vld [vmem:[#allocation5 + $0x288] sm:$0xff] }
 0x147   :  { %8606 = vmatpush3.bf16.msra.mxu0 %v12061_v22  ;;  %8034 = vmatprep.subr.bf16.mxu1 %v12040_v53  ;;  %v9955_v22 = vpack.c.bf16 %v738_v59, %v735_v15  ;;  %v10026_v15 = vsub.f32 %v3377_v26, %v3402_v3  ;;  %v5377_v59 = vsel %vm52_vm5, 1.0, %v12041_v4  ;;  %v10064_v26 = vsub.f32 %v3380_v36, %v3411_v52 }
 0x148   :  { %8607 = vmatprep.subr.bf16.mxu0 %v12040_v53 }
 0x14a   :  { %8036 = vmatpush3.bf16.msra.mxu1 %v12062_v39  ;;  %v741_v39 = vand.u32 4294901760, %v57_v62 }
 0x14b   :  { %8609 = vmatpush3.bf16.msra.mxu0 %v12063_v37  ;;  %8037 = vmatprep.subr.bf16.mxu1 %v12040_v53  ;;  %v744_v37 = vand.u32 4294901760, %v58_v51 }
 0x14c   :  { %8610 = vmatprep.subr.bf16.mxu0 %v12040_v53  ;;  %v9987_v32 = vsub.f32 %v57_v62, %v741_v39  ;;  %v10032_v62 = vsub.f32 %v3378_v46, %v3405_v18 }
 0x14d   :  { %v9993_v19 = vsub.f32 %v58_v51, %v744_v37  ;;  %v765_v51 = vand.u32 4294901760, %v65_v54 }
 0x14e   :  { %8039 = vmatpush3.bf16.msra.mxu1 %v12064_v57  ;;  %v3390_v57 = vand.u32 4294901760, %v3373_v21 }
 0x14f   :  { %8612 = vmatpush3.bf16.msra.mxu0 %v12065_v29  ;;  %8040 = vmatprep.subr.bf16.mxu1 %v12040_v53  ;;  %v3393_v29 = vand.u32 4294901760, %v3374_v11  ;;  %v12119_v9 = vand.u32 4294901760, %v9993_v19 }
 0x150   :  { %8613 = vmatprep.subr.bf16.mxu0 %v12040_v53  ;;  %v9995_v7 = vsub.f32 %v3373_v21, %v3390_v57  ;;  %v768_v21 = vand.u32 4294901760, %v66_v24 }
 0x151   :  { %v9971_v43 = vpack.c.bf16 %v3393_v29, %v3390_v57  ;;  %v9997_v28 = vsub.f32 %v3374_v11, %v3393_v29  ;;  %v10037_v11 = vpack.c.bf16 %v762_v40, %v759_v23  ;;  %v3417_v57 = vand.u32 4294901760, %v3382_v0  ;;  %v67_v29 = vld [vmem:[#allocation5 + $0x60] sm:$0xff] }
 0x152   :  { %8042 = vmatpush3.bf16.msra.mxu1 %v12066_v56  ;;  %v59_v56 = vld [vmem:[#allocation5 + $0x20] sm:$0xff]  ;;  %v10066_v46 = vpack.c.bf16 %v768_v21, %v765_v51  ;;  %v771_v42 = vand.u32 4294901760, %v67_v29  ;;  %v10079_v36 = vsub.f32 %v66_v24, %v768_v21  ;;  %v10128_v21 = vld [vmem:[#allocation5 + $0x2f0] sm:$0xff]  ;;  %v12120_v63 = vand.u32 4294901760, %v9995_v7 }
 0x153   :  { %8615 = vmatpush3.bf16.msra.mxu0 %v12067_v20  ;;  %8043 = vmatprep.subr.bf16.mxu1 %v12040_v53  ;;  %v60_v20 = vld [vmem:[#allocation5 + $0x28] sm:$0xff]  ;;  %12105 = vst [vmem:[#allocation11_spill] sm:$0xff] %v9971_v43  ;;  %12110 = vst [vmem:[#allocation17_spill] sm:$0xff] %v10037_v11 }
 0x154   :  { %8616 = vmatprep.subr.bf16.mxu0 %v12040_v53  ;;  %v750_v31 = vand.u32 4294901760, %v60_v20  ;;  %12112 = vst [vmem:[#allocation19_spill] sm:$0xff] %v10066_v46 }
 0x156   :  { %8045 = vmatpush3.bf16.msra.mxu1 %v12068_v5  ;;  %v3375_v5 = vld [vmem:[#allocation5 + $0x290] sm:$0xff]  ;;  %v10004_v30 = vsub.f32 %v60_v20, %v750_v31  ;;  %v10045_v20 = vsub.f32 %v63_v58, %v759_v23  ;;  %v10070_v58 = vsub.f32 %v65_v54, %v765_v51  ;;  %v10090_v54 = vld [vmem:[#allocation5 + $0x2e0] sm:$0xff] }
 0x157   :  { %8618 = vmatpush3.bf16.msra.mxu0 %v12069_v25  ;;  %8046 = vmatprep.subr.bf16.mxu1 %v12040_v53  ;;  %v3376_v25 = vld [vmem:[#allocation5 + $0x298] sm:$0xff]  ;;  %v3396_v44 = vand.u32 4294901760, %v3375_v5 }
 0x158   :  { %8619 = vmatprep.subr.bf16.mxu0 %v12040_v53  ;;  %v3399_v27 = vand.u32 4294901760, %v3376_v25 }
 0x159   :  { %v10014_v61 = vsub.f32 %v3375_v5, %v3396_v44  ;;  %v10047_v5 = vsub.f32 %v64_v8, %v762_v40  ;;  %v10083_v40 = vsub.f32 %v5397_v34, %v5397_v34  ;;  %v10109_v8 = vsub.f32 %v67_v29, %v771_v42 }
 0x15a   :  { %8048 = vmatpush3.bf16.msra.mxu1 %v12070_v33  ;;  %v9965_v33 = vpack.c.bf16 %v744_v37, %v741_v39  ;;  %v9991_v2 = vpack.c.bf16 %v3399_v27, %v3396_v44  ;;  %v10016_v60 = vsub.f32 %v3376_v25, %v3399_v27  ;;  %v10039_v39 = vpack.c.bf16 %v3411_v52, %v3408_v49  ;;  %v10085_v49 = vld [vmem:[#allocation5 + $0x70] sm:$0xff]  ;;  %v10087_v52 = vld [vmem:[#allocation5 + $0x78] sm:$0xff] }
 0x15b   :  { %8621 = vmatpush3.bf16.msra.mxu0 %v12073_v47  ;;  %8049 = vmatprep.subr.bf16.mxu1 %v12040_v53  ;;  %v747_v47 = vand.u32 4294901760, %v59_v56  ;;  %v3414_v37 = vand.u32 4294901760, %v3381_v6  ;;  %v10049_v25 = vsub.f32 %v5377_v59, %v5377_v59  ;;  %v11894_v44 = vand.u32 4294901760, %v9976_v45  ;;  %12114 = vst [vmem:[#allocation21_spill] sm:$0xff] %v10083_v40  ;;  %v10092_v59 = vld [vmem:[#allocation5 + $0x2e8] sm:$0xff] }
 0x15c   :  { %8622 = vmatprep.subr.bf16.mxu0 %v12040_v53  ;;  %12107 = vst [vmem:[#allocation13_spill] sm:$0xff] %v9991_v2  ;;  %12111 = vst [vmem:[#allocation18_spill] sm:$0xff] %v10039_v39  ;;  %v11893_v27 = vand.u32 4294901760, %v9978_v50  ;;  %v850_v29 = vsub.f32 %v9993_v19, %v12119_v9  ;;  %v12123_v9 = vand.u32 4294901760, %v10087_v52 }
 0x15d   :  { %6433 = vmatmul.mubr.msk.f32.vlgmr.msra.gmra.mrb[0].mxu1 %vm74_vm3, %v11891_v1  ;;  %v10002_v10 = vsub.f32 %v59_v56, %v747_v47  ;;  %v10041_v56 = vld [vmem:[#allocation5 + $0x68] sm:$0xff]  ;;  %v10072_v3 = vpack.c.bf16 %v3417_v57, %v3414_v37  ;;  %v10081_v23 = vsub.f32 %v3381_v6, %v3414_v37  ;;  %v829_v51 = vsub.f32 %v9976_v45, %v11894_v44 }
 0x15e   :  { %8051 = vmatpush3.bf16.msra.mxu1 %v9955_v22  ;;  %6467 = vmatprep.mubr.msk.f32.mxu1 %vm9258_vm2, %v12041_v4  ;;  %v774_v41 = vand.u32 4294901760, %v10041_v56  ;;  %v836_v24 = vsub.f32 %v9978_v50, %v11893_v27  ;;  %v11902_v6 = vand.u32 4294901760, %v9987_v32  ;;  %v10102_v37 = vsub.f32 %v3382_v0, %v3417_v57  ;;  %v10130_v0 = vld [vmem:[#allocation5 + $0x2f8] sm:$0xff] }
 0x15f   :  { %8624 = vmatpush3.bf16.msra.mxu0 %v12076_v17  ;;  %8052 = vmatprep.subr.bf16.mxu1 %v12040_v53  ;;  %v9985_v17 = vpack.c.bf16 %v750_v31, %v747_v47  ;;  %v10051_v47 = vld [vmem:[#allocation5 + $0x2d0] sm:$0xff]  ;;  %v10053_v31 = vld [vmem:[#allocation5 + $0x2d8] sm:$0xff]  ;;  %12113 = vst [vmem:[#allocation20_spill] sm:$0xff] %v10072_v3 }
 0x160   :  { %8625 = vmatprep.subr.bf16.mxu0 %v12040_v53  ;;  %v11895_v18 = vand.u32 4294901760, %v10051_v47  ;;  %v10104_v34 = vpack.c.bf16 %v774_v41, %v771_v42  ;;  %v12116_v27 = vand.u32 4294901760, %v10053_v31  ;;  %v12118_v42 = vand.u32 4294901760, %v10049_v25 }
 0x161   :  { %12106 = vst [vmem:[#allocation12_spill] sm:$0xff] %v9985_v17  ;;  %v843_v57 = vsub.f32 %v9987_v32, %v11902_v6  ;;  %v10148_v6 = vsub.f32 %v10041_v56, %v774_v41 }
 0x162   :  { %8054 = vmatpush3.bf16.msra.mxu1 %v9965_v33  ;;  %7273 = vmatmul.mubr.msk.f32.vlgmr.msra.gmra.mrb[0].mxu0 %vm2706_vm4, %v11891_v1  ;;  %12115 = vst [vmem:[#allocation22_spill] sm:$0xff] %v10104_v34  ;;  %v10115_v44 = vpack.c.bf16 %v12116_v27, %v11895_v18  ;;  %v818_v1 = vsub.f32 %v10049_v25, %v12118_v42  ;;  %v830_v27 = vand.u32 4294901760, %v829_v51  ;;  %v837_v18 = vand.u32 4294901760, %v836_v24 }
 0x163   :  { %8627 = vmatpush3.bf16.msra.mxu0 %v9971_v43  ;;  %8055 = vmatprep.subr.bf16.mxu1 %v12040_v53  ;;  %v3484_v42 = vsub.f32 %v9995_v7, %v12120_v63  ;;  %v11924_v24 = vand.u32 4294901760, %v10128_v21  ;;  %v844_v63 = vand.u32 4294901760, %v843_v57 }
 0x164   :  { %8628 = vmatprep.subr.bf16.mxu0 %v12040_v53  ;;  %7307 = vmatprep.mubr.msk.f32.mxu0 %vm9258_vm2, %v12041_v4  ;;  %12117 = vst [vmem:[#allocation23_spill] sm:$0xff] %v10115_v44  ;;  %v819_v41 = vand.u32 4294901760, %v818_v1  ;;  %v12130_v1 = vand.u32 4294901760, %v10004_v30 }
 0x166   :  { %8057 = vmatpush3.bf16.msra.mxu1 %v9985_v17  ;;  %v12129_v17 = vand.u32 4294901760, %v10002_v10 }
 0x167   :  { %8630 = vmatpush3.bf16.msra.mxu0 %v9991_v2  ;;  %8058 = vmatprep.subr.bf16.mxu1 %v12040_v53 }
 0x168   :  { %8631 = vmatprep.subr.bf16.mxu0 %v12040_v53 }
 0x16a   :  { %8060 = vmatpush3.bf16.msra.mxu1 %v10006_v35  ;;  %v3485_v35 = vand.u32 4294901760, %v3484_v42  ;;  %v12135_v42 = vand.u32 4294901760, %v10053_v31 }
 0x16b   :  { %8633 = vmatpush3.bf16.msra.mxu0 %v10019_v12  ;;  %8061 = vmatprep.subr.bf16.mxu1 %v12040_v53  ;;  %v851_v12 = vand.u32 4294901760, %v850_v29  ;;  %v12132_v29 = vand.u32 4294901760, %v10016_v60 }
 0x16c   :  { %8634 = vmatprep.subr.bf16.mxu0 %v12040_v53 }
 0x16e   :  { %8063 = vmatpush3.bf16.msra.mxu1 %v10037_v11 }
 0x16f   :  { %8636 = vmatpush3.bf16.msra.mxu0 %v10039_v39  ;;  %8064 = vmatprep.subr.bf16.mxu1 %v12040_v53  ;;  %v12122_v39 = vand.u32 4294901760, %v10085_v49 }
 0x170   :  { %8637 = vmatprep.subr.bf16.mxu0 %v12040_v53 }
 0x171   :  { %v10154_v11 = vpack.c.bf16 %v12123_v9, %v12122_v39  ;;  %v11923_v39 = vand.u32 4294901760, %v10130_v0  ;;  %v8074_v9 = vpack.c.bf16 %v837_v18, %v830_v27  ;;  %v12131_v18 = vand.u32 4294901760, %v10014_v61 }
 0x172   :  { %8066 = vmatpush3.bf16.msra.mxu1 %v10066_v46  ;;  %v12126_v46 = vand.u32 4294901760, %v10092_v59  ;;  %v10205_v27 = vsub.f32 %v10053_v31, %v12135_v42  ;;  %v12137_v42 = vand.u32 4294901760, %v10023_v14 }
 0x173   :  { %8639 = vmatpush3.bf16.msra.mxu0 %v10072_v3  ;;  %8067 = vmatprep.subr.bf16.mxu1 %v12040_v53  ;;  %v12121_v3 = vand.u32 4294901760, %v9997_v28  ;;  %12124 = vst [vmem:[#allocation24_spill] sm:$0xff] %v10154_v11  ;;  %v3498_v57 = vsub.f32 %v10014_v61, %v12131_v18 }
 0x174   :  { %8640 = vmatprep.subr.bf16.mxu0 %v12040_v53 }
 0x175   :  { %v3491_v51 = vsub.f32 %v9997_v28, %v12121_v3  ;;  %v12125_v3 = vand.u32 4294901760, %v10090_v54  ;;  %v3499_v18 = vand.u32 4294901760, %v3498_v57 }
 0x176   :  { %8069 = vmatpush3.bf16.msra.mxu1 %v10104_v34 }
 0x177   :  { %8642 = vmatpush3.bf16.msra.mxu0 %v10115_v44  ;;  %8070 = vmatprep.subr.bf16.mxu1 %v12040_v53  ;;  %v10164_v56 = vpack.c.bf16 %v12126_v46, %v12125_v3  ;;  %v12128_v44 = vand.u32 4294901760, %v10083_v40  ;;  %v3492_v2 = vand.u32 4294901760, %v3491_v51  ;;  %v857_v46 = vsub.f32 %v10002_v10, %v12129_v17 }
 0x178   :  { %8643 = vmatprep.subr.bf16.mxu0 %v12040_v53  ;;  %v864_v3 = vsub.f32 %v10004_v30, %v12130_v1  ;;  %v12133_v17 = vand.u32 4294901760, %v10051_v47  ;;  %v10198_v1 = vpack.c.bf16 %v11923_v39, %v11924_v24 }
 0x179   :  { %12127 = vst [vmem:[#allocation25_spill] sm:$0xff] %v10164_v56  ;;  %v3473_v34 = vsub.f32 %v10083_v40, %v12128_v44  ;;  %v3505_v44 = vsub.f32 %v10016_v60, %v12132_v29  ;;  %v8650_v39 = vpack.c.bf16 %v3492_v2, %v3485_v35  ;;  %v858_v24 = vand.u32 4294901760, %v857_v46 }
 0x17a   :  { %8072 = vmatpush3.bf16.msra.mxu1 %v10154_v11  ;;  %v10190_v51 = vsub.f32 %v10051_v47, %v12133_v17  ;;  %12134 = vst [vmem:[#allocation26_spill] sm:$0xff] %v10198_v1  ;;  %v11929_v17 = vand.u32 4294901760, %v10045_v20  ;;  %v8077_v11 = vpack.c.bf16 %v851_v12, %v844_v63  ;;  %v865_v43 = vand.u32 4294901760, %v864_v3 }
 0x17b   :  { %8645 = vmatpush3.bf16.msra.mxu0 %v10164_v56  ;;  %8073 = vmatprep.subr.bf16.mxu1 %v12040_v53  ;;  %v3474_v47 = vand.u32 4294901760, %v3473_v34  ;;  %v11930_v56 = vand.u32 4294901760, %v10047_v5  ;;  %v3506_v29 = vand.u32 4294901760, %v3505_v44  ;;  %v12136_v40 = vand.u32 4294901760, %v10021_v16 }
 0x17c   :  { %8646 = vmatprep.subr.bf16.mxu0 %v12040_v53  ;;  %v878_v34 = vsub.f32 %v10023_v14, %v12137_v42  ;;  %v12138_v2 = vand.u32 4294901760, %v10026_v15  ;;  %v12139_v12 = vand.u32 4294901760, %v10032_v62  ;;  %v12140_v44 = vand.u32 4294901760, %v10085_v49 }
 0x17d   :  { %6468 = vmatmul.mubr.f32.vlgmr.msra.gmra.mrb[0].mxu1 %v819_v41  ;;  %v871_v31 = vsub.f32 %v10021_v16, %v12136_v40  ;;  %v892_v46 = vsub.f32 %v10047_v5, %v11930_v56  ;;  %v11933_v41 = vand.u32 4294901760, %v10102_v37  ;;  %v8080_v56 = vpack.c.bf16 %v865_v43, %v858_v24 }
 0x17e   :  { %8075 = vmatpush3.bf16.msra.mxu1 %v8074_v9  ;;  %6502 = vmatprep.mubr.msk.f32.mxu1 %vm9258_vm2, %v12041_v4  ;;  %v3512_v35 = vsub.f32 %v10026_v15, %v12138_v2  ;;  %v3519_v63 = vsub.f32 %v10032_v62, %v12139_v12  ;;  %v885_v9 = vsub.f32 %v10045_v20, %v11929_v17  ;;  %v12141_v2 = vand.u32 4294901760, %v10087_v52 }
 0x17f   :  { %8648 = vmatpush3.bf16.msra.mxu0 %v10198_v1  ;;  %8076 = vmatprep.subr.bf16.mxu1 %v12040_v53  ;;  %v10240_v42 = vsub.f32 %v10085_v49, %v12140_v44  ;;  %v8653_v3 = vpack.c.bf16 %v3506_v29, %v3499_v18  ;;  %v872_v40 = vand.u32 4294901760, %v871_v31  ;;  %v879_v57 = vand.u32 4294901760, %v878_v34 }
 0x180   :  { %8649 = vmatprep.subr.bf16.mxu0 %v12040_v53  ;;  %v10245_v12 = vsub.f32 %v10087_v52, %v12141_v2  ;;  %v3513_v49 = vand.u32 4294901760, %v3512_v35  ;;  %v3520_v44 = vand.u32 4294901760, %v3519_v63  ;;  %v12142_v1 = vand.u32 4294901760, %v10056_v38 }
 0x181   :  { %v12143_v2 = vand.u32 4294901760, %v10064_v26  ;;  %v893_v43 = vand.u32 4294901760, %v892_v46  ;;  %v12144_v24 = vand.u32 4294901760, %v10070_v58  ;;  %v12145_v18 = vand.u32 4294901760, %v10079_v36 }
 0x182   :  { %8078 = vmatpush3.bf16.msra.mxu1 %v8077_v11  ;;  %7308 = vmatmul.mubr.f32.vlgmr.msra.gmra.mrb[0].mxu0 %v3474_v47  ;;  %v3526_v52 = vsub.f32 %v10056_v38, %v12142_v1  ;;  %v886_v11 = vand.u32 4294901760, %v885_v9  ;;  %v12146_v1 = vand.u32 4294901760, %v10081_v23  ;;  %v3547_v31 = vsub.f32 %v10102_v37, %v11933_v41 }
 0x183   :  { %8651 = vmatpush3.bf16.msra.mxu0 %v8650_v39  ;;  %8079 = vmatprep.subr.bf16.mxu1 %v12040_v53  ;;  %v3533_v17 = vsub.f32 %v10064_v26, %v12143_v2  ;;  %v899_v39 = vsub.f32 %v10070_v58, %v12144_v24  ;;  %v906_v29 = vsub.f32 %v10079_v36, %v12145_v18  ;;  %v12147_v63 = vand.u32 4294901760, %v10090_v54 }
 0x184   :  { %8652 = vmatprep.subr.bf16.mxu0 %v12040_v53  ;;  %7342 = vmatprep.mubr.msk.f32.mxu0 %vm9258_vm2, %v12041_v4  ;;  %v3540_v47 = vsub.f32 %v10081_v23, %v12146_v1  ;;  %v8083_v46 = vpack.c.bf16 %v879_v57, %v872_v40  ;;  %v12148_v18 = vand.u32 4294901760, %v10092_v59  ;;  %v8656_v41 = vpack.c.bf16 %v3520_v44, %v3513_v49 }
 0x185   :  { %v10276_v9 = vsub.f32 %v10090_v54, %v12147_v63  ;;  %v3527_v35 = vand.u32 4294901760, %v3526_v52  ;;  %v3534_v34 = vand.u32 4294901760, %v3533_v17  ;;  %v12149_v54 = vand.u32 4294901760, %v10128_v21 }
 0x186   :  { %8081 = vmatpush3.bf16.msra.mxu1 %v8080_v56  ;;  %v10283_v1 = vsub.f32 %v10092_v59, %v12148_v18  ;;  %v8086_v40 = vpack.c.bf16 %v893_v43, %v886_v11  ;;  %v900_v57 = vand.u32 4294901760, %v899_v39  ;;  %v907_v63 = vand.u32 4294901760, %v906_v29 }
 0x187   :  { %8654 = vmatpush3.bf16.msra.mxu0 %v8653_v3  ;;  %8082 = vmatprep.subr.bf16.mxu1 %v12040_v53  ;;  %v10289_v56 = vsub.f32 %v10128_v21, %v12149_v54  ;;  %v3541_v24 = vand.u32 4294901760, %v3540_v47  ;;  %v3548_v2 = vand.u32 4294901760, %v3547_v31  ;;  %v12150_v59 = vand.u32 4294901760, %v10109_v8 }
 0x188   :  { %8655 = vmatprep.subr.bf16.mxu0 %v12040_v53  ;;  %v12151_v49 = vand.u32 4294901760, %v10148_v6  ;;  %v12152_v44 = vand.u32 4294901760, %v10190_v51  ;;  %v12153_v52 = vand.u32 4294901760, %v10205_v27  ;;  %v926_v43 = vand.u32 4294901760, %v10240_v42 }
 0x189   :  { %v913_v3 = vsub.f32 %v10109_v8, %v12150_v59  ;;  %v12154_v29 = vand.u32 4294901760, %v10130_v0  ;;  %v8659_v31 = vpack.c.bf16 %v3534_v34, %v3527_v35  ;;  %v11936_v18 = vand.u32 4294901760, %v10283_v1 }
 0x18a   :  { %v920_v17 = vsub.f32 %v10148_v6, %v12151_v49  ;;  %8084 = vmatpush3.bf16.msra.mxu1 %v8083_v46  ;;  %v3554_v21 = vsub.f32 %v10190_v51, %v12152_v44  ;;  %v3561_v11 = vsub.f32 %v10205_v27, %v12153_v52  ;;  %v3567_v46 = vand.u32 4294901760, %v10276_v9 }
 0x18b   :  { %v10309_v47 = vsub.f32 %v10130_v0, %v12154_v29  ;;  %8657 = vmatpush3.bf16.msra.mxu0 %v8656_v41  ;;  %8085 = vmatprep.subr.bf16.mxu1 %v12040_v53  ;;  %v8089_v54 = vpack.c.bf16 %v907_v63, %v900_v57  ;;  %v8662_v59 = vpack.c.bf16 %v3548_v2, %v3541_v24  ;;  %v914_v49 = vand.u32 4294901760, %v913_v3 }
 0x18c   :  { %8658 = vmatprep.subr.bf16.mxu0 %v12040_v53  ;;  %v921_v44 = vand.u32 4294901760, %v920_v17  ;;  %v3555_v52 = vand.u32 4294901760, %v3554_v21  ;;  %v3562_v39 = vand.u32 4294901760, %v3561_v11  ;;  %v927_v0 = vsub.f32 %v10240_v42, %v926_v43 }
 0x18d   :  { %v12155_v41 = vand.u32 4294901760, %v10245_v12  ;;  %v3568_v35 = vsub.f32 %v10276_v9, %v3567_v46  ;;  %v3575_v2 = vsub.f32 %v10283_v1, %v11936_v18  ;;  %v11935_v24 = vand.u32 4294901760, %v10289_v56 }
 0x18e   :  { %8087 = vmatpush3.bf16.msra.mxu1 %v8086_v40  ;;  %v11934_v40 = vand.u32 4294901760, %v10309_v47  ;;  %v8092_v57 = vpack.c.bf16 %v921_v44, %v914_v49  ;;  %v8665_v63 = vpack.c.bf16 %v3562_v39, %v3555_v52  ;;  %v928_v3 = vand.u32 4294901760, %v927_v0 }
 0x18f   :  { %v934_v34 = vsub.f32 %v10245_v12, %v12155_v41  ;;  %8660 = vmatpush3.bf16.msra.mxu0 %v8659_v31  ;;  %8088 = vmatprep.subr.bf16.mxu1 %v12040_v53  ;;  %v3569_v21 = vand.u32 4294901760, %v3568_v35  ;;  %v3576_v11 = vand.u32 4294901760, %v3575_v2  ;;  %v3582_v29 = vsub.f32 %v10289_v56, %v11935_v24 }
 0x190   :  { %8661 = vmatprep.subr.bf16.mxu0 %v12040_v53  ;;  %v3589_v31 = vsub.f32 %v10309_v47, %v11934_v40  ;;  %v8098_v44 = vpack.c.bf16 %v9978_v50, %v9976_v45  ;;  %v12156_v0 = vmov 1.0   ;;  %v8101_v41 = vpack.c.bf16 %v9993_v19, %v9987_v32 }
 0x191   :  { %v935_v17 = vand.u32 4294901760, %v934_v34  ;;  %v8668_v39 = vpack.c.bf16 %v3576_v11, %v3569_v21  ;;  %v8674_v34 = vpack.c.bf16 %v9997_v28, %v9995_v7  ;;  %v8104_v35 = vpack.c.bf16 %v10004_v30, %v10002_v10 }
 0x192   :  { %8090 = vmatpush3.bf16.msra.mxu1 %v8089_v54  ;;  %v3590_v49 = vand.u32 4294901760, %v3589_v31  ;;  %v8677_v2 = vpack.c.bf16 %v10016_v60, %v10014_v61  ;;  %v8113_v21 = vpack.c.bf16 %v10079_v36, %v10070_v58  ;;  %v8686_v11 = vpack.c.bf16 %v10102_v37, %v10081_v23 }
 0x193   :  { %8663 = vmatpush3.bf16.msra.mxu0 %v8662_v59  ;;  %8091 = vmatprep.subr.bf16.mxu1 %v12040_v53  ;;  %v8095_v54 = vpack.c.bf16 %v935_v17, %v928_v3  ;;  %v3583_v59 = vand.u32 4294901760, %v3582_v29  ;;  %v8110_v3 = vpack.c.bf16 %v10047_v5, %v10045_v20  ;;  %v8683_v17 = vpack.c.bf16 %v10064_v26, %v10056_v38 }
 0x194   :  { %8664 = vmatprep.subr.bf16.mxu0 %v12040_v53  ;;  %v8116_v29 = vpack.c.bf16 %v10148_v6, %v10109_v8  ;;  %v8689_v31 = vpack.c.bf16 %v10205_v27, %v10190_v51  ;;  %v12174_v40 = vand.u32 4294901760, %v9987_v32  ;;  %v12175_v24 = vand.u32 4294901760, %v9993_v19 }
 0x195   :  { %v8671_v52 = vpack.c.bf16 %v3590_v49, %v3583_v59  ;;  %v8695_v59 = vpack.c.bf16 %v10309_v47, %v10289_v56  ;;  %v12157_v49 = vld [vmem:[#allocation21_spill] sm:$0xff]  ;;  %v12180_v19 = vand.u32 4294901760, %v10002_v10  ;;  %v12185_v10 = vand.u32 4294901760, %v10023_v14 }
 0x196   :  { %8093 = vmatpush3.bf16.msra.mxu1 %v8092_v57  ;;  %v8107_v57 = vpack.c.bf16 %v10023_v14, %v10021_v16  ;;  %v8149_v18 = vpack.c.bf16 %v12175_v24, %v12174_v40  ;;  %v12179_v32 = vand.u32 4294901760, %v12157_v49  ;;  %v12182_v40 = vand.u32 4294901760, %v10014_v61 }
 0x197   :  { %8666 = vmatpush3.bf16.msra.mxu0 %v8665_v63  ;;  %8094 = vmatprep.subr.bf16.mxu1 %v12040_v53  ;;  %v8680_v63 = vpack.c.bf16 %v10032_v62, %v10026_v15  ;;  %v12187_v61 = vand.u32 4294901760, %v10032_v62  ;;  %v12191_v14 = vand.u32 4294901760, %v10064_v26  ;;  %v12193_v62 = vand.u32 4294901760, %v10079_v36  ;;  %v12196_v26 = vld [vmem:[#allocation16_spill] sm:$0xff] }
 0x198   :  { %8667 = vmatprep.subr.bf16.mxu0 %v12040_v53  ;;  %v12198_v36 = vand.u32 4294901760, %v10148_v6 }
 0x19a   :  { %8096 = vmatpush3.bf16.msra.mxu1 %v8095_v54  ;;  %v8119_v54 = vpack.c.bf16 %v10245_v12, %v10240_v42  ;;  %v12203_v42 = vand.u32 4294901760, %v10289_v56  ;;  %v1383_v56 = vld [vmem:[#allocation5 + $0x110] sm:$0xff] }
 0x19b   :  { %8669 = vmatpush3.bf16.msra.mxu0 %v8668_v39  ;;  %8097 = vmatprep.subr.bf16.mxu1 %v12040_v53  ;;  %v8692_v39 = vpack.c.bf16 %v10283_v1, %v10276_v9 }
 0x19c   :  { %8670 = vmatprep.subr.bf16.mxu0 %v12040_v53 }
 0x19d   :  { %6503 = vmatmul.mubr.msk.f32.vlgmr.msra.gmra.mrb[0].mxu1 %vm52_vm5, %v12156_v0 }
 0x19e   :  { %8099 = vmatpush3.bf16.msra.mxu1 %v8098_v44  ;;  %6537 = vmatprep.mubr.msk.f32.mxu1 %vm9258_vm2, %v12041_v4  ;;  %v12158_v44 = vld [vmem:[#allocation11_spill] sm:$0xff] }
 0x19f   :  { %8672 = vmatpush3.bf16.msra.mxu0 %v8671_v52  ;;  %8100 = vmatprep.subr.bf16.mxu1 %v12040_v53  ;;  %v12159_v52 = vld [vmem:[#allocation12_spill] sm:$0xff] }
 0x1a0   :  { %8673 = vmatprep.subr.bf16.mxu0 %v12040_v53 }
 0x1a2   :  { %8102 = vmatpush3.bf16.msra.mxu1 %v8101_v41  ;;  %7343 = vmatmul.mubr.msk.f32.vlgmr.msra.gmra.mrb[0].mxu0 %vm3370_vm6, %v12156_v0  ;;  %v12160_v41 = vld [vmem:[#allocation13_spill] sm:$0xff] }
 0x1a3   :  { %8675 = vmatpush3.bf16.msra.mxu0 %v8674_v34  ;;  %8103 = vmatprep.subr.bf16.mxu1 %v12040_v53  ;;  %v12161_v34 = vld [vmem:[#allocation14_spill] sm:$0xff] }
 0x1a4   :  { %8676 = vmatprep.subr.bf16.mxu0 %v12040_v53  ;;  %7377 = vmatprep.mubr.msk.f32.mxu0 %vm9258_vm2, %v12041_v4 }
 0x1a6   :  { %8105 = vmatpush3.bf16.msra.mxu1 %v8104_v35  ;;  %v12162_v35 = vld [vmem:[#allocation15_spill] sm:$0xff] }
 0x1a7   :  { %8678 = vmatpush3.bf16.msra.mxu0 %v8677_v2  ;;  %8106 = vmatprep.subr.bf16.mxu1 %v12040_v53  ;;  %v12163_v2 = vld [vmem:[#allocation17_spill] sm:$0xff] }
 0x1a8   :  { %8679 = vmatprep.subr.bf16.mxu0 %v12040_v53 }
 0x1aa   :  { %8108 = vmatpush3.bf16.msra.mxu1 %v8107_v57  ;;  %v12164_v57 = vld [vmem:[#allocation18_spill] sm:$0xff] }
 0x1ab   :  { %8681 = vmatpush3.bf16.msra.mxu0 %v8680_v63  ;;  %8109 = vmatprep.subr.bf16.mxu1 %v12040_v53  ;;  %v12165_v63 = vld [vmem:[#allocation19_spill] sm:$0xff] }
 0x1ac   :  { %8682 = vmatprep.subr.bf16.mxu0 %v12040_v53 }
 0x1ae   :  { %8111 = vmatpush3.bf16.msra.mxu1 %v8110_v3  ;;  %v12166_v3 = vld [vmem:[#allocation20_spill] sm:$0xff] }
 0x1af   :  { %8684 = vmatpush3.bf16.msra.mxu0 %v8683_v17  ;;  %8112 = vmatprep.subr.bf16.mxu1 %v12040_v53  ;;  %v12167_v17 = vld [vmem:[#allocation22_spill] sm:$0xff] }
 0x1b0   :  { %8685 = vmatprep.subr.bf16.mxu0 %v12040_v53 }
 0x1b2   :  { %8114 = vmatpush3.bf16.msra.mxu1 %v8113_v21  ;;  %v12168_v21 = vld [vmem:[#allocation23_spill] sm:$0xff] }
 0x1b3   :  { %8687 = vmatpush3.bf16.msra.mxu0 %v8686_v11  ;;  %8115 = vmatprep.subr.bf16.mxu1 %v12040_v53  ;;  %v12169_v11 = vld [vmem:[#allocation24_spill] sm:$0xff] }
 0x1b4   :  { %8688 = vmatprep.subr.bf16.mxu0 %v12040_v53 }
 0x1b6   :  { %8117 = vmatpush3.bf16.msra.mxu1 %v8116_v29  ;;  %v12170_v29 = vand.u32 4294901760, %v9976_v45  ;;  %v12176_v45 = vld [vmem:[#allocation26_spill] sm:$0xff] }
 0x1b7   :  { %8690 = vmatpush3.bf16.msra.mxu0 %v8689_v31  ;;  %8118 = vmatprep.subr.bf16.mxu1 %v12040_v53  ;;  %v12171_v31 = vand.u32 4294901760, %v9978_v50  ;;  %v12177_v50 = vand.u32 4294901760, %v9995_v7  ;;  %v12183_v7 = vand.u32 4294901760, %v10016_v60 }
 0x1b8   :  { %8691 = vmatprep.subr.bf16.mxu0 %v12040_v53 }
 0x1ba   :  { %8120 = vmatpush3.bf16.msra.mxu1 %v8119_v54  ;;  %v8146_v54 = vpack.c.bf16 %v12171_v31, %v12170_v29  ;;  %v12178_v29 = vand.u32 4294901760, %v9997_v28  ;;  %v8725_v28 = vpack.c.bf16 %v12183_v7, %v12182_v40 }
 0x1bb   :  { %8693 = vmatpush3.bf16.msra.mxu0 %v8692_v39  ;;  %8121 = vmatprep.subr.bf16.mxu1 %v12040_v53  ;;  %v12172_v39 = vld [vmem:[#allocation25_spill] sm:$0xff] }
 0x1bc   :  { %8694 = vmatprep.subr.bf16.mxu0 %v12040_v53  ;;  %v8722_v31 = vpack.c.bf16 %v12178_v29, %v12177_v50 }
 0x1bd   :  { %6538 = vmatmul.mubr.f32.vlgmr.msra.gmra.mrb[0].mxu1 %v10049_v25 }
 0x1be   :  { %8123 = vmatpush3.bf16.msra.mxu1 %v9955_v22  ;;  %6572 = vmatprep.mubr.msk.f32.mxu1 %vm9258_vm2, %v12041_v4 }
 0x1bf   :  { %8696 = vmatpush3.bf16.msra.mxu0 %v8695_v59  ;;  %8124 = vmatprep.subr.bf16.mxu1 %v12040_v53  ;;  %v12173_v59 = vand.u32 4294901760, %v10049_v25  ;;  %v12181_v25 = vand.u32 4294901760, %v10004_v30 }
 0x1c0   :  { %8697 = vmatprep.subr.bf16.mxu0 %v12040_v53 }
 0x1c1   :  { %v8152_v24 = vpack.c.bf16 %v12181_v25, %v12180_v19 }
 0x1c2   :  { %8126 = vmatpush3.bf16.msra.mxu1 %v9965_v33  ;;  %7378 = vmatmul.mubr.f32.vlgmr.msra.gmra.mrb[0].mxu0 %v12157_v49  ;;  %v12186_v49 = vand.u32 4294901760, %v10026_v15  ;;  %v12192_v15 = vand.u32 4294901760, %v10070_v58  ;;  %v12197_v58 = vand.u32 4294901760, %v10109_v8  ;;  %v12201_v8 = vand.u32 4294901760, %v10245_v12 }
 0x1c3   :  { %8699 = vmatpush3.bf16.msra.mxu0 %v12158_v44  ;;  %8127 = vmatprep.subr.bf16.mxu1 %v12040_v53  ;;  %v12204_v12 = vand.u32 4294901760, %v10309_v47  ;;  %v1384_v47 = vld [vmem:[#allocation5 + $0x118] sm:$0xff] }
 0x1c4   :  { %8700 = vmatprep.subr.bf16.mxu0 %v12040_v53  ;;  %7412 = vmatprep.mubr.msk.f32.mxu0 %vm9258_vm2, %v12041_v4  ;;  %v8728_v60 = vpack.c.bf16 %v12187_v61, %v12186_v49  ;;  %v8164_v19 = vpack.c.bf16 %v12198_v36, %v12197_v58  ;;  %v8167_v6 = vpack.c.bf16 %v12201_v8, %v926_v43 }
 0x1c5   :  { %v8743_v43 = vpack.c.bf16 %v12204_v12, %v12203_v42  ;;  %v4045_v42 = vld [vmem:[#allocation5 + $0x340] sm:$0xff]  ;;  %v4046_v12 = vld [vmem:[#allocation5 + $0x348] sm:$0xff] }
 0x1c6   :  { %8129 = vmatpush3.bf16.msra.mxu1 %v12159_v52 }
 0x1c7   :  { %8702 = vmatpush3.bf16.msra.mxu0 %v12160_v41  ;;  %8130 = vmatprep.subr.bf16.mxu1 %v12040_v53 }
 0x1c8   :  { %8703 = vmatprep.subr.bf16.mxu0 %v12040_v53 }
 0x1ca   :  { %8132 = vmatpush3.bf16.msra.mxu1 %v12161_v34 }
 0x1cb   :  { %8705 = vmatpush3.bf16.msra.mxu0 %v12162_v35  ;;  %8133 = vmatprep.subr.bf16.mxu1 %v12040_v53 }
 0x1cc   :  { %8706 = vmatprep.subr.bf16.mxu0 %v12040_v53 }
 0x1ce   :  { %8135 = vmatpush3.bf16.msra.mxu1 %v12163_v2 }
 0x1cf   :  { %8708 = vmatpush3.bf16.msra.mxu0 %v12164_v57  ;;  %8136 = vmatprep.subr.bf16.mxu1 %v12040_v53 }
 0x1d0   :  { %8709 = vmatprep.subr.bf16.mxu0 %v12040_v53 }
 0x1d2   :  { %8138 = vmatpush3.bf16.msra.mxu1 %v12165_v63 }
 0x1d3   :  { %8711 = vmatpush3.bf16.msra.mxu0 %v12166_v3  ;;  %8139 = vmatprep.subr.bf16.mxu1 %v12040_v53 }
 0x1d4   :  { %8712 = vmatprep.subr.bf16.mxu0 %v12040_v53 }
 0x1d6   :  { %8141 = vmatpush3.bf16.msra.mxu1 %v12167_v17 }
 0x1d7   :  { %8714 = vmatpush3.bf16.msra.mxu0 %v12168_v21  ;;  %8142 = vmatprep.subr.bf16.mxu1 %v12040_v53 }
 0x1d8   :  { %8715 = vmatprep.subr.bf16.mxu0 %v12040_v53 }
 0x1da   :  { %8144 = vmatpush3.bf16.msra.mxu1 %v12169_v11 }
 0x1db   :  { %8717 = vmatpush3.bf16.msra.mxu0 %v12172_v39  ;;  %8145 = vmatprep.subr.bf16.mxu1 %v12040_v53 }
 0x1dc   :  { %8718 = vmatprep.subr.bf16.mxu0 %v12040_v53 }
 0x1dd   :  { %6573 = vmatmul.mubr.f32.vlgmr.msra.gmra.mrb[0].mxu1 %v12173_v59  ;;  %v12189_v59 = vand.u32 4294901760, %v10047_v5  ;;  %v12195_v5 = vand.u32 4294901760, %v10102_v37  ;;  %v12200_v37 = vand.u32 4294901760, %v10205_v27  ;;  %v12202_v27 = vand.u32 4294901760, %v10283_v1 }
 0x1de   :  { %8147 = vmatpush3.bf16.msra.mxu1 %v8146_v54  ;;  %6607 = vmatprep.mubr.msk.f32.mxu1 %vm9258_vm2, %v12041_v4  ;;  %v12188_v54 = vand.u32 4294901760, %v10045_v20  ;;  %v12194_v20 = vand.u32 4294901760, %v10081_v23  ;;  %v12199_v23 = vand.u32 4294901760, %v10190_v51 }
 0x1df   :  { %8720 = vmatpush3.bf16.msra.mxu0 %v12176_v45  ;;  %8148 = vmatprep.subr.bf16.mxu1 %v12040_v53  ;;  %v8740_v51 = vpack.c.bf16 %v12202_v27, %v3567_v46  ;;  %v4037_v46 = vld [vmem:[#allocation5 + $0x300] sm:$0xff] }
 0x1e0   :  { %8721 = vmatprep.subr.bf16.mxu0 %v12040_v53  ;;  %v8158_v50 = vpack.c.bf16 %v12189_v59, %v12188_v54  ;;  %v8737_v25 = vpack.c.bf16 %v12200_v37, %v12199_v23  ;;  %v1419_v54 = vand.u32 4294901760, %v1388_v48  ;;  %v1389_v59 = vld [vmem:[#allocation5 + $0x140] sm:$0xff]  ;;  %v4072_v23 = vand.u32 4294901760, %v4043_v55 }
 0x1e2   :  { %8150 = vmatpush3.bf16.msra.mxu1 %v8149_v18  ;;  %7413 = vmatmul.mubr.f32.vlgmr.msra.gmra.mrb[0].mxu0 %v12179_v32  ;;  %v12184_v18 = vand.u32 4294901760, %v10021_v16  ;;  %v12190_v16 = vand.u32 4294901760, %v10056_v38  ;;  %v8734_v32 = vpack.c.bf16 %v12195_v5, %v12194_v20  ;;  %v9265_v38 = vmov 3  }
 0x1e3   :  { %8723 = vmatpush3.bf16.msra.mxu0 %v8722_v31  ;;  %8151 = vmatprep.subr.bf16.mxu1 %v12040_v53  ;;  %v8161_v31 = vpack.c.bf16 %v12193_v62, %v12192_v15 }
 0x1e4   :  { %8724 = vmatprep.subr.bf16.mxu0 %v12040_v53  ;;  %7447 = vmatprep.mubr.msk.f32.mxu0 %vm9258_vm2, %v12041_v4  ;;  %v8155_v30 = vpack.c.bf16 %v12185_v10, %v12184_v18  ;;  %v8731_v29 = vpack.c.bf16 %v12191_v14, %v12190_v16  ;;  %v1387_v18 = vld [vmem:[#allocation5 + $0x130] sm:$0xff]  ;;  %v4041_v10 = vld [vmem:[#allocation5 + $0x320] sm:$0xff]  ;;  %v10601_v16 = vpop.permute.xlu1 %1376 }
 0x1e5   :  { %9176 = vset.pattern.permute.xlu1 %v9265_v38  ;;  %v4066_v15 = vand.u32 4294901760, %v4041_v10  ;;  %vm1378_vm7 = vcmp.eq.s32.totalorder %v9646_v13, %v10601_v16 }
 0x1e6   :  { %8153 = vmatpush3.bf16.msra.mxu1 %v8152_v24  ;;  %2040 = vperm.xlu1 %9176, %v12196_v26   ;;  %v9266_v24 = vmov 7  }
 0x1e7   :  { %8726 = vmatpush3.bf16.msra.mxu0 %v8725_v28  ;;  %8154 = vmatprep.subr.bf16.mxu1 %v12040_v53 }
 0x1e8   :  { %8727 = vmatprep.subr.bf16.mxu0 %v12040_v53  ;;  %9178 = vset.pattern.permute.xlu0 %v9266_v24 }
 0x1ea   :  { %8156 = vmatpush3.bf16.msra.mxu1 %v8155_v30  ;;  %9177 = vset.pattern.permute.xlu1 %v9266_v24  ;;  %v4042_v30 = vld [vmem:[#allocation5 + $0x328] sm:$0xff]  ;;  %v10627_v24 = vpop.permute.xlu0 %4032 }
 0x1eb   :  { %8729 = vmatpush3.bf16.msra.mxu0 %v8728_v60  ;;  %8157 = vmatprep.subr.bf16.mxu1 %v12040_v53  ;;  %v1416_v60 = vand.u32 4294901760, %v1387_v18  ;;  %v4069_v62 = vand.u32 4294901760, %v4042_v30  ;;  %vm4034_vm8 = vcmp.eq.s32.totalorder %v9646_v13, %v10627_v24 }
 0x1ec   :  { %8730 = vmatprep.subr.bf16.mxu0 %v12040_v53  ;;  %4696 = vperm.xlu1 %9177, %v12196_v26   ;;  %v1422_v26 = vand.u32 4294901760, %v1389_v59 }
 0x1ed   :  { %v10635_v27 = vpack.c.bf16 %v4069_v62, %v4066_v15 }
 0x1ee   :  { %8159 = vmatpush3.bf16.msra.mxu1 %v8158_v50  ;;  %v1390_v50 = vld [vmem:[#allocation5 + $0x148] sm:$0xff] }
 0x1ef   :  { %8732 = vmatpush3.bf16.msra.mxu0 %v8731_v29  ;;  %8160 = vmatprep.subr.bf16.mxu1 %v12040_v53  ;;  %v1425_v58 = vand.u32 4294901760, %v1390_v50  ;;  %12210 = vst [vmem:[#allocation15_spill] sm:$0xff] %v10635_v27 }
 0x1f0   :  { %8733 = vmatprep.subr.bf16.mxu0 %v12040_v53 }
 0x1f2   :  { %8162 = vmatpush3.bf16.msra.mxu1 %v8161_v31  ;;  %v4044_v31 = vld [vmem:[#allocation5 + $0x338] sm:$0xff] }
 0x1f3   :  { %8735 = vmatpush3.bf16.msra.mxu0 %v8734_v32  ;;  %8163 = vmatprep.subr.bf16.mxu1 %v12040_v53  ;;  %v4075_v37 = vand.u32 4294901760, %v4044_v31 }
 0x1f4   :  { %8736 = vmatprep.subr.bf16.mxu0 %v12040_v53 }
 0x1f6   :  { %8165 = vmatpush3.bf16.msra.mxu1 %v8164_v19  ;;  %v10625_v19 = vpack.c.bf16 %v1419_v54, %v1416_v60 }
 0x1f7   :  { %8738 = vmatpush3.bf16.msra.mxu0 %v8737_v25  ;;  %8166 = vmatprep.subr.bf16.mxu1 %v12040_v53  ;;  %v1391_v25 = vld [vmem:[#allocation5 + $0x150] sm:$0xff] }
 0x1f8   :  { %8739 = vmatprep.subr.bf16.mxu0 %v12040_v53  ;;  %12209 = vst [vmem:[#allocation14_spill] sm:$0xff] %v10625_v19 }
 0x1fa   :  { %8168 = vmatpush3.bf16.msra.mxu1 %v8167_v6 }
 0x1fb   :  { %8741 = vmatpush3.bf16.msra.mxu0 %v8740_v51  ;;  %8169 = vmatprep.subr.bf16.mxu1 %v12040_v53  ;;  %v1392_v51 = vld [vmem:[#allocation5 + $0x158] sm:$0xff] }
 0x1fc   :  { %8742 = vmatprep.subr.bf16.mxu0 %v12040_v53 }
 0x1fd   :  { %6608 = vmatmul.mubr.msk.f32.vlgmr.msra.gmra.mrb[0].mxu1 %vm52_vm5, %v12156_v0 }
 0x1fe   :  { %8171 = vmatpush3.bf16.msra.mxu1 %v9955_v22  ;;  %6642 = vmatprep.mubr.msk.f32.mxu1 %vm9258_vm2, %v12041_v4  ;;  %v1381_v22 = vld [vmem:[#allocation5 + $0x100] sm:$0xff] }
 0x1ff   :  { %8744 = vmatpush3.bf16.msra.mxu0 %v8743_v43  ;;  %8172 = vmatprep.subr.bf16.mxu1 %v12040_v53  ;;  %v1398_v9 = vand.u32 4294901760, %v1381_v22  ;;  %v10637_v43 = vsub.f32 %v1387_v18, %v1416_v60 }
 0x200   :  { %8745 = vmatprep.subr.bf16.mxu0 %v12040_v53 }
 0x201   :  { %v10590_v49 = vsub.f32 %v1381_v22, %v1398_v9  ;;  %v10639_v22 = vsub.f32 %v1388_v48, %v1419_v54  ;;  %v10684_v54 = vsub.f32 %v4044_v31, %v4075_v37  ;;  %v10701_v31 = vld [vmem:[#allocation5 + $0x170] sm:$0xff] }
 0x202   :  { %8174 = vmatpush3.bf16.msra.mxu1 %v9965_v33  ;;  %7448 = vmatmul.mubr.msk.f32.vlgmr.msra.gmra.mrb[0].mxu0 %vm3370_vm6, %v12156_v0  ;;  %v1382_v33 = vld [vmem:[#allocation5 + $0x108] sm:$0xff] }
 0x203   :  { %8747 = vmatpush3.bf16.msra.mxu0 %v12158_v44  ;;  %8175 = vmatprep.subr.bf16.mxu1 %v12040_v53  ;;  %v1401_v1 = vand.u32 4294901760, %v1382_v33  ;;  %v4038_v44 = vld [vmem:[#allocation5 + $0x308] sm:$0xff] }
 0x204   :  { %8748 = vmatprep.subr.bf16.mxu0 %v12040_v53  ;;  %7482 = vmatprep.mubr.msk.f32.mxu0 %vm9258_vm2, %v12041_v4 }
 0x205   :  { %v10592_v61 = vsub.f32 %v1382_v33, %v1401_v1  ;;  %v10642_v33 = vsub.f32 %v4041_v10, %v4066_v15 }
 0x206   :  { %8177 = vmatpush3.bf16.msra.mxu1 %v12159_v52  ;;  %v10571_v52 = vpack.c.bf16 %v1401_v1, %v1398_v9  ;;  %v5385_v9 = vsel %vm1378_vm7, 1.0, %v12041_v4  ;;  %v10648_v1 = vsub.f32 %v4042_v30, %v4069_v62 }
 0x207   :  { %8750 = vmatpush3.bf16.msra.mxu0 %v12160_v41  ;;  %8178 = vmatprep.subr.bf16.mxu1 %v12040_v53  ;;  %v1404_v41 = vand.u32 4294901760, %v1383_v56  ;;  %v11938_v18 = vand.u32 4294901760, %v10592_v61 }
 0x208   :  { %8751 = vmatprep.subr.bf16.mxu0 %v12040_v53 }
 0x209   :  { %v10603_v14 = vsub.f32 %v1383_v56, %v1404_v41  ;;  %v10650_v56 = vpack.c.bf16 %v1425_v58, %v1422_v26 }
 0x20a   :  { %8180 = vmatpush3.bf16.msra.mxu1 %v12161_v34  ;;  %v1407_v34 = vand.u32 4294901760, %v1384_v47 }
 0x20b   :  { %8753 = vmatpush3.bf16.msra.mxu0 %v12162_v35  ;;  %8181 = vmatprep.subr.bf16.mxu1 %v12040_v53  ;;  %v4054_v35 = vand.u32 4294901760, %v4037_v46  ;;  %12211 = vst [vmem:[#allocation17_spill] sm:$0xff] %v10650_v56 }
 0x20c   :  { %8754 = vmatprep.subr.bf16.mxu0 %v12040_v53  ;;  %v10609_v20 = vsub.f32 %v1384_v47, %v1407_v34  ;;  %v1428_v47 = vand.u32 4294901760, %v1391_v25 }
 0x20d   :  { %v10611_v5 = vsub.f32 %v4037_v46, %v4054_v35  ;;  %v1393_v46 = vld [vmem:[#allocation5 + $0x160] sm:$0xff] }
 0x20e   :  { %8183 = vmatpush3.bf16.msra.mxu1 %v12163_v2  ;;  %v4057_v2 = vand.u32 4294901760, %v4038_v44  ;;  %v1434_v48 = vand.u32 4294901760, %v1393_v46 }
 0x20f   :  { %8756 = vmatpush3.bf16.msra.mxu0 %v12164_v57  ;;  %8184 = vmatprep.subr.bf16.mxu1 %v12040_v53  ;;  %v1385_v57 = vld [vmem:[#allocation5 + $0x120] sm:$0xff] }
 0x210   :  { %8757 = vmatprep.subr.bf16.mxu0 %v12040_v53  ;;  %v10587_v40 = vpack.c.bf16 %v4057_v2, %v4054_v35  ;;  %v10613_v32 = vsub.f32 %v4038_v44, %v4057_v2  ;;  %v10655_v44 = vpack.c.bf16 %v4075_v37, %v4072_v23  ;;  %v4081_v35 = vand.u32 4294901760, %v4046_v12  ;;  %v10657_v2 = vld [vmem:[#allocation5 + $0x168] sm:$0xff]  ;;  %v10706_v37 = vld [vmem:[#allocation5 + $0x360] sm:$0xff] }
 0x211   :  { %v1437_v10 = vand.u32 4294901760, %v10657_v2 }
 0x212   :  { %8186 = vmatpush3.bf16.msra.mxu1 %v12165_v63  ;;  %v1386_v63 = vld [vmem:[#allocation5 + $0x128] sm:$0xff]  ;;  %12206 = vst [vmem:[#allocation11_spill] sm:$0xff] %v10587_v40  ;;  %12212 = vst [vmem:[#allocation18_spill] sm:$0xff] %v10655_v44 }
 0x213   :  { %8759 = vmatpush3.bf16.msra.mxu0 %v12166_v3  ;;  %8187 = vmatprep.subr.bf16.mxu1 %v12040_v53  ;;  %v4039_v3 = vld [vmem:[#allocation5 + $0x310] sm:$0xff] }
 0x214   :  { %8760 = vmatprep.subr.bf16.mxu0 %v12040_v53  ;;  %v4060_v7 = vand.u32 4294901760, %v4039_v3 }
 0x216   :  { %8189 = vmatpush3.bf16.msra.mxu1 %v12167_v17  ;;  %v4040_v17 = vld [vmem:[#allocation5 + $0x318] sm:$0xff]  ;;  %v10630_v8 = vsub.f32 %v4039_v3, %v4060_v7  ;;  %v10665_v3 = vsub.f32 %v1389_v59, %v1422_v26 }
 0x217   :  { %8762 = vmatpush3.bf16.msra.mxu0 %v12168_v21  ;;  %8190 = vmatprep.subr.bf16.mxu1 %v12040_v53  ;;  %v10581_v21 = vpack.c.bf16 %v1407_v34, %v1404_v41  ;;  %v4063_v28 = vand.u32 4294901760, %v4040_v17  ;;  %v1431_v41 = vand.u32 4294901760, %v1392_v51  ;;  %v4078_v34 = vand.u32 4294901760, %v4045_v42 }
 0x218   :  { %8763 = vmatprep.subr.bf16.mxu0 %v12040_v53 }
 0x219   :  { %12205 = vst [vmem:[#allocation21_spill] sm:$0xff] %v10581_v21  ;;  %v10607_v29 = vpack.c.bf16 %v4063_v28, %v4060_v7  ;;  %v10632_v6 = vsub.f32 %v4040_v17, %v4063_v28  ;;  %v10667_v17 = vsub.f32 %v1390_v50, %v1425_v58  ;;  %v5401_v7 = vsel %vm4034_vm8, 1.0, %v12041_v4 }
 0x21a   :  { %8192 = vmatpush3.bf16.msra.mxu1 %v12169_v11  ;;  %v1410_v11 = vand.u32 4294901760, %v1385_v57  ;;  %v11937_v28 = vand.u32 4294901760, %v10590_v49  ;;  %v10686_v59 = vpack.c.bf16 %v1431_v41, %v1428_v47  ;;  %v10688_v50 = vsub.f32 %v1391_v25, %v1428_v47  ;;  %v10708_v25 = vld [vmem:[#allocation5 + $0x368] sm:$0xff] }
 0x21b   :  { %8765 = vmatpush3.bf16.msra.mxu0 %v12172_v39  ;;  %8193 = vmatprep.subr.bf16.mxu1 %v12040_v53  ;;  %v1413_v39 = vand.u32 4294901760, %v1386_v63  ;;  %12208 = vst [vmem:[#allocation13_spill] sm:$0xff] %v10607_v29  ;;  %v10690_v15 = vpack.c.bf16 %v4081_v35, %v4078_v34  ;;  %v10694_v62 = vsub.f32 %v1392_v51, %v1431_v41 }
 0x21c   :  { %8766 = vmatprep.subr.bf16.mxu0 %v12040_v53  ;;  %v10618_v38 = vsub.f32 %v1385_v57, %v1410_v11  ;;  %v10659_v57 = vld [vmem:[#allocation5 + $0x350] sm:$0xff]  ;;  %12213 = vst [vmem:[#allocation19_spill] sm:$0xff] %v10686_v59  ;;  %v10697_v26 = vsub.f32 %v4045_v42, %v4078_v34  ;;  %v10699_v58 = vsub.f32 %v5401_v7, %v5401_v7 }
 0x21d   :  { %6643 = vmatmul.mubr.msk.f32.vlgmr.msra.gmra.mrb[0].mxu1 %vm52_vm5, %v12156_v0  ;;  %v10623_v36 = vsub.f32 %v1386_v63, %v1413_v39  ;;  %v10661_v63 = vld [vmem:[#allocation5 + $0x358] sm:$0xff]  ;;  %v11940_v30 = vand.u32 4294901760, %v10659_v57  ;;  %12214 = vst [vmem:[#allocation20_spill] sm:$0xff] %v10690_v15  ;;  %v1492_v51 = vsub.f32 %v10590_v49, %v11937_v28  ;;  %v1499_v42 = vsub.f32 %v10592_v61, %v11938_v18  ;;  %v10744_v18 = vld [vmem:[#allocation5 + $0x370] sm:$0xff] }
 0x21e   :  { %8195 = vmatpush3.bf16.msra.mxu1 %v10571_v52  ;;  %6677 = vmatprep.mubr.msk.f32.mxu1 %vm9258_vm2, %v12041_v4  ;;  %v11939_v60 = vand.u32 4294901760, %v10661_v63  ;;  %12215 = vst [vmem:[#allocation22_spill] sm:$0xff] %v10699_v58  ;;  %v10718_v41 = vsub.f32 %v4046_v12, %v4081_v35  ;;  %v10720_v34 = vpack.c.bf16 %v1437_v10, %v1434_v48  ;;  %v10746_v12 = vld [vmem:[#allocation5 + $0x378] sm:$0xff] }
 0x21f   :  { %8768 = vmatpush3.bf16.msra.mxu0 %v12176_v45  ;;  %8196 = vmatprep.subr.bf16.mxu1 %v12040_v53  ;;  %v10599_v45 = vpack.c.bf16 %v1413_v39, %v1410_v11  ;;  %v10669_v11 = vsub.f32 %v5385_v9, %v5385_v9  ;;  %v10672_v39 = vsub.f32 %v4043_v55, %v4072_v23  ;;  %v10703_v23 = vld [vmem:[#allocation5 + $0x178] sm:$0xff]  ;;  %v11947_v9 = vand.u32 4294901760, %v10603_v14 }
 0x220   :  { %8769 = vmatprep.subr.bf16.mxu0 %v12040_v53  ;;  %12216 = vst [vmem:[#allocation23_spill] sm:$0xff] %v10720_v34  ;;  %v10726_v7 = vpack.c.bf16 %v11939_v60, %v11940_v30  ;;  %v10730_v55 = vsub.f32 %v1393_v46, %v1434_v48  ;;  %v1493_v48 = vand.u32 4294901760, %v1492_v51  ;;  %v1500_v47 = vand.u32 4294901760, %v1499_v42 }
 0x221   :  { %12207 = vst [vmem:[#allocation12_spill] sm:$0xff] %v10599_v45  ;;  %v12218_v28 = vand.u32 4294901760, %v10669_v11  ;;  %v1506_v35 = vsub.f32 %v10603_v14, %v11947_v9  ;;  %v12219_v60 = vand.u32 4294901760, %v10609_v20  ;;  %v12221_v9 = vand.u32 4294901760, %v10701_v31 }
 0x222   :  { %8198 = vmatpush3.bf16.msra.mxu1 %v10581_v21  ;;  %7483 = vmatmul.mubr.msk.f32.vlgmr.msra.gmra.mrb[0].mxu0 %vm3370_vm6, %v12156_v0  ;;  %12217 = vst [vmem:[#allocation24_spill] sm:$0xff] %v10726_v7  ;;  %v12225_v42 = vand.u32 4294901760, %v10706_v37  ;;  %v12238_v21 = vand.u32 4294901760, %v10637_v43 }
 0x223   :  { %8771 = vmatpush3.bf16.msra.mxu0 %v10587_v40  ;;  %8199 = vmatprep.subr.bf16.mxu1 %v12040_v53  ;;  %v1481_v46 = vsub.f32 %v10669_v11, %v12218_v28  ;;  %v1513_v30 = vsub.f32 %v10609_v20, %v12219_v60 }
 0x224   :  { %8772 = vmatprep.subr.bf16.mxu0 %v12040_v53  ;;  %7517 = vmatprep.mubr.msk.f32.mxu0 %vm9258_vm2, %v12041_v4 }
 0x225   :  { %v1482_v51 = vand.u32 4294901760, %v1481_v46  ;;  %v12230_v46 = vand.u32 4294901760, %v10623_v36 }
 0x226   :  { %8201 = vmatpush3.bf16.msra.mxu1 %v10599_v45  ;;  %v12229_v45 = vand.u32 4294901760, %v10618_v38 }
 0x227   :  { %8774 = vmatpush3.bf16.msra.mxu0 %v10607_v29  ;;  %8202 = vmatprep.subr.bf16.mxu1 %v12040_v53 }
 0x228   :  { %8775 = vmatprep.subr.bf16.mxu0 %v12040_v53 }
 0x22a   :  { %8204 = vmatpush3.bf16.msra.mxu1 %v10625_v19 }
 0x22b   :  { %8777 = vmatpush3.bf16.msra.mxu0 %v10635_v27  ;;  %8205 = vmatprep.subr.bf16.mxu1 %v12040_v53  ;;  %v12224_v27 = vand.u32 4294901760, %v10613_v32 }
 0x22c   :  { %8778 = vmatprep.subr.bf16.mxu0 %v12040_v53 }
 0x22e   :  { %8207 = vmatpush3.bf16.msra.mxu1 %v10650_v56  ;;  %v12222_v56 = vand.u32 4294901760, %v10703_v23 }
 0x22f   :  { %8780 = vmatpush3.bf16.msra.mxu0 %v10655_v44  ;;  %8208 = vmatprep.subr.bf16.mxu1 %v12040_v53  ;;  %v10762_v44 = vsub.f32 %v10657_v2, %v1437_v10  ;;  %v12226_v2 = vand.u32 4294901760, %v10708_v25 }
 0x230   :  { %8781 = vmatprep.subr.bf16.mxu0 %v12040_v53  ;;  %v10768_v60 = vpack.c.bf16 %v12222_v56, %v12221_v9  ;;  %v12231_v9 = vand.u32 4294901760, %v10630_v8 }
 0x231   :  { %v10780_v10 = vpack.c.bf16 %v12226_v2, %v12225_v42  ;;  %v1520_v42 = vsub.f32 %v10618_v38, %v12229_v45  ;;  %v1527_v2 = vsub.f32 %v10623_v36, %v12230_v46  ;;  %v12233_v45 = vand.u32 4294901760, %v10659_v57 }
 0x232   :  { %8210 = vmatpush3.bf16.msra.mxu1 %v10686_v59  ;;  %12223 = vst [vmem:[#allocation25_spill] sm:$0xff] %v10768_v60  ;;  %v1514_v59 = vand.u32 4294901760, %v1513_v30  ;;  %v4162_v56 = vsub.f32 %v10630_v8, %v12231_v9  ;;  %v12234_v9 = vand.u32 4294901760, %v10744_v18 }
 0x233   :  { %8783 = vmatpush3.bf16.msra.mxu0 %v10690_v15  ;;  %8211 = vmatprep.subr.bf16.mxu1 %v12040_v53  ;;  %v12220_v15 = vand.u32 4294901760, %v10611_v5  ;;  %12227 = vst [vmem:[#allocation26_spill] sm:$0xff] %v10780_v10 }
 0x234   :  { %8784 = vmatprep.subr.bf16.mxu0 %v12040_v53 }
 0x235   :  { %v4148_v28 = vsub.f32 %v10611_v5, %v12220_v15  ;;  %v4155_v15 = vsub.f32 %v10613_v32, %v12224_v27  ;;  %v8218_v27 = vpack.c.bf16 %v1500_v47, %v1493_v48  ;;  %v12232_v47 = vand.u32 4294901760, %v10632_v6 }
 0x236   :  { %8213 = vmatpush3.bf16.msra.mxu1 %v10720_v34  ;;  %v1507_v34 = vand.u32 4294901760, %v1506_v35  ;;  %v12237_v48 = vand.u32 4294901760, %v10661_v63 }
 0x237   :  { %8786 = vmatpush3.bf16.msra.mxu0 %v10726_v7  ;;  %8214 = vmatprep.subr.bf16.mxu1 %v12040_v53  ;;  %v12228_v7 = vand.u32 4294901760, %v10699_v58  ;;  %v4149_v29 = vand.u32 4294901760, %v4148_v28  ;;  %v4156_v30 = vand.u32 4294901760, %v4155_v15  ;;  %v10806_v28 = vsub.f32 %v10659_v57, %v12233_v45 }
 0x238   :  { %8787 = vmatprep.subr.bf16.mxu0 %v12040_v53  ;;  %v12235_v15 = vand.u32 4294901760, %v10746_v12  ;;  %v11972_v45 = vand.u32 4294901760, %v10665_v3  ;;  %v8221_v40 = vpack.c.bf16 %v1514_v59, %v1507_v34  ;;  %v12240_v59 = vand.u32 4294901760, %v10642_v33 }
 0x239   :  { %v4137_v19 = vsub.f32 %v10699_v58, %v12228_v7  ;;  %v4169_v7 = vsub.f32 %v10632_v6, %v12232_v47  ;;  %v4163_v58 = vand.u32 4294901760, %v4162_v56  ;;  %v8794_v47 = vpack.c.bf16 %v4156_v30, %v4149_v29 }
 0x23a   :  { %8216 = vmatpush3.bf16.msra.mxu1 %v10768_v60  ;;  %v10814_v46 = vpack.c.bf16 %v12235_v15, %v12234_v9  ;;  %v10821_v60 = vsub.f32 %v10661_v63, %v12237_v48  ;;  %v1521_v9 = vand.u32 4294901760, %v1520_v42  ;;  %v1528_v15 = vand.u32 4294901760, %v1527_v2 }
 0x23b   :  { %8789 = vmatpush3.bf16.msra.mxu0 %v10780_v10  ;;  %8217 = vmatprep.subr.bf16.mxu1 %v12040_v53  ;;  %v4138_v57 = vand.u32 4294901760, %v4137_v19  ;;  %v11973_v10 = vand.u32 4294901760, %v10667_v17  ;;  %v4170_v35 = vand.u32 4294901760, %v4169_v7  ;;  %v1534_v63 = vsub.f32 %v10637_v43, %v12238_v21 }
 0x23c   :  { %12236 = vst [vmem:[#allocation16_spill] sm:$0xff] %v10814_v46  ;;  %8790 = vmatprep.subr.bf16.mxu0 %v12040_v53  ;;  %v12239_v48 = vand.u32 4294901760, %v10639_v22  ;;  %v4176_v29 = vsub.f32 %v10642_v33, %v12240_v59  ;;  %v12241_v34 = vand.u32 4294901760, %v10648_v1  ;;  %v12242_v7 = vand.u32 4294901760, %v10701_v31 }
 0x23d   :  { %6678 = vmatmul.mubr.f32.vlgmr.msra.gmra.mrb[0].mxu1 %v1482_v51  ;;  %v1555_v42 = vsub.f32 %v10667_v17, %v11973_v10  ;;  %v12243_v59 = vand.u32 4294901760, %v10703_v23  ;;  %v11976_v56 = vand.u32 4294901760, %v10718_v41  ;;  %v8224_v10 = vpack.c.bf16 %v1528_v15, %v1521_v9 }
 0x23e   :  { %8219 = vmatpush3.bf16.msra.mxu1 %v8218_v27  ;;  %v1541_v19 = vsub.f32 %v10639_v22, %v12239_v48  ;;  %6712 = vmatprep.mubr.msk.f32.mxu1 %vm9258_vm2, %v12041_v4  ;;  %v4183_v51 = vsub.f32 %v10648_v1, %v12241_v34  ;;  %v1548_v27 = vsub.f32 %v10665_v3, %v11972_v45  ;;  %v1535_v21 = vand.u32 4294901760, %v1534_v63 }
 0x23f   :  { %8792 = vmatpush3.bf16.msra.mxu0 %v10814_v46  ;;  %8220 = vmatprep.subr.bf16.mxu1 %v12040_v53  ;;  %v10856_v48 = vsub.f32 %v10701_v31, %v12242_v7  ;;  %v10861_v34 = vsub.f32 %v10703_v23, %v12243_v59  ;;  %v8797_v2 = vpack.c.bf16 %v4170_v35, %v4163_v58  ;;  %v4177_v31 = vand.u32 4294901760, %v4176_v29 }
 0x240   :  { %8793 = vmatprep.subr.bf16.mxu0 %v12040_v53  ;;  %v1542_v30 = vand.u32 4294901760, %v1541_v19  ;;  %v4184_v7 = vand.u32 4294901760, %v4183_v51  ;;  %v12244_v46 = vand.u32 4294901760, %v10672_v39  ;;  %v12245_v59 = vand.u32 4294901760, %v10684_v54 }
 0x241   :  { %v12246_v58 = vand.u32 4294901760, %v10688_v50  ;;  %v4211_v63 = vsub.f32 %v10718_v41, %v11976_v56  ;;  %v12249_v51 = vand.u32 4294901760, %v10706_v37 }
 0x242   :  { %8222 = vmatpush3.bf16.msra.mxu1 %v8221_v40  ;;  %7518 = vmatmul.mubr.f32.vlgmr.msra.gmra.mrb[0].mxu0 %v4138_v57  ;;  %v4190_v23 = vsub.f32 %v10672_v39, %v12244_v46  ;;  %v4197_v45 = vsub.f32 %v10684_v54, %v12245_v59  ;;  %v1549_v40 = vand.u32 4294901760, %v1548_v27  ;;  %v1556_v57 = vand.u32 4294901760, %v1555_v42 }
 0x243   :  { %8795 = vmatpush3.bf16.msra.mxu0 %v8794_v47  ;;  %8223 = vmatprep.subr.bf16.mxu1 %v12040_v53  ;;  %v1562_v35 = vsub.f32 %v10688_v50, %v12246_v58  ;;  %v12247_v47 = vand.u32 4294901760, %v10694_v62  ;;  %v12248_v46 = vand.u32 4294901760, %v10697_v26  ;;  %v10892_v27 = vsub.f32 %v10706_v37, %v12249_v51 }
 0x244   :  { %8796 = vmatprep.subr.bf16.mxu0 %v12040_v53  ;;  %7552 = vmatprep.mubr.msk.f32.mxu0 %vm9258_vm2, %v12041_v4  ;;  %v8227_v42 = vpack.c.bf16 %v1542_v30, %v1535_v21  ;;  %v8800_v56 = vpack.c.bf16 %v4184_v7, %v4177_v31  ;;  %v4191_v29 = vand.u32 4294901760, %v4190_v23  ;;  %v4198_v19 = vand.u32 4294901760, %v4197_v45 }
 0x245   :  { %v1569_v9 = vsub.f32 %v10694_v62, %v12247_v47  ;;  %v4204_v15 = vsub.f32 %v10697_v26, %v12248_v46  ;;  %v12250_v47 = vand.u32 4294901760, %v10708_v25  ;;  %v12251_v37 = vand.u32 4294901760, %v10744_v18 }
 0x246   :  { %8225 = vmatpush3.bf16.msra.mxu1 %v8224_v10  ;;  %v8230_v21 = vpack.c.bf16 %v1556_v57, %v1549_v40  ;;  %v1563_v30 = vand.u32 4294901760, %v1562_v35  ;;  %v4212_v59 = vand.u32 4294901760, %v4211_v63  ;;  %v12253_v31 = vand.u32 4294901760, %v10762_v44 }
 0x247   :  { %v10899_v46 = vsub.f32 %v10708_v25, %v12250_v47  ;;  %8798 = vmatpush3.bf16.msra.mxu0 %v8797_v2  ;;  %8226 = vmatprep.subr.bf16.mxu1 %v12040_v53  ;;  %v10905_v10 = vsub.f32 %v10744_v18, %v12251_v37  ;;  %v1570_v51 = vand.u32 4294901760, %v1569_v9  ;;  %v4205_v58 = vand.u32 4294901760, %v4204_v15 }
 0x248   :  { %8799 = vmatprep.subr.bf16.mxu0 %v12040_v53  ;;  %v12252_v25 = vand.u32 4294901760, %v10730_v55  ;;  %v1583_v45 = vsub.f32 %v10762_v44, %v12253_v31  ;;  %v12254_v7 = vand.u32 4294901760, %v10806_v28  ;;  %v12255_v23 = vand.u32 4294901760, %v10821_v60 }
 0x249   :  { %v1589_v57 = vand.u32 4294901760, %v10856_v48  ;;  %v12256_v9 = vand.u32 4294901760, %v10746_v12  ;;  %v8803_v63 = vpack.c.bf16 %v4198_v19, %v4191_v29  ;;  %v11979_v47 = vand.u32 4294901760, %v10899_v46 }
 0x24a   :  { %v1576_v2 = vsub.f32 %v10730_v55, %v12252_v25  ;;  %8228 = vmatpush3.bf16.msra.mxu1 %v8227_v42  ;;  %v4218_v18 = vsub.f32 %v10806_v28, %v12254_v7  ;;  %v4225_v40 = vsub.f32 %v10821_v60, %v12255_v23  ;;  %v4231_v42 = vand.u32 4294901760, %v10892_v27 }
 0x24b   :  { %v10925_v15 = vsub.f32 %v10746_v12, %v12256_v9  ;;  %8801 = vmatpush3.bf16.msra.mxu0 %v8800_v56  ;;  %8229 = vmatprep.subr.bf16.mxu1 %v12040_v53  ;;  %v8233_v37 = vpack.c.bf16 %v1570_v51, %v1563_v30  ;;  %v8806_v25 = vpack.c.bf16 %v4212_v59, %v4205_v58  ;;  %v1584_v7 = vand.u32 4294901760, %v1583_v45 }
 0x24c   :  { %8802 = vmatprep.subr.bf16.mxu0 %v12040_v53  ;;  %v1577_v31 = vand.u32 4294901760, %v1576_v2  ;;  %v4219_v23 = vand.u32 4294901760, %v4218_v18  ;;  %v4226_v35 = vand.u32 4294901760, %v4225_v40  ;;  %v1590_v12 = vsub.f32 %v10856_v48, %v1589_v57 }
 0x24d   :  { %v12257_v56 = vand.u32 4294901760, %v10861_v34  ;;  %v4232_v29 = vsub.f32 %v10892_v27, %v4231_v42  ;;  %v4239_v59 = vsub.f32 %v10899_v46, %v11979_v47  ;;  %v11978_v58 = vand.u32 4294901760, %v10905_v10 }
 0x24e   :  { %8231 = vmatpush3.bf16.msra.mxu1 %v8230_v21  ;;  %v11977_v21 = vand.u32 4294901760, %v10925_v15  ;;  %v8236_v30 = vpack.c.bf16 %v1584_v7, %v1577_v31  ;;  %v8809_v51 = vpack.c.bf16 %v4226_v35, %v4219_v23  ;;  %v1591_v2 = vand.u32 4294901760, %v1590_v12 }
 0x24f   :  { %v1597_v19 = vsub.f32 %v10861_v34, %v12257_v56  ;;  %8804 = vmatpush3.bf16.msra.mxu0 %v8803_v63  ;;  %8232 = vmatprep.subr.bf16.mxu1 %v12040_v53  ;;  %v4233_v18 = vand.u32 4294901760, %v4232_v29  ;;  %v4240_v40 = vand.u32 4294901760, %v4239_v59  ;;  %v4246_v9 = vsub.f32 %v10905_v10, %v11978_v58 }
 0x250   :  { %8805 = vmatprep.subr.bf16.mxu0 %v12040_v53  ;;  %v4253_v63 = vsub.f32 %v10925_v15, %v11977_v21  ;;  %v8242_v7 = vpack.c.bf16 %v10592_v61, %v10590_v49  ;;  %v8245_v12 = vpack.c.bf16 %v10609_v20, %v10603_v14  ;;  %v8818_v56 = vpack.c.bf16 %v10613_v32, %v10611_v5 }
 0x251   :  { %v1598_v45 = vand.u32 4294901760, %v1597_v19  ;;  %v8812_v35 = vpack.c.bf16 %v4240_v40, %v4233_v18  ;;  %v8248_v19 = vpack.c.bf16 %v10623_v36, %v10618_v38  ;;  %v8821_v29 = vpack.c.bf16 %v10632_v6, %v10630_v8 }
 0x252   :  { %8234 = vmatpush3.bf16.msra.mxu1 %v8233_v37  ;;  %v4254_v31 = vand.u32 4294901760, %v4253_v63  ;;  %v8251_v59 = vpack.c.bf16 %v10639_v22, %v10637_v43  ;;  %v8830_v18 = vpack.c.bf16 %v10718_v41, %v10697_v26  ;;  %v8260_v40 = vpack.c.bf16 %v10762_v44, %v10730_v55 }
 0x253   :  { %8807 = vmatpush3.bf16.msra.mxu0 %v8806_v25  ;;  %8235 = vmatprep.subr.bf16.mxu1 %v12040_v53  ;;  %v8239_v37 = vpack.c.bf16 %v1598_v45, %v1591_v2  ;;  %v4247_v25 = vand.u32 4294901760, %v4246_v9  ;;  %v8827_v2 = vpack.c.bf16 %v10684_v54, %v10672_v39  ;;  %v8257_v45 = vpack.c.bf16 %v10694_v62, %v10688_v50 }
 0x254   :  { %8808 = vmatprep.subr.bf16.mxu0 %v12040_v53  ;;  %v8833_v9 = vpack.c.bf16 %v10821_v60, %v10806_v28  ;;  %v8263_v63 = vpack.c.bf16 %v10861_v34, %v10856_v48  ;;  %v12276_v21 = vand.u32 4294901760, %v10603_v14  ;;  %v12277_v58 = vand.u32 4294901760, %v10609_v20 }
 0x255   :  { %v8815_v23 = vpack.c.bf16 %v4254_v31, %v4247_v25  ;;  %v12258_v25 = vld [vmem:[#allocation21_spill] sm:$0xff]  ;;  %v12259_v31 = vld [vmem:[#allocation22_spill] sm:$0xff]  ;;  %v12282_v20 = vand.u32 4294901760, %v10618_v38  ;;  %v12287_v38 = vand.u32 4294901760, %v10639_v22  ;;  %v12293_v22 = vand.u32 4294901760, %v10684_v54 }
 0x256   :  { %8237 = vmatpush3.bf16.msra.mxu1 %v8236_v30  ;;  %v8824_v30 = vpack.c.bf16 %v10648_v1, %v10642_v33  ;;  %v8293_v47 = vpack.c.bf16 %v12277_v58, %v12276_v21  ;;  %v12281_v14 = vand.u32 4294901760, %v12259_v31  ;;  %v12284_v21 = vand.u32 4294901760, %v10630_v8 }
 0x257   :  { %8810 = vmatpush3.bf16.msra.mxu0 %v8809_v51  ;;  %8238 = vmatprep.subr.bf16.mxu1 %v12040_v53  ;;  %v8254_v51 = vpack.c.bf16 %v10667_v17, %v10665_v3  ;;  %v12289_v8 = vand.u32 4294901760, %v10648_v1  ;;  %v12295_v1 = vand.u32 4294901760, %v10694_v62  ;;  %v12299_v54 = vand.u32 4294901760, %v10762_v44 }
 0x258   :  { %8811 = vmatprep.subr.bf16.mxu0 %v12040_v53  ;;  %v12301_v62 = vand.u32 4294901760, %v10821_v60  ;;  %v12303_v44 = vand.u32 4294901760, %v10899_v46  ;;  %v12304_v60 = vand.u32 4294901760, %v10905_v10 }
 0x25a   :  { %8240 = vmatpush3.bf16.msra.mxu1 %v8239_v37  ;;  %v8836_v37 = vpack.c.bf16 %v10899_v46, %v10892_v27 }
 0x25b   :  { %8813 = vmatpush3.bf16.msra.mxu0 %v8812_v35  ;;  %8241 = vmatprep.subr.bf16.mxu1 %v12040_v53  ;;  %v8839_v35 = vpack.c.bf16 %v10925_v15, %v10905_v10  ;;  %v2047_v10 = vld [vmem:[#allocation5 + $0x190] sm:$0xff] }
 0x25c   :  { %8814 = vmatprep.subr.bf16.mxu0 %v12040_v53 }
 0x25d   :  { %6713 = vmatmul.mubr.msk.f32.vlgmr.msra.gmra.mrb[0].mxu1 %vm1378_vm7, %v12156_v0 }
 0x25e   :  { %8243 = vmatpush3.bf16.msra.mxu1 %v8242_v7  ;;  %6747 = vmatprep.mubr.msk.f32.mxu1 %vm9258_vm2, %v12041_v4  ;;  %v12260_v7 = vld [vmem:[#allocation11_spill] sm:$0xff] }
 0x25f   :  { %8816 = vmatpush3.bf16.msra.mxu0 %v8815_v23  ;;  %8244 = vmatprep.subr.bf16.mxu1 %v12040_v53  ;;  %v12261_v23 = vld [vmem:[#allocation12_spill] sm:$0xff] }
 0x260   :  { %8817 = vmatprep.subr.bf16.mxu0 %v12040_v53 }
 0x262   :  { %8246 = vmatpush3.bf16.msra.mxu1 %v8245_v12  ;;  %7553 = vmatmul.mubr.msk.f32.vlgmr.msra.gmra.mrb[0].mxu0 %vm4034_vm8, %v12156_v0  ;;  %v12262_v12 = vld [vmem:[#allocation13_spill] sm:$0xff] }
 0x263   :  { %8819 = vmatpush3.bf16.msra.mxu0 %v8818_v56  ;;  %8247 = vmatprep.subr.bf16.mxu1 %v12040_v53  ;;  %v12263_v56 = vld [vmem:[#allocation14_spill] sm:$0xff] }
 0x264   :  { %8820 = vmatprep.subr.bf16.mxu0 %v12040_v53  ;;  %7587 = vmatprep.mubr.msk.f32.mxu0 %vm9258_vm2, %v12041_v4 }
 0x266   :  { %8249 = vmatpush3.bf16.msra.mxu1 %v8248_v19  ;;  %v12264_v19 = vld [vmem:[#allocation15_spill] sm:$0xff] }
 0x267   :  { %8822 = vmatpush3.bf16.msra.mxu0 %v8821_v29  ;;  %8250 = vmatprep.subr.bf16.mxu1 %v12040_v53  ;;  %v12265_v29 = vld [vmem:[#allocation17_spill] sm:$0xff] }
 0x268   :  { %8823 = vmatprep.subr.bf16.mxu0 %v12040_v53 }
 0x26a   :  { %8252 = vmatpush3.bf16.msra.mxu1 %v8251_v59  ;;  %v12266_v59 = vld [vmem:[#allocation18_spill] sm:$0xff] }
 0x26b   :  { %8825 = vmatpush3.bf16.msra.mxu0 %v8824_v30  ;;  %8253 = vmatprep.subr.bf16.mxu1 %v12040_v53  ;;  %v12267_v30 = vld [vmem:[#allocation19_spill] sm:$0xff] }
 0x26c   :  { %8826 = vmatprep.subr.bf16.mxu0 %v12040_v53 }
 0x26e   :  { %8255 = vmatpush3.bf16.msra.mxu1 %v8254_v51  ;;  %v12268_v51 = vld [vmem:[#allocation20_spill] sm:$0xff] }
 0x26f   :  { %8828 = vmatpush3.bf16.msra.mxu0 %v8827_v2  ;;  %8256 = vmatprep.subr.bf16.mxu1 %v12040_v53  ;;  %v12269_v2 = vld [vmem:[#allocation23_spill] sm:$0xff] }
 0x270   :  { %8829 = vmatprep.subr.bf16.mxu0 %v12040_v53 }
 0x272   :  { %8258 = vmatpush3.bf16.msra.mxu1 %v8257_v45  ;;  %v12270_v45 = vld [vmem:[#allocation24_spill] sm:$0xff] }
 0x273   :  { %8831 = vmatpush3.bf16.msra.mxu0 %v8830_v18  ;;  %8259 = vmatprep.subr.bf16.mxu1 %v12040_v53  ;;  %v12271_v18 = vld [vmem:[#allocation25_spill] sm:$0xff] }
 0x274   :  { %8832 = vmatprep.subr.bf16.mxu0 %v12040_v53 }
 0x276   :  { %8261 = vmatpush3.bf16.msra.mxu1 %v8260_v40  ;;  %v12272_v40 = vand.u32 4294901760, %v10590_v49  ;;  %v12278_v49 = vld [vmem:[#allocation16_spill] sm:$0xff] }
 0x277   :  { %8834 = vmatpush3.bf16.msra.mxu0 %v8833_v9  ;;  %8262 = vmatprep.subr.bf16.mxu1 %v12040_v53  ;;  %v12273_v9 = vand.u32 4294901760, %v10592_v61  ;;  %v12279_v61 = vand.u32 4294901760, %v10611_v5  ;;  %v12285_v5 = vand.u32 4294901760, %v10632_v6 }
 0x278   :  { %8835 = vmatprep.subr.bf16.mxu0 %v12040_v53 }
 0x27a   :  { %8264 = vmatpush3.bf16.msra.mxu1 %v8263_v63  ;;  %v8290_v63 = vpack.c.bf16 %v12273_v9, %v12272_v40  ;;  %v12280_v40 = vand.u32 4294901760, %v10613_v32  ;;  %v8869_v32 = vpack.c.bf16 %v12285_v5, %v12284_v21  ;;  %v4705_v5 = vld [vmem:[#allocation5 + $0x3a0] sm:$0xff] }
 0x27b   :  { %8837 = vmatpush3.bf16.msra.mxu0 %v8836_v37  ;;  %8265 = vmatprep.subr.bf16.mxu1 %v12040_v53  ;;  %v12274_v37 = vld [vmem:[#allocation26_spill] sm:$0xff] }
 0x27c   :  { %8838 = vmatprep.subr.bf16.mxu0 %v12040_v53  ;;  %v8866_v9 = vpack.c.bf16 %v12280_v40, %v12279_v61 }
 0x27d   :  { %6748 = vmatmul.mubr.f32.vlgmr.msra.gmra.mrb[0].mxu1 %v10669_v11 }
 0x27e   :  { %8267 = vmatpush3.bf16.msra.mxu1 %v10571_v52  ;;  %6782 = vmatprep.mubr.msk.f32.mxu1 %vm9258_vm2, %v12041_v4 }
 0x27f   :  { %8840 = vmatpush3.bf16.msra.mxu0 %v8839_v35  ;;  %8268 = vmatprep.subr.bf16.mxu1 %v12040_v53  ;;  %v12275_v35 = vand.u32 4294901760, %v10669_v11  ;;  %v12283_v11 = vand.u32 4294901760, %v10623_v36 }
 0x280   :  { %8841 = vmatprep.subr.bf16.mxu0 %v12040_v53 }
 0x281   :  { %v8296_v58 = vpack.c.bf16 %v12283_v11, %v12282_v20 }
 0x282   :  { %8270 = vmatpush3.bf16.msra.mxu1 %v12258_v25  ;;  %7588 = vmatmul.mubr.f32.vlgmr.msra.gmra.mrb[0].mxu0 %v12259_v31  ;;  %v12288_v31 = vand.u32 4294901760, %v10642_v33  ;;  %v12294_v33 = vand.u32 4294901760, %v10688_v50  ;;  %v12300_v50 = vand.u32 4294901760, %v10806_v28  ;;  %v12305_v28 = vand.u32 4294901760, %v10925_v15  ;;  %v4701_v15 = vld [vmem:[#allocation5 + $0x380] sm:$0xff] }
 0x283   :  { %8843 = vmatpush3.bf16.msra.mxu0 %v12260_v7  ;;  %8271 = vmatprep.subr.bf16.mxu1 %v12040_v53 }
 0x284   :  { %8844 = vmatprep.subr.bf16.mxu0 %v12040_v53  ;;  %7622 = vmatprep.mubr.msk.f32.mxu0 %vm9258_vm2, %v12041_v4  ;;  %v8872_v6 = vpack.c.bf16 %v12289_v8, %v12288_v31  ;;  %v8881_v11 = vpack.c.bf16 %v12301_v62, %v12300_v50  ;;  %v8887_v48 = vpack.c.bf16 %v12305_v28, %v12304_v60  ;;  %v2055_v62 = vld [vmem:[#allocation5 + $0x1d0] sm:$0xff]  ;;  %v4709_v60 = vld [vmem:[#allocation5 + $0x3c0] sm:$0xff]  ;;  %v4710_v28 = vld [vmem:[#allocation5 + $0x3c8] sm:$0xff] }
 0x286   :  { %8273 = vmatpush3.bf16.msra.mxu1 %v12261_v23 }
 0x287   :  { %8846 = vmatpush3.bf16.msra.mxu0 %v12262_v12  ;;  %8274 = vmatprep.subr.bf16.mxu1 %v12040_v53 }
 0x288   :  { %8847 = vmatprep.subr.bf16.mxu0 %v12040_v53 }
 0x28a   :  { %8276 = vmatpush3.bf16.msra.mxu1 %v12263_v56 }
 0x28b   :  { %8849 = vmatpush3.bf16.msra.mxu0 %v12264_v19  ;;  %8277 = vmatprep.subr.bf16.mxu1 %v12040_v53 }
 0x28c   :  { %8850 = vmatprep.subr.bf16.mxu0 %v12040_v53 }
 0x28e   :  { %8279 = vmatpush3.bf16.msra.mxu1 %v12265_v29 }
 0x28f   :  { %8852 = vmatpush3.bf16.msra.mxu0 %v12266_v59  ;;  %8280 = vmatprep.subr.bf16.mxu1 %v12040_v53 }
 0x290   :  { %8853 = vmatprep.subr.bf16.mxu0 %v12040_v53 }
 0x292   :  { %8282 = vmatpush3.bf16.msra.mxu1 %v12267_v30 }
 0x293   :  { %8855 = vmatpush3.bf16.msra.mxu0 %v12268_v51  ;;  %8283 = vmatprep.subr.bf16.mxu1 %v12040_v53 }
 0x294   :  { %8856 = vmatprep.subr.bf16.mxu0 %v12040_v53 }
 0x296   :  { %8285 = vmatpush3.bf16.msra.mxu1 %v12269_v2 }
 0x297   :  { %8858 = vmatpush3.bf16.msra.mxu0 %v12270_v45  ;;  %8286 = vmatprep.subr.bf16.mxu1 %v12040_v53 }
 0x298   :  { %8859 = vmatprep.subr.bf16.mxu0 %v12040_v53 }
 0x29a   :  { %8288 = vmatpush3.bf16.msra.mxu1 %v12271_v18 }
 0x29b   :  { %8861 = vmatpush3.bf16.msra.mxu0 %v12274_v37  ;;  %8289 = vmatprep.subr.bf16.mxu1 %v12040_v53 }
 0x29c   :  { %8862 = vmatprep.subr.bf16.mxu0 %v12040_v53 }
 0x29d   :  { %6783 = vmatmul.mubr.f32.vlgmr.msra.gmra.mrb[0].mxu1 %v12275_v35  ;;  %v12291_v35 = vand.u32 4294901760, %v10667_v17  ;;  %v12297_v17 = vand.u32 4294901760, %v10718_v41 }
 0x29e   :  { %8291 = vmatpush3.bf16.msra.mxu1 %v8290_v63  ;;  %6817 = vmatprep.mubr.msk.f32.mxu1 %vm9258_vm2, %v12041_v4  ;;  %v12290_v63 = vand.u32 4294901760, %v10665_v3  ;;  %v12296_v3 = vand.u32 4294901760, %v10697_v26  ;;  %v12302_v26 = vand.u32 4294901760, %v10861_v34  ;;  %v2046_v34 = vld [vmem:[#allocation5 + $0x188] sm:$0xff] }
 0x29f   :  { %8864 = vmatpush3.bf16.msra.mxu0 %v12278_v49  ;;  %8292 = vmatprep.subr.bf16.mxu1 %v12040_v53  ;;  %v2065_v46 = vand.u32 4294901760, %v2046_v34 }
 0x2a0   :  { %8865 = vmatprep.subr.bf16.mxu0 %v12040_v53  ;;  %v8302_v61 = vpack.c.bf16 %v12291_v35, %v12290_v63  ;;  %v8311_v41 = vpack.c.bf16 %v12302_v26, %v1589_v57  ;;  %v2048_v57 = vld [vmem:[#allocation5 + $0x198] sm:$0xff] }
 0x2a1   :  { %v11208_v8 = vsub.f32 %v2046_v34, %v2065_v46 }
 0x2a2   :  { %8294 = vmatpush3.bf16.msra.mxu1 %v8293_v47  ;;  %7623 = vmatmul.mubr.f32.vlgmr.msra.gmra.mrb[0].mxu0 %v12281_v14  ;;  %v12286_v47 = vand.u32 4294901760, %v10637_v43  ;;  %v12292_v43 = vand.u32 4294901760, %v10672_v39  ;;  %v8878_v14 = vpack.c.bf16 %v12297_v17, %v12296_v3  ;;  %v12298_v39 = vand.u32 4294901760, %v10730_v55 }
 0x2a3   :  { %8867 = vmatpush3.bf16.msra.mxu0 %v8866_v9  ;;  %8295 = vmatprep.subr.bf16.mxu1 %v12040_v53  ;;  %v8305_v9 = vpack.c.bf16 %v12295_v1, %v12294_v33  ;;  %v8884_v55 = vpack.c.bf16 %v12303_v44, %v4231_v42  ;;  %v4702_v42 = vld [vmem:[#allocation5 + $0x388] sm:$0xff]  ;;  %v4708_v33 = vld [vmem:[#allocation5 + $0x3b8] sm:$0xff] }
 0x2a4   :  { %8868 = vmatprep.subr.bf16.mxu0 %v12040_v53  ;;  %7657 = vmatprep.mubr.msk.f32.mxu0 %vm9258_vm2, %v12041_v4  ;;  %v8299_v36 = vpack.c.bf16 %v12287_v38, %v12286_v47  ;;  %v8875_v40 = vpack.c.bf16 %v12293_v22, %v12292_v43  ;;  %v8308_v20 = vpack.c.bf16 %v12299_v54, %v12298_v39  ;;  %v11204_v47 = vpop.permute.xlu1 %2040  ;;  %v2054_v22 = vld [vmem:[#allocation5 + $0x1c8] sm:$0xff]  ;;  %v4739_v50 = vand.u32 4294901760, %v4708_v33 }
 0x2a5   :  { %vm2042_vm9 = vcmp.eq.s32.totalorder %v9646_v13, %v11204_v47  ;;  %v2089_v54 = vand.u32 4294901760, %v2054_v22 }
 0x2a6   :  { %8297 = vmatpush3.bf16.msra.mxu1 %v8296_v58 }
 0x2a7   :  { %8870 = vmatpush3.bf16.msra.mxu0 %v8869_v32  ;;  %8298 = vmatprep.subr.bf16.mxu1 %v12040_v53  ;;  %v4706_v32 = vld [vmem:[#allocation5 + $0x3a8] sm:$0xff] }
 0x2a8   :  { %8871 = vmatprep.subr.bf16.mxu0 %v12040_v53  ;;  %v4733_v43 = vand.u32 4294901760, %v4706_v32  ;;  %v11241_v26 = vpop.permute.xlu1 %4696 }
 0x2a9   :  { %vm4698_vm10 = vcmp.eq.s32.totalorder %v9646_v13, %v11241_v26 }
 0x2aa   :  { %8300 = vmatpush3.bf16.msra.mxu1 %v8299_v36 }
 0x2ab   :  { %8873 = vmatpush3.bf16.msra.mxu0 %v8872_v6  ;;  %8301 = vmatprep.subr.bf16.mxu1 %v12040_v53  ;;  %v2053_v6 = vld [vmem:[#allocation5 + $0x1c0] sm:$0xff] }
 0x2ac   :  { %8874 = vmatprep.subr.bf16.mxu0 %v12040_v53  ;;  %v2086_v39 = vand.u32 4294901760, %v2053_v6 }
 0x2ae   :  { %8303 = vmatpush3.bf16.msra.mxu1 %v8302_v61  ;;  %v4730_v61 = vand.u32 4294901760, %v4705_v5 }
 0x2af   :  { %8876 = vmatpush3.bf16.msra.mxu0 %v8875_v40  ;;  %8304 = vmatprep.subr.bf16.mxu1 %v12040_v53  ;;  %v4707_v40 = vld [vmem:[#allocation5 + $0x3b0] sm:$0xff] }
 0x2b0   :  { %8877 = vmatprep.subr.bf16.mxu0 %v12040_v53  ;;  %v11256_v34 = vsub.f32 %v4705_v5, %v4730_v61 }
 0x2b2   :  { %8306 = vmatpush3.bf16.msra.mxu1 %v8305_v9 }
 0x2b3   :  { %8879 = vmatpush3.bf16.msra.mxu0 %v8878_v14  ;;  %8307 = vmatprep.subr.bf16.mxu1 %v12040_v53 }
 0x2b4   :  { %8880 = vmatprep.subr.bf16.mxu0 %v12040_v53 }
 0x2b6   :  { %8309 = vmatpush3.bf16.msra.mxu1 %v8308_v20  ;;  %v4736_v20 = vand.u32 4294901760, %v4707_v40 }
 0x2b7   :  { %8882 = vmatpush3.bf16.msra.mxu0 %v8881_v11  ;;  %8310 = vmatprep.subr.bf16.mxu1 %v12040_v53  ;;  %v2056_v11 = vld [vmem:[#allocation5 + $0x1d8] sm:$0xff] }
 0x2b8   :  { %8883 = vmatprep.subr.bf16.mxu0 %v12040_v53 }
 0x2ba   :  { %8312 = vmatpush3.bf16.msra.mxu1 %v8311_v41 }
 0x2bb   :  { %8885 = vmatpush3.bf16.msra.mxu0 %v8884_v55  ;;  %8313 = vmatprep.subr.bf16.mxu1 %v12040_v53  ;;  %v11249_v55 = vpack.c.bf16 %v4733_v43, %v4730_v61 }
 0x2bc   :  { %8886 = vmatprep.subr.bf16.mxu0 %v12040_v53 }
 0x2bd   :  { %6818 = vmatmul.mubr.msk.f32.vlgmr.msra.gmra.mrb[0].mxu1 %vm1378_vm7, %v12156_v0  ;;  %12311 = vst [vmem:[#allocation14_spill] sm:$0xff] %v11249_v55 }
 0x2be   :  { %8315 = vmatpush3.bf16.msra.mxu1 %v10571_v52  ;;  %6852 = vmatprep.mubr.msk.f32.mxu1 %vm9258_vm2, %v12041_v4  ;;  %v2045_v52 = vld [vmem:[#allocation5 + $0x180] sm:$0xff] }
 0x2bf   :  { %8888 = vmatpush3.bf16.msra.mxu0 %v8887_v48  ;;  %8316 = vmatprep.subr.bf16.mxu1 %v12040_v53  ;;  %v2062_v27 = vand.u32 4294901760, %v2045_v52 }
 0x2c0   :  { %8889 = vmatprep.subr.bf16.mxu0 %v12040_v53 }
 0x2c1   :  { %v11206_v31 = vsub.f32 %v2045_v52, %v2062_v27 }
 0x2c2   :  { %8318 = vmatpush3.bf16.msra.mxu1 %v12258_v25  ;;  %7658 = vmatmul.mubr.msk.f32.vlgmr.msra.gmra.mrb[0].mxu0 %vm4034_vm8, %v12156_v0  ;;  %v11185_v25 = vpack.c.bf16 %v2065_v46, %v2062_v27  ;;  %v5389_v27 = vsel %vm2042_vm9, 1.0, %v12041_v4  ;;  %v11262_v46 = vsub.f32 %v4706_v32, %v4733_v43 }
 0x2c3   :  { %8891 = vmatpush3.bf16.msra.mxu0 %v12260_v7  ;;  %8319 = vmatprep.subr.bf16.mxu1 %v12040_v53  ;;  %v2068_v7 = vand.u32 4294901760, %v2047_v10 }
 0x2c4   :  { %8892 = vmatprep.subr.bf16.mxu0 %v12040_v53  ;;  %7692 = vmatprep.mubr.msk.f32.mxu0 %vm9258_vm2, %v12041_v4 }
 0x2c5   :  { %v11217_v63 = vsub.f32 %v2047_v10, %v2068_v7  ;;  %v2092_v10 = vand.u32 4294901760, %v2055_v62 }
 0x2c6   :  { %8321 = vmatpush3.bf16.msra.mxu1 %v12261_v23  ;;  %v2071_v23 = vand.u32 4294901760, %v2048_v57 }
 0x2c7   :  { %8894 = vmatpush3.bf16.msra.mxu0 %v12262_v12  ;;  %8322 = vmatprep.subr.bf16.mxu1 %v12040_v53  ;;  %v4718_v12 = vand.u32 4294901760, %v4701_v15 }
 0x2c8   :  { %8895 = vmatprep.subr.bf16.mxu0 %v12040_v53  ;;  %v11223_v1 = vsub.f32 %v2048_v57, %v2071_v23  ;;  %v2095_v57 = vand.u32 4294901760, %v2056_v11 }
 0x2c9   :  { %v11225_v24 = vsub.f32 %v4701_v15, %v4718_v12  ;;  %v11267_v15 = vpack.c.bf16 %v2089_v54, %v2086_v39 }
 0x2ca   :  { %8324 = vmatpush3.bf16.msra.mxu1 %v12263_v56  ;;  %v4721_v56 = vand.u32 4294901760, %v4702_v42  ;;  %v11296_v5 = vpack.c.bf16 %v2095_v57, %v2092_v10 }
 0x2cb   :  { %8897 = vmatpush3.bf16.msra.mxu0 %v12264_v19  ;;  %8325 = vmatprep.subr.bf16.mxu1 %v12040_v53  ;;  %v2049_v19 = vld [vmem:[#allocation5 + $0x1a0] sm:$0xff]  ;;  %12312 = vst [vmem:[#allocation15_spill] sm:$0xff] %v11267_v15 }
 0x2cc   :  { %8898 = vmatprep.subr.bf16.mxu0 %v12040_v53  ;;  %v11201_v58 = vpack.c.bf16 %v4721_v56, %v4718_v12  ;;  %v11227_v9 = vsub.f32 %v4702_v42, %v4721_v56  ;;  %v11269_v42 = vpack.c.bf16 %v4739_v50, %v4736_v20  ;;  %v2057_v12 = vld [vmem:[#allocation5 + $0x1e0] sm:$0xff]  ;;  %v11271_v56 = vld [vmem:[#allocation5 + $0x1e8] sm:$0xff]  ;;  %12314 = vst [vmem:[#allocation18_spill] sm:$0xff] %v11296_v5 }
 0x2cd   :  { %v2098_v32 = vand.u32 4294901760, %v2057_v12 }
 0x2ce   :  { %8327 = vmatpush3.bf16.msra.mxu1 %v12265_v29  ;;  %v2050_v29 = vld [vmem:[#allocation5 + $0x1a8] sm:$0xff]  ;;  %12307 = vst [vmem:[#allocation22_spill] sm:$0xff] %v11201_v58  ;;  %12313 = vst [vmem:[#allocation17_spill] sm:$0xff] %v11269_v42 }
 0x2cf   :  { %8900 = vmatpush3.bf16.msra.mxu0 %v12266_v59  ;;  %8328 = vmatprep.subr.bf16.mxu1 %v12040_v53  ;;  %v4703_v59 = vld [vmem:[#allocation5 + $0x390] sm:$0xff]  ;;  %v11339_v43 = vsub.f32 %v2057_v12, %v2098_v32 }
 0x2d0   :  { %8901 = vmatprep.subr.bf16.mxu0 %v12040_v53  ;;  %v4724_v21 = vand.u32 4294901760, %v4703_v59 }
 0x2d2   :  { %8330 = vmatpush3.bf16.msra.mxu1 %v12267_v30  ;;  %v4704_v30 = vld [vmem:[#allocation5 + $0x398] sm:$0xff]  ;;  %v11244_v41 = vsub.f32 %v4703_v59, %v4724_v21  ;;  %v11279_v59 = vsub.f32 %v5389_v27, %v5389_v27 }
 0x2d3   :  { %8903 = vmatpush3.bf16.msra.mxu0 %v12268_v51  ;;  %8331 = vmatprep.subr.bf16.mxu1 %v12040_v53  ;;  %v11195_v51 = vpack.c.bf16 %v2071_v23, %v2068_v7  ;;  %v4727_v16 = vand.u32 4294901760, %v4704_v30  ;;  %v4742_v7 = vand.u32 4294901760, %v4709_v60  ;;  %v4745_v23 = vand.u32 4294901760, %v4710_v28 }
 0x2d4   :  { %8904 = vmatprep.subr.bf16.mxu0 %v12040_v53 }
 0x2d5   :  { %12306 = vst [vmem:[#allocation21_spill] sm:$0xff] %v11195_v51  ;;  %v11221_v35 = vpack.c.bf16 %v4727_v16, %v4724_v21  ;;  %v11246_v44 = vsub.f32 %v4704_v30, %v4727_v16  ;;  %v11281_v30 = vld [vmem:[#allocation5 + $0x3d0] sm:$0xff]  ;;  %v11980_v21 = vand.u32 4294901760, %v11208_v8  ;;  %v11294_v16 = vsub.f32 %v4708_v33, %v4739_v50  ;;  %v11320_v50 = vld [vmem:[#allocation5 + $0x3e0] sm:$0xff] }
 0x2d6   :  { %8333 = vmatpush3.bf16.msra.mxu1 %v12269_v2  ;;  %v2074_v2 = vand.u32 4294901760, %v2049_v19  ;;  %v11982_v61 = vand.u32 4294901760, %v11281_v30  ;;  %v11311_v33 = vsub.f32 %v4709_v60, %v4742_v7  ;;  %v11989_v60 = vand.u32 4294901760, %v11217_v63 }
 0x2d7   :  { %8906 = vmatpush3.bf16.msra.mxu0 %v12270_v45  ;;  %8334 = vmatprep.subr.bf16.mxu1 %v12040_v53  ;;  %v2077_v45 = vand.u32 4294901760, %v2050_v29  ;;  %12309 = vst [vmem:[#allocation12_spill] sm:$0xff] %v11221_v35 }
 0x2d8   :  { %8907 = vmatprep.subr.bf16.mxu0 %v12040_v53  ;;  %v11232_v3 = vsub.f32 %v2049_v19, %v2074_v2  ;;  %v11275_v19 = vsub.f32 %v2053_v6, %v2086_v39  ;;  %v11302_v6 = vpack.c.bf16 %v4745_v23, %v4742_v7 }
 0x2d9   :  { %v11234_v17 = vsub.f32 %v2050_v29, %v2077_v45  ;;  %v11277_v29 = vsub.f32 %v2054_v22, %v2089_v54  ;;  %v11315_v54 = vld [vmem:[#allocation5 + $0x1f0] sm:$0xff]  ;;  %v12321_v22 = vand.u32 4294901760, %v11223_v1 }
 0x2da   :  { %8336 = vmatpush3.bf16.msra.mxu1 %v12271_v18  ;;  %v2051_v18 = vld [vmem:[#allocation5 + $0x1b0] sm:$0xff]  ;;  %12315 = vst [vmem:[#allocation19_spill] sm:$0xff] %v11302_v6 }
 0x2db   :  { %8909 = vmatpush3.bf16.msra.mxu0 %v12274_v37  ;;  %8337 = vmatprep.subr.bf16.mxu1 %v12040_v53  ;;  %v2052_v37 = vld [vmem:[#allocation5 + $0x1b8] sm:$0xff]  ;;  %v2080_v38 = vand.u32 4294901760, %v2051_v18  ;;  %v2177_v12 = vsub.f32 %v11223_v1, %v12321_v22 }
 0x2dc   :  { %8910 = vmatprep.subr.bf16.mxu0 %v12040_v53  ;;  %v2083_v36 = vand.u32 4294901760, %v2052_v37 }
 0x2dd   :  { %6853 = vmatmul.mubr.msk.f32.vlgmr.msra.gmra.mrb[0].mxu1 %vm1378_vm7, %v12156_v0  ;;  %v11251_v48 = vsub.f32 %v2051_v18, %v2080_v38  ;;  %v5405_v18 = vsel %vm4698_vm10, 1.0, %v12041_v4 }
 0x2de   :  { %8339 = vmatpush3.bf16.msra.mxu1 %v11185_v25  ;;  %6887 = vmatprep.mubr.msk.f32.mxu1 %vm9258_vm2, %v12041_v4  ;;  %v11236_v14 = vpack.c.bf16 %v2083_v36, %v2080_v38  ;;  %v11253_v52 = vsub.f32 %v2052_v37, %v2083_v36  ;;  %v11981_v37 = vand.u32 4294901760, %v11206_v31  ;;  %v2101_v38 = vand.u32 4294901760, %v11271_v56 }
 0x2df   :  { %8912 = vmatpush3.bf16.msra.mxu0 %v12278_v49  ;;  %8340 = vmatprep.subr.bf16.mxu1 %v12040_v53  ;;  %v11215_v49 = vpack.c.bf16 %v2077_v45, %v2074_v2  ;;  %v11283_v2 = vld [vmem:[#allocation5 + $0x3d8] sm:$0xff]  ;;  %v11286_v45 = vsub.f32 %v4707_v40, %v4736_v20  ;;  %v11300_v36 = vsub.f32 %v2055_v62, %v2092_v10  ;;  %v11322_v62 = vld [vmem:[#allocation5 + $0x3e8] sm:$0xff]  ;;  %v11358_v10 = vld [vmem:[#allocation5 + $0x3f0] sm:$0xff] }
 0x2e0   :  { %8913 = vmatprep.subr.bf16.mxu0 %v12040_v53  ;;  %12310 = vst [vmem:[#allocation13_spill] sm:$0xff] %v11236_v14  ;;  %v11309_v40 = vsub.f32 %v2056_v11, %v2095_v57  ;;  %v11313_v39 = vsub.f32 %v5405_v18, %v5405_v18  ;;  %v11317_v20 = vld [vmem:[#allocation5 + $0x1f8] sm:$0xff]  ;;  %v2156_v27 = vsub.f32 %v11206_v31, %v11981_v37 }
 0x2e1   :  { %12308 = vst [vmem:[#allocation11_spill] sm:$0xff] %v11215_v49  ;;  %v2163_v11 = vsub.f32 %v11208_v8, %v11980_v21  ;;  %v11332_v57 = vsub.f32 %v4710_v28, %v4745_v23  ;;  %v11334_v7 = vpack.c.bf16 %v2101_v38, %v2098_v32  ;;  %v12318_v21 = vand.u32 4294901760, %v11283_v2  ;;  %v11360_v28 = vld [vmem:[#allocation5 + $0x3f8] sm:$0xff] }
 0x2e2   :  { %8342 = vmatpush3.bf16.msra.mxu1 %v11195_v51  ;;  %7693 = vmatmul.mubr.msk.f32.vlgmr.msra.gmra.mrb[0].mxu0 %vm4034_vm8, %v12156_v0  ;;  %12316 = vst [vmem:[#allocation20_spill] sm:$0xff] %v11313_v39  ;;  %v12320_v32 = vand.u32 4294901760, %v11279_v59  ;;  %v2170_v23 = vsub.f32 %v11217_v63, %v11989_v60  ;;  %v11378_v60 = vsub.f32 %v11271_v56, %v2101_v38  ;;  %v12325_v22 = vand.u32 4294901760, %v11317_v20 }
 0x2e3   :  { %8915 = vmatpush3.bf16.msra.mxu0 %v11201_v58  ;;  %8343 = vmatprep.subr.bf16.mxu1 %v12040_v53  ;;  %12317 = vst [vmem:[#allocation23_spill] sm:$0xff] %v11334_v7  ;;  %v11345_v37 = vpack.c.bf16 %v12318_v21, %v11982_v61  ;;  %v2157_v21 = vand.u32 4294901760, %v2156_v27  ;;  %v2164_v61 = vand.u32 4294901760, %v2163_v11  ;;  %v12011_v11 = vand.u32 4294901760, %v11358_v10 }
 0x2e4   :  { %8916 = vmatprep.subr.bf16.mxu0 %v12040_v53  ;;  %7727 = vmatprep.mubr.msk.f32.mxu0 %vm9258_vm2, %v12041_v4  ;;  %v2145_v18 = vsub.f32 %v11279_v59, %v12320_v32  ;;  %v12331_v58 = vand.u32 4294901760, %v11232_v3  ;;  %v12338_v51 = vand.u32 4294901760, %v11251_v48 }
 0x2e5   :  { %12319 = vst [vmem:[#allocation24_spill] sm:$0xff] %v11345_v37 }
 0x2e6   :  { %8345 = vmatpush3.bf16.msra.mxu1 %v11215_v49  ;;  %v2146_v38 = vand.u32 4294901760, %v2145_v18  ;;  %v12332_v18 = vand.u32 4294901760, %v11234_v17 }
 0x2e7   :  { %8918 = vmatpush3.bf16.msra.mxu0 %v11221_v35  ;;  %8346 = vmatprep.subr.bf16.mxu1 %v12040_v53 }
 0x2e8   :  { %8919 = vmatprep.subr.bf16.mxu0 %v12040_v53 }
 0x2ea   :  { %8348 = vmatpush3.bf16.msra.mxu1 %v11236_v14  ;;  %v2178_v14 = vand.u32 4294901760, %v2177_v12  ;;  %v12334_v12 = vand.u32 4294901760, %v11246_v44 }
 0x2eb   :  { %8921 = vmatpush3.bf16.msra.mxu0 %v11249_v55  ;;  %8349 = vmatprep.subr.bf16.mxu1 %v12040_v53 }
 0x2ec   :  { %8922 = vmatprep.subr.bf16.mxu0 %v12040_v53 }
 0x2ee   :  { %8351 = vmatpush3.bf16.msra.mxu1 %v11267_v15  ;;  %v12324_v15 = vand.u32 4294901760, %v11315_v54 }
 0x2ef   :  { %8924 = vmatpush3.bf16.msra.mxu0 %v11269_v42  ;;  %8352 = vmatprep.subr.bf16.mxu1 %v12040_v53  ;;  %v12328_v42 = vand.u32 4294901760, %v11322_v62 }
 0x2f0   :  { %8925 = vmatprep.subr.bf16.mxu0 %v12040_v53  ;;  %v11384_v55 = vpack.c.bf16 %v12325_v22, %v12324_v15  ;;  %v12010_v15 = vand.u32 4294901760, %v11360_v28  ;;  %v8362_v22 = vpack.c.bf16 %v2164_v61, %v2157_v21  ;;  %v12333_v61 = vand.u32 4294901760, %v11244_v41 }
 0x2f2   :  { %8354 = vmatpush3.bf16.msra.mxu1 %v11296_v5  ;;  %v12323_v5 = vand.u32 4294901760, %v11227_v9  ;;  %12326 = vst [vmem:[#allocation25_spill] sm:$0xff] %v11384_v55 }
 0x2f3   :  { %8927 = vmatpush3.bf16.msra.mxu0 %v11302_v6  ;;  %8355 = vmatprep.subr.bf16.mxu1 %v12040_v53  ;;  %v12322_v6 = vand.u32 4294901760, %v11225_v24 }
 0x2f4   :  { %8928 = vmatprep.subr.bf16.mxu0 %v12040_v53  ;;  %v4819_v27 = vsub.f32 %v11227_v9, %v12323_v5  ;;  %v12327_v5 = vand.u32 4294901760, %v11320_v50 }
 0x2f5   :  { %v4812_v32 = vsub.f32 %v11225_v24, %v12322_v6  ;;  %v2171_v6 = vand.u32 4294901760, %v2170_v23  ;;  %v4826_v23 = vsub.f32 %v11244_v41, %v12333_v61 }
 0x2f6   :  { %8357 = vmatpush3.bf16.msra.mxu1 %v11334_v7  ;;  %v11394_v56 = vpack.c.bf16 %v12328_v42, %v12327_v5  ;;  %v4820_v49 = vand.u32 4294901760, %v4819_v27  ;;  %v2184_v42 = vsub.f32 %v11232_v3, %v12331_v58  ;;  %v2191_v5 = vsub.f32 %v11234_v17, %v12332_v18 }
 0x2f7   :  { %8930 = vmatpush3.bf16.msra.mxu0 %v11345_v37  ;;  %8358 = vmatprep.subr.bf16.mxu1 %v12040_v53  ;;  %v12330_v37 = vand.u32 4294901760, %v11313_v39  ;;  %v4813_v35 = vand.u32 4294901760, %v4812_v32  ;;  %v12335_v58 = vand.u32 4294901760, %v11281_v30  ;;  %v11428_v18 = vpack.c.bf16 %v12010_v15, %v12011_v11 }
 0x2f8   :  { %12329 = vst [vmem:[#allocation26_spill] sm:$0xff] %v11394_v56  ;;  %8931 = vmatprep.subr.bf16.mxu0 %v12040_v53  ;;  %v12337_v32 = vand.u32 4294901760, %v11283_v2  ;;  %v2185_v11 = vand.u32 4294901760, %v2184_v42  ;;  %v4827_v61 = vand.u32 4294901760, %v4826_v23 }
 0x2f9   :  { %v4801_v7 = vsub.f32 %v11313_v39, %v12330_v37  ;;  %v4833_v37 = vsub.f32 %v11246_v44, %v12334_v12  ;;  %v11420_v27 = vsub.f32 %v11281_v30, %v12335_v58  ;;  %12336 = vst [vmem:[#allocation16_spill] sm:$0xff] %v11428_v18  ;;  %v12016_v58 = vand.u32 4294901760, %v11275_v19 }
 0x2fa   :  { %8360 = vmatpush3.bf16.msra.mxu1 %v11384_v55  ;;  %v11435_v21 = vsub.f32 %v11283_v2, %v12337_v32  ;;  %v8365_v55 = vpack.c.bf16 %v2178_v14, %v2171_v6  ;;  %v8938_v15 = vpack.c.bf16 %v4820_v49, %v4813_v35  ;;  %v2192_v39 = vand.u32 4294901760, %v2191_v5 }
 0x2fb   :  { %8933 = vmatpush3.bf16.msra.mxu0 %v11394_v56  ;;  %8361 = vmatprep.subr.bf16.mxu1 %v12040_v53  ;;  %v4802_v30 = vand.u32 4294901760, %v4801_v7  ;;  %v12017_v56 = vand.u32 4294901760, %v11277_v29  ;;  %v4834_v12 = vand.u32 4294901760, %v4833_v37  ;;  %v2198_v2 = vsub.f32 %v11251_v48, %v12338_v51 }
 0x2fc   :  { %8934 = vmatprep.subr.bf16.mxu0 %v12040_v53  ;;  %v12339_v32 = vand.u32 4294901760, %v11253_v52  ;;  %v12340_v49 = vand.u32 4294901760, %v11256_v34  ;;  %v12341_v14 = vand.u32 4294901760, %v11262_v46  ;;  %v12342_v37 = vand.u32 4294901760, %v11315_v54 }
 0x2fd   :  { %6888 = vmatmul.mubr.f32.vlgmr.msra.gmra.mrb[0].mxu1 %v2146_v38  ;;  %v2219_v42 = vsub.f32 %v11277_v29, %v12017_v56  ;;  %v12020_v38 = vand.u32 4294901760, %v11332_v57  ;;  %v8368_v56 = vpack.c.bf16 %v2192_v39, %v2185_v11  ;;  %v8941_v5 = vpack.c.bf16 %v4834_v12, %v4827_v61 }
 0x2fe   :  { %8363 = vmatpush3.bf16.msra.mxu1 %v8362_v22  ;;  %v2205_v7 = vsub.f32 %v11253_v52, %v12339_v32  ;;  %6922 = vmatprep.mubr.msk.f32.mxu1 %vm9258_vm2, %v12041_v4  ;;  %v4840_v35 = vsub.f32 %v11256_v34, %v12340_v49  ;;  %v4847_v6 = vsub.f32 %v11262_v46, %v12341_v14  ;;  %v12343_v49 = vand.u32 4294901760, %v11317_v20 }
 0x2ff   :  { %8936 = vmatpush3.bf16.msra.mxu0 %v11428_v18  ;;  %8364 = vmatprep.subr.bf16.mxu1 %v12040_v53  ;;  %v2212_v22 = vsub.f32 %v11275_v19, %v12016_v58  ;;  %v11470_v32 = vsub.f32 %v11315_v54, %v12342_v37  ;;  %v2199_v51 = vand.u32 4294901760, %v2198_v2  ;;  %v12344_v18 = vand.u32 4294901760, %v11286_v45 }
 0x300   :  { %8937 = vmatprep.subr.bf16.mxu0 %v12040_v53  ;;  %v11475_v14 = vsub.f32 %v11317_v20, %v12343_v49  ;;  %v2206_v23 = vand.u32 4294901760, %v2205_v7  ;;  %v4841_v54 = vand.u32 4294901760, %v4840_v35  ;;  %v4848_v37 = vand.u32 4294901760, %v4847_v6 }
 0x301   :  { %v4854_v20 = vsub.f32 %v11286_v45, %v12344_v18  ;;  %v12345_v49 = vand.u32 4294901760, %v11294_v16  ;;  %v2220_v39 = vand.u32 4294901760, %v2219_v42  ;;  %v12346_v11 = vand.u32 4294901760, %v11300_v36 }
 0x302   :  { %8366 = vmatpush3.bf16.msra.mxu1 %v8365_v55  ;;  %7728 = vmatmul.mubr.f32.vlgmr.msra.gmra.mrb[0].mxu0 %v4802_v30  ;;  %v2213_v55 = vand.u32 4294901760, %v2212_v22  ;;  %v12347_v61 = vand.u32 4294901760, %v11309_v40  ;;  %v12348_v18 = vand.u32 4294901760, %v11311_v33  ;;  %v4875_v2 = vsub.f32 %v11332_v57, %v12020_v38 }
 0x303   :  { %8939 = vmatpush3.bf16.msra.mxu0 %v8938_v15  ;;  %8367 = vmatprep.subr.bf16.mxu1 %v12040_v53  ;;  %v4861_v58 = vsub.f32 %v11294_v16, %v12345_v49  ;;  %v2226_v15 = vsub.f32 %v11300_v36, %v12346_v11  ;;  %v12349_v6 = vand.u32 4294901760, %v11320_v50  ;;  %v8371_v42 = vpack.c.bf16 %v2206_v23, %v2199_v51 }
 0x304   :  { %8940 = vmatprep.subr.bf16.mxu0 %v12040_v53  ;;  %v2233_v12 = vsub.f32 %v11309_v40, %v12347_v61  ;;  %7762 = vmatprep.mubr.msk.f32.mxu0 %vm9258_vm2, %v12041_v4  ;;  %v4868_v30 = vsub.f32 %v11311_v33, %v12348_v18  ;;  %v12350_v61 = vand.u32 4294901760, %v11322_v62  ;;  %v8944_v38 = vpack.c.bf16 %v4848_v37, %v4841_v54 }
 0x305   :  { %v11506_v22 = vsub.f32 %v11320_v50, %v12349_v6  ;;  %v4855_v35 = vand.u32 4294901760, %v4854_v20  ;;  %v4862_v7 = vand.u32 4294901760, %v4861_v58  ;;  %v12351_v50 = vand.u32 4294901760, %v11358_v10 }
 0x306   :  { %8369 = vmatpush3.bf16.msra.mxu1 %v8368_v56  ;;  %v11513_v18 = vsub.f32 %v11322_v62, %v12350_v61  ;;  %v8374_v51 = vpack.c.bf16 %v2220_v39, %v2213_v55  ;;  %v2227_v23 = vand.u32 4294901760, %v2226_v15  ;;  %v2234_v6 = vand.u32 4294901760, %v2233_v12 }
 0x307   :  { %8942 = vmatpush3.bf16.msra.mxu0 %v8941_v5  ;;  %8370 = vmatprep.subr.bf16.mxu1 %v12040_v53  ;;  %v11519_v56 = vsub.f32 %v11358_v10, %v12351_v50  ;;  %v4869_v11 = vand.u32 4294901760, %v4868_v30  ;;  %v4876_v49 = vand.u32 4294901760, %v4875_v2  ;;  %v12352_v62 = vand.u32 4294901760, %v11339_v43 }
 0x308   :  { %8943 = vmatprep.subr.bf16.mxu0 %v12040_v53  ;;  %v12353_v54 = vand.u32 4294901760, %v11378_v60  ;;  %v12354_v37 = vand.u32 4294901760, %v11420_v27  ;;  %v12355_v20 = vand.u32 4294901760, %v11435_v21  ;;  %v2253_v39 = vand.u32 4294901760, %v11470_v32 }
 0x309   :  { %v2240_v5 = vsub.f32 %v11339_v43, %v12352_v62  ;;  %v12356_v12 = vand.u32 4294901760, %v11360_v28  ;;  %v8947_v2 = vpack.c.bf16 %v4862_v7, %v4855_v35  ;;  %v12023_v61 = vand.u32 4294901760, %v11513_v18 }
 0x30a   :  { %v2247_v58 = vsub.f32 %v11378_v60, %v12353_v54  ;;  %8372 = vmatpush3.bf16.msra.mxu1 %v8371_v42  ;;  %v4882_v10 = vsub.f32 %v11420_v27, %v12354_v37  ;;  %v4889_v55 = vsub.f32 %v11435_v21, %v12355_v20  ;;  %v4895_v42 = vand.u32 4294901760, %v11506_v22 }
 0x30b   :  { %v11539_v30 = vsub.f32 %v11360_v28, %v12356_v12  ;;  %8945 = vmatpush3.bf16.msra.mxu0 %v8944_v38  ;;  %8373 = vmatprep.subr.bf16.mxu1 %v12040_v53  ;;  %v8377_v50 = vpack.c.bf16 %v2234_v6, %v2227_v23  ;;  %v8950_v62 = vpack.c.bf16 %v4876_v49, %v4869_v11  ;;  %v2241_v54 = vand.u32 4294901760, %v2240_v5 }
 0x30c   :  { %8946 = vmatprep.subr.bf16.mxu0 %v12040_v53  ;;  %v2248_v37 = vand.u32 4294901760, %v2247_v58  ;;  %v4883_v20 = vand.u32 4294901760, %v4882_v10  ;;  %v4890_v15 = vand.u32 4294901760, %v4889_v55  ;;  %v2254_v28 = vsub.f32 %v11470_v32, %v2253_v39 }
 0x30d   :  { %v12357_v38 = vand.u32 4294901760, %v11475_v14  ;;  %v4896_v35 = vsub.f32 %v11506_v22, %v4895_v42  ;;  %v4903_v49 = vsub.f32 %v11513_v18, %v12023_v61  ;;  %v12022_v11 = vand.u32 4294901760, %v11519_v56 }
 0x30e   :  { %8375 = vmatpush3.bf16.msra.mxu1 %v8374_v51  ;;  %v12021_v51 = vand.u32 4294901760, %v11539_v30  ;;  %v8380_v23 = vpack.c.bf16 %v2248_v37, %v2241_v54  ;;  %v8953_v6 = vpack.c.bf16 %v4890_v15, %v4883_v20  ;;  %v2255_v5 = vand.u32 4294901760, %v2254_v28 }
 0x30f   :  { %v2261_v7 = vsub.f32 %v11475_v14, %v12357_v38  ;;  %8948 = vmatpush3.bf16.msra.mxu0 %v8947_v2  ;;  %8376 = vmatprep.subr.bf16.mxu1 %v12040_v53  ;;  %v4897_v10 = vand.u32 4294901760, %v4896_v35  ;;  %v4904_v55 = vand.u32 4294901760, %v4903_v49  ;;  %v4910_v12 = vsub.f32 %v11519_v56, %v12022_v11 }
 0x310   :  { %8949 = vmatprep.subr.bf16.mxu0 %v12040_v53  ;;  %v4917_v2 = vsub.f32 %v11539_v30, %v12021_v51  ;;  %v8386_v37 = vpack.c.bf16 %v11208_v8, %v11206_v31  ;;  %v8389_v28 = vpack.c.bf16 %v11223_v1, %v11217_v63  ;;  %v8962_v38 = vpack.c.bf16 %v11227_v9, %v11225_v24 }
 0x311   :  { %v2262_v58 = vand.u32 4294901760, %v2261_v7  ;;  %v8956_v15 = vpack.c.bf16 %v4904_v55, %v4897_v10  ;;  %v8392_v7 = vpack.c.bf16 %v11234_v17, %v11232_v3  ;;  %v8965_v35 = vpack.c.bf16 %v11246_v44, %v11244_v41 }
 0x312   :  { %8378 = vmatpush3.bf16.msra.mxu1 %v8377_v50  ;;  %v4918_v54 = vand.u32 4294901760, %v4917_v2  ;;  %v8395_v49 = vpack.c.bf16 %v11253_v52, %v11251_v48  ;;  %v8974_v10 = vpack.c.bf16 %v11332_v57, %v11311_v33  ;;  %v8404_v55 = vpack.c.bf16 %v11378_v60, %v11339_v43 }
 0x313   :  { %8951 = vmatpush3.bf16.msra.mxu0 %v8950_v62  ;;  %8379 = vmatprep.subr.bf16.mxu1 %v12040_v53  ;;  %v8383_v50 = vpack.c.bf16 %v2262_v58, %v2255_v5  ;;  %v4911_v62 = vand.u32 4294901760, %v4910_v12  ;;  %v8971_v5 = vpack.c.bf16 %v11294_v16, %v11286_v45  ;;  %v8401_v58 = vpack.c.bf16 %v11309_v40, %v11300_v36 }
 0x314   :  { %8952 = vmatprep.subr.bf16.mxu0 %v12040_v53  ;;  %v8977_v12 = vpack.c.bf16 %v11435_v21, %v11420_v27  ;;  %v8407_v2 = vpack.c.bf16 %v11475_v14, %v11470_v32  ;;  %v12376_v51 = vand.u32 4294901760, %v11217_v63  ;;  %v12377_v11 = vand.u32 4294901760, %v11223_v1 }
 0x315   :  { %v8959_v20 = vpack.c.bf16 %v4918_v54, %v4911_v62  ;;  %v12358_v62 = vld [vmem:[#allocation21_spill] sm:$0xff]  ;;  %v12359_v54 = vld [vmem:[#allocation20_spill] sm:$0xff]  ;;  %v12382_v1 = vand.u32 4294901760, %v11232_v3  ;;  %v12387_v3 = vand.u32 4294901760, %v11253_v52  ;;  %v12393_v52 = vand.u32 4294901760, %v11294_v16 }
 0x316   :  { %8381 = vmatpush3.bf16.msra.mxu1 %v8380_v23  ;;  %v8968_v23 = vpack.c.bf16 %v11262_v46, %v11256_v34  ;;  %v8437_v61 = vpack.c.bf16 %v12377_v11, %v12376_v51  ;;  %v12381_v63 = vand.u32 4294901760, %v12359_v54  ;;  %v12384_v51 = vand.u32 4294901760, %v11244_v41 }
 0x317   :  { %8954 = vmatpush3.bf16.msra.mxu0 %v8953_v6  ;;  %8382 = vmatprep.subr.bf16.mxu1 %v12040_v53  ;;  %v8398_v6 = vpack.c.bf16 %v11277_v29, %v11275_v19  ;;  %v12389_v41 = vand.u32 4294901760, %v11262_v46  ;;  %v12395_v46 = vand.u32 4294901760, %v11309_v40  ;;  %v12399_v16 = vand.u32 4294901760, %v11378_v60 }
 0x318   :  { %8955 = vmatprep.subr.bf16.mxu0 %v12040_v53  ;;  %v12401_v40 = vand.u32 4294901760, %v11435_v21  ;;  %v12404_v21 = vand.u32 4294901760, %v11519_v56 }
 0x31a   :  { %8384 = vmatpush3.bf16.msra.mxu1 %v8383_v50  ;;  %v8980_v50 = vpack.c.bf16 %v11513_v18, %v11506_v22 }
 0x31b   :  { %8957 = vmatpush3.bf16.msra.mxu0 %v8956_v15  ;;  %8385 = vmatprep.subr.bf16.mxu1 %v12040_v53  ;;  %v8983_v15 = vpack.c.bf16 %v11539_v30, %v11519_v56 }
 0x31c   :  { %8958 = vmatprep.subr.bf16.mxu0 %v12040_v53 }
 0x31d   :  { %6923 = vmatmul.mubr.msk.f32.vlgmr.msra.gmra.mrb[0].mxu1 %vm2042_vm9, %v12156_v0 }
 0x31e   :  { %8387 = vmatpush3.bf16.msra.mxu1 %v8386_v37  ;;  %6957 = vmatprep.mubr.msk.f32.mxu1 %vm9258_vm2, %v12041_v4  ;;  %v12360_v37 = vld [vmem:[#allocation22_spill] sm:$0xff] }
 0x31f   :  { %8960 = vmatpush3.bf16.msra.mxu0 %v8959_v20  ;;  %8388 = vmatprep.subr.bf16.mxu1 %v12040_v53  ;;  %v12361_v20 = vld [vmem:[#allocation11_spill] sm:$0xff] }
 0x320   :  { %8961 = vmatprep.subr.bf16.mxu0 %v12040_v53 }
 0x322   :  { %8390 = vmatpush3.bf16.msra.mxu1 %v8389_v28  ;;  %7763 = vmatmul.mubr.msk.f32.vlgmr.msra.gmra.mrb[0].mxu0 %vm4698_vm10, %v12156_v0  ;;  %v12362_v28 = vld [vmem:[#allocation12_spill] sm:$0xff] }
 0x323   :  { %8963 = vmatpush3.bf16.msra.mxu0 %v8962_v38  ;;  %8391 = vmatprep.subr.bf16.mxu1 %v12040_v53  ;;  %v12363_v38 = vld [vmem:[#allocation13_spill] sm:$0xff] }
 0x324   :  { %8964 = vmatprep.subr.bf16.mxu0 %v12040_v53  ;;  %7797 = vmatprep.mubr.msk.f32.mxu0 %vm9258_vm2, %v12041_v4 }
 0x326   :  { %8393 = vmatpush3.bf16.msra.mxu1 %v8392_v7  ;;  %v12364_v7 = vld [vmem:[#allocation14_spill] sm:$0xff] }
 0x327   :  { %8966 = vmatpush3.bf16.msra.mxu0 %v8965_v35  ;;  %8394 = vmatprep.subr.bf16.mxu1 %v12040_v53  ;;  %v12365_v35 = vld [vmem:[#allocation15_spill] sm:$0xff] }
 0x328   :  { %8967 = vmatprep.subr.bf16.mxu0 %v12040_v53 }
 0x32a   :  { %8396 = vmatpush3.bf16.msra.mxu1 %v8395_v49  ;;  %v12366_v49 = vld [vmem:[#allocation17_spill] sm:$0xff] }
 0x32b   :  { %8969 = vmatpush3.bf16.msra.mxu0 %v8968_v23  ;;  %8397 = vmatprep.subr.bf16.mxu1 %v12040_v53  ;;  %v12367_v23 = vld [vmem:[#allocation18_spill] sm:$0xff] }
 0x32c   :  { %8970 = vmatprep.subr.bf16.mxu0 %v12040_v53 }
 0x32e   :  { %8399 = vmatpush3.bf16.msra.mxu1 %v8398_v6  ;;  %v12368_v6 = vld [vmem:[#allocation19_spill] sm:$0xff] }
 0x32f   :  { %8972 = vmatpush3.bf16.msra.mxu0 %v8971_v5  ;;  %8400 = vmatprep.subr.bf16.mxu1 %v12040_v53  ;;  %v12369_v5 = vld [vmem:[#allocation23_spill] sm:$0xff] }
 0x330   :  { %8973 = vmatprep.subr.bf16.mxu0 %v12040_v53 }
 0x332   :  { %8402 = vmatpush3.bf16.msra.mxu1 %v8401_v58  ;;  %v12370_v58 = vld [vmem:[#allocation24_spill] sm:$0xff] }
 0x333   :  { %8975 = vmatpush3.bf16.msra.mxu0 %v8974_v10  ;;  %8403 = vmatprep.subr.bf16.mxu1 %v12040_v53  ;;  %v12371_v10 = vld [vmem:[#allocation25_spill] sm:$0xff] }
 0x334   :  { %8976 = vmatprep.subr.bf16.mxu0 %v12040_v53 }
 0x336   :  { %8405 = vmatpush3.bf16.msra.mxu1 %v8404_v55  ;;  %v12372_v55 = vand.u32 4294901760, %v11206_v31  ;;  %v12378_v31 = vld [vmem:[#allocation16_spill] sm:$0xff] }
 0x337   :  { %8978 = vmatpush3.bf16.msra.mxu0 %v8977_v12  ;;  %8406 = vmatprep.subr.bf16.mxu1 %v12040_v53  ;;  %v12373_v12 = vand.u32 4294901760, %v11208_v8  ;;  %v12379_v8 = vand.u32 4294901760, %v11225_v24  ;;  %v12385_v24 = vand.u32 4294901760, %v11246_v44 }
 0x338   :  { %8979 = vmatprep.subr.bf16.mxu0 %v12040_v53 }
 0x33a   :  { %8408 = vmatpush3.bf16.msra.mxu1 %v8407_v2  ;;  %v8434_v2 = vpack.c.bf16 %v12373_v12, %v12372_v55  ;;  %v12380_v55 = vand.u32 4294901760, %v11227_v9  ;;  %v9013_v9 = vpack.c.bf16 %v12385_v24, %v12384_v51 }
 0x33b   :  { %8981 = vmatpush3.bf16.msra.mxu0 %v8980_v50  ;;  %8409 = vmatprep.subr.bf16.mxu1 %v12040_v53  ;;  %v12374_v50 = vld [vmem:[#allocation26_spill] sm:$0xff] }
 0x33c   :  { %8982 = vmatprep.subr.bf16.mxu0 %v12040_v53  ;;  %v9010_v12 = vpack.c.bf16 %v12380_v55, %v12379_v8 }
 0x33d   :  { %6958 = vmatmul.mubr.f32.vlgmr.msra.gmra.mrb[0].mxu1 %v11279_v59 }
 0x33e   :  { %8411 = vmatpush3.bf16.msra.mxu1 %v11185_v25  ;;  %6992 = vmatprep.mubr.msk.f32.mxu1 %vm9258_vm2, %v12041_v4 }
 0x33f   :  { %8984 = vmatpush3.bf16.msra.mxu0 %v8983_v15  ;;  %8412 = vmatprep.subr.bf16.mxu1 %v12040_v53  ;;  %v12375_v15 = vand.u32 4294901760, %v11279_v59  ;;  %v12383_v59 = vand.u32 4294901760, %v11234_v17 }
 0x340   :  { %8985 = vmatprep.subr.bf16.mxu0 %v12040_v53 }
 0x341   :  { %v8440_v11 = vpack.c.bf16 %v12383_v59, %v12382_v1 }
 0x342   :  { %8414 = vmatpush3.bf16.msra.mxu1 %v12358_v62  ;;  %7798 = vmatmul.mubr.f32.vlgmr.msra.gmra.mrb[0].mxu0 %v12359_v54  ;;  %v12388_v54 = vand.u32 4294901760, %v11256_v34  ;;  %v12394_v34 = vand.u32 4294901760, %v11300_v36  ;;  %v12400_v36 = vand.u32 4294901760, %v11420_v27  ;;  %v12405_v27 = vand.u32 4294901760, %v11539_v30 }
 0x343   :  { %8987 = vmatpush3.bf16.msra.mxu0 %v12360_v37  ;;  %8415 = vmatprep.subr.bf16.mxu1 %v12040_v53 }
 0x344   :  { %8988 = vmatprep.subr.bf16.mxu0 %v12040_v53  ;;  %7832 = vmatprep.mubr.msk.f32.mxu0 %vm9258_vm2, %v12041_v4  ;;  %v9016_v44 = vpack.c.bf16 %v12389_v41, %v12388_v54  ;;  %v9025_v59 = vpack.c.bf16 %v12401_v40, %v12400_v36  ;;  %v9031_v32 = vpack.c.bf16 %v12405_v27, %v12404_v21 }
 0x346   :  { %8417 = vmatpush3.bf16.msra.mxu1 %v12361_v20 }
 0x347   :  { %8990 = vmatpush3.bf16.msra.mxu0 %v12362_v28  ;;  %8418 = vmatprep.subr.bf16.mxu1 %v12040_v53 }
 0x348   :  { %8991 = vmatprep.subr.bf16.mxu0 %v12040_v53 }
 0x34a   :  { %8420 = vmatpush3.bf16.msra.mxu1 %v12363_v38 }
 0x34b   :  { %8993 = vmatpush3.bf16.msra.mxu0 %v12364_v7  ;;  %8421 = vmatprep.subr.bf16.mxu1 %v12040_v53 }
 0x34c   :  { %8994 = vmatprep.subr.bf16.mxu0 %v12040_v53 }
 0x34e   :  { %8423 = vmatpush3.bf16.msra.mxu1 %v12365_v35 }
 0x34f   :  { %8996 = vmatpush3.bf16.msra.mxu0 %v12366_v49  ;;  %8424 = vmatprep.subr.bf16.mxu1 %v12040_v53 }
 0x350   :  { %8997 = vmatprep.subr.bf16.mxu0 %v12040_v53 }
 0x352   :  { %8426 = vmatpush3.bf16.msra.mxu1 %v12367_v23 }
 0x353   :  { %8999 = vmatpush3.bf16.msra.mxu0 %v12368_v6  ;;  %8427 = vmatprep.subr.bf16.mxu1 %v12040_v53 }
 0x354   :  { %9000 = vmatprep.subr.bf16.mxu0 %v12040_v53 }
 0x356   :  { %8429 = vmatpush3.bf16.msra.mxu1 %v12369_v5 }
 0x357   :  { %9002 = vmatpush3.bf16.msra.mxu0 %v12370_v58  ;;  %8430 = vmatprep.subr.bf16.mxu1 %v12040_v53 }
 0x358   :  { %9003 = vmatprep.subr.bf16.mxu0 %v12040_v53 }
 0x35a   :  { %8432 = vmatpush3.bf16.msra.mxu1 %v12371_v10 }
 0x35b   :  { %9005 = vmatpush3.bf16.msra.mxu0 %v12374_v50  ;;  %8433 = vmatprep.subr.bf16.mxu1 %v12040_v53 }
 0x35c   :  { %9006 = vmatprep.subr.bf16.mxu0 %v12040_v53 }
 0x35d   :  { %6993 = vmatmul.mubr.f32.vlgmr.msra.gmra.mrb[0].mxu1 %v12375_v15  ;;  %v12391_v15 = vand.u32 4294901760, %v11277_v29  ;;  %v12397_v29 = vand.u32 4294901760, %v11332_v57 }
 0x35e   :  { %8435 = vmatpush3.bf16.msra.mxu1 %v8434_v2  ;;  %7027 = vmatprep.mubr.msk.f32.mxu1 %vm9258_vm2, %v12041_v4  ;;  %v12390_v2 = vand.u32 4294901760, %v11275_v19  ;;  %v12396_v19 = vand.u32 4294901760, %v11311_v33  ;;  %v12402_v33 = vand.u32 4294901760, %v11475_v14 }
 0x35f   :  { %9008 = vmatpush3.bf16.msra.mxu0 %v12378_v31  ;;  %8436 = vmatprep.subr.bf16.mxu1 %v12040_v53 }
 0x360   :  { %9009 = vmatprep.subr.bf16.mxu0 %v12040_v53  ;;  %v8446_v8 = vpack.c.bf16 %v12391_v15, %v12390_v2  ;;  %v8455_v57 = vpack.c.bf16 %v12402_v33, %v2253_v39 }
 0x362   :  { %8438 = vmatpush3.bf16.msra.mxu1 %v8437_v61  ;;  %7833 = vmatmul.mubr.f32.vlgmr.msra.gmra.mrb[0].mxu0 %v12381_v63  ;;  %v12386_v61 = vand.u32 4294901760, %v11251_v48  ;;  %v12392_v48 = vand.u32 4294901760, %v11286_v45  ;;  %v9022_v63 = vpack.c.bf16 %v12397_v29, %v12396_v19  ;;  %v12398_v45 = vand.u32 4294901760, %v11339_v43 }
 0x363   :  { %9011 = vmatpush3.bf16.msra.mxu0 %v9010_v12  ;;  %8439 = vmatprep.subr.bf16.mxu1 %v12040_v53  ;;  %v8449_v12 = vpack.c.bf16 %v12395_v46, %v12394_v34  ;;  %v12403_v43 = vand.u32 4294901760, %v11513_v18 }
 0x364   :  { %9012 = vmatprep.subr.bf16.mxu0 %v12040_v53  ;;  %7867 = vmatprep.mubr.msk.f32.mxu0 %vm9258_vm2, %v12041_v4  ;;  %v8443_v17 = vpack.c.bf16 %v12387_v3, %v12386_v61  ;;  %v9019_v55 = vpack.c.bf16 %v12393_v52, %v12392_v48  ;;  %v8452_v1 = vpack.c.bf16 %v12399_v16, %v12398_v45 }
 0x365   :  { %v9028_v60 = vpack.c.bf16 %v12403_v43, %v4895_v42 }
 0x366   :  { %8441 = vmatpush3.bf16.msra.mxu1 %v8440_v11 }
 0x367   :  { %9014 = vmatpush3.bf16.msra.mxu0 %v9013_v9  ;;  %8442 = vmatprep.subr.bf16.mxu1 %v12040_v53 }
 0x368   :  { %9015 = vmatprep.subr.bf16.mxu0 %v12040_v53 }
 0x36a   :  { %8444 = vmatpush3.bf16.msra.mxu1 %v8443_v17 }
 0x36b   :  { %9017 = vmatpush3.bf16.msra.mxu0 %v9016_v44  ;;  %8445 = vmatprep.subr.bf16.mxu1 %v12040_v53 }
 0x36c   :  { %9018 = vmatprep.subr.bf16.mxu0 %v12040_v53 }
 0x36e   :  { %8447 = vmatpush3.bf16.msra.mxu1 %v8446_v8 }
 0x36f   :  { %9020 = vmatpush3.bf16.msra.mxu0 %v9019_v55  ;;  %8448 = vmatprep.subr.bf16.mxu1 %v12040_v53 }
 0x370   :  { %9021 = vmatprep.subr.bf16.mxu0 %v12040_v53 }
 0x372   :  { %8450 = vmatpush3.bf16.msra.mxu1 %v8449_v12 }
 0x373   :  { %9023 = vmatpush3.bf16.msra.mxu0 %v9022_v63  ;;  %8451 = vmatprep.subr.bf16.mxu1 %v12040_v53 }
 0x374   :  { %9024 = vmatprep.subr.bf16.mxu0 %v12040_v53 }
 0x376   :  { %8453 = vmatpush3.bf16.msra.mxu1 %v8452_v1 }
 0x377   :  { %9026 = vmatpush3.bf16.msra.mxu0 %v9025_v59  ;;  %8454 = vmatprep.subr.bf16.mxu1 %v12040_v53 }
 0x378   :  { %9027 = vmatprep.subr.bf16.mxu0 %v12040_v53 }
 0x37a   :  { %8456 = vmatpush3.bf16.msra.mxu1 %v8455_v57 }
 0x37b   :  { %9029 = vmatpush3.bf16.msra.mxu0 %v9028_v60  ;;  %8457 = vmatprep.subr.bf16.mxu1 %v12040_v53 }
 0x37c   :  { %9030 = vmatprep.subr.bf16.mxu0 %v12040_v53 }
 0x37d   :  { %7028 = vmatmul.mubr.msk.f32.vlgmr.msra.gmra.mrb[0].mxu1 %vm2042_vm9, %v12156_v0 }
 0x37e   :  { %8459 = vmatpush3.bf16.msra.mxu1 %v11185_v25  ;;  %7062 = vmatprep.mubr.msk.f32.mxu1 %vm9258_vm2, %v12041_v4 }
 0x37f   :  { %9032 = vmatpush3.bf16.msra.mxu0 %v9031_v32  ;;  %8460 = vmatprep.subr.bf16.mxu1 %v12040_v53 }
 0x380   :  { %9033 = vmatprep.subr.bf16.mxu0 %v12040_v53 }
 0x382   :  { %8462 = vmatpush3.bf16.msra.mxu1 %v12358_v62  ;;  %7868 = vmatmul.mubr.msk.f32.vlgmr.msra.gmra.mrb[0].mxu0 %vm4698_vm10, %v12156_v0 }
 0x383   :  { %9035 = vmatpush3.bf16.msra.mxu0 %v12360_v37  ;;  %8463 = vmatprep.subr.bf16.mxu1 %v12040_v53 }
 0x384   :  { %9036 = vmatprep.subr.bf16.mxu0 %v12040_v53  ;;  %7902 = vmatprep.mubr.msk.f32.mxu0 %vm9258_vm2, %v12041_v4 }
 0x386   :  { %8465 = vmatpush3.bf16.msra.mxu1 %v12361_v20 }
 0x387   :  { %9038 = vmatpush3.bf16.msra.mxu0 %v12362_v28  ;;  %8466 = vmatprep.subr.bf16.mxu1 %v12040_v53 }
 0x388   :  { %9039 = vmatprep.subr.bf16.mxu0 %v12040_v53 }
 0x38a   :  { %8468 = vmatpush3.bf16.msra.mxu1 %v12363_v38 }
 0x38b   :  { %9041 = vmatpush3.bf16.msra.mxu0 %v12364_v7  ;;  %8469 = vmatprep.subr.bf16.mxu1 %v12040_v53 }
 0x38c   :  { %9042 = vmatprep.subr.bf16.mxu0 %v12040_v53 }
 0x38e   :  { %8471 = vmatpush3.bf16.msra.mxu1 %v12365_v35 }
 0x38f   :  { %9044 = vmatpush3.bf16.msra.mxu0 %v12366_v49  ;;  %8472 = vmatprep.subr.bf16.mxu1 %v12040_v53 }
 0x390   :  { %9045 = vmatprep.subr.bf16.mxu0 %v12040_v53 }
 0x392   :  { %8474 = vmatpush3.bf16.msra.mxu1 %v12367_v23 }
 0x393   :  { %9047 = vmatpush3.bf16.msra.mxu0 %v12368_v6  ;;  %8475 = vmatprep.subr.bf16.mxu1 %v12040_v53 }
 0x394   :  { %9048 = vmatprep.subr.bf16.mxu0 %v12040_v53 }
 0x396   :  { %8477 = vmatpush3.bf16.msra.mxu1 %v12369_v5 }
 0x397   :  { %9050 = vmatpush3.bf16.msra.mxu0 %v12370_v58  ;;  %8478 = vmatprep.subr.bf16.mxu1 %v12040_v53 }
 0x398   :  { %9051 = vmatprep.subr.bf16.mxu0 %v12040_v53 }
 0x39a   :  { %8480 = vmatpush3.bf16.msra.mxu1 %v12371_v10 }
 0x39b   :  { %9053 = vmatpush3.bf16.msra.mxu0 %v12374_v50 }
 0x39c   :  { %9054 = vmatprep.subr.bf16.mxu0 %v12040_v53 }
 0x39d   :  { %7063 = vmatmul.mubr.msk.f32.vlgmr.msra.gmra.mrb[0].mxu1 %vm2042_vm9, %v12156_v0 }
 0x39f   :  { %9056 = vmatpush3.bf16.msra.mxu0 %v12378_v31 }
 0x3a2   :  { %7903 = vmatmul.mubr.msk.f32.vlgmr.msra.gmra.mrb[0].mxu0 %vm4698_vm10, %v12156_v0 }
 0x470   :  { %v2698_v4 = vpop.f32.mrb[0].mxu1 }
 0x471   :  { %v7064_v25 = vpop.f32.mrb[1].mxu1 }
 0x475   :  { %v5354_v14 = vpop.f32.mrb[0].mxu0 }
 0x476   :  { %v9057_v22 = vadd.f32 %v5354_v14, %v2698_v4  ;;  %v7904_v18 = vpop.f32.mrb[1].mxu0 }
 0x478   :  { %5359 = vst [vmem:[#allocation7] sm:$0xff] %v9057_v22 }
 0x479   :  { %9234 = shalt.err (!%p9231_p6)
}
 0x47a   :  { %s9235_s10 = scalar_lea.hbm %s11824_s2, 128 }
 0x47b   :  { %p9236_p7 = scmp.ne.s32.totalorder %s11824_s2, %s9235_s10  ;;  %p9239_p8 = scmp.lt.u32.totalorder %s9235_s10, %s11824_s2 }
 0x47d   :  { %p9241_p9 = pnand %p9239_p8, %p9236_p7 }
 0x47f   :  { %9244 = shalt.err (!%p9241_p9)
}
 0x480   :  { %5369 = dma.vmem_to_hbm [thread:$0]  %s5367_s6, 128, %s11824_s2, [#allocation4]  }
 0x481   :  { %9249 = dma.done.wait [#allocation4], 128  }
 0x482   :  { %9250 = vsyncadd [#allocation4], 4294967168 }
 0x483   :  { %5373 = vsyncpa [#allocation3], 1 }
 0x484   :  { %5374 = vsyncpa [#allocation6], 1 }
 0x485   :  { %5375 = vsyncpa [#allocation4], 1 }

</bundles_post_ra>
